<compile_context>
chip_gen: v6e
topology: v6e:2x2x1
jax: 0.10.0
libtpu: 0.0.40
codegen_flags: <defaults>
</compile_context>

<pallas_src>
import numpy as np
import jax
import jax.numpy as jnp
from jax import lax
from jax.experimental import pallas as pl
from jax.experimental.pallas import tpu as pltpu


# ---------------------------------------------------------------------------
# Fused kernel: conv1 + relu + conv2 + relu + fc + log_softmax for ONE image.
#
# Lane-dense 2-D layouts used in VMEM:
#   x       : (28, 28)      input image (C=1)
#   h1      : (24, 240)     h1[y, x*10 + c]  == relu(conv1)[c, y, x]
#   h2      : (20, 800)     h2[y, x*40 + c]  == relu(conv2)[c, y, x]
#   w1b[i]  : (28, 240)     w1b[i, x+j, x*10+c]        = conv1.w[c, 0, i, j]
#   w2b[i]  : (240, 800)    w2b[i, (x+j)*10+ci, x*40+co] = conv2.w[co, ci, i, j]
#   wfc     : (800, 200)    wfc[x*40+c, y*10+o] = fc.w[o, c*400 + y*20 + x]
#   mask    : (20, 200)     mask[y, y*10+o] = 1   (select diagonal y-block)
#   sel     : (200, 10)     sel[y*10+o, o]  = 1   (fold the 20 y-blocks)
# ---------------------------------------------------------------------------
def _net_fused_kernel(x_ref, w1b_ref, b1_ref, w2b_ref, b2_ref,
                      wfc_ref, mask_ref, sel_ref, bfc_ref,
                      o_ref, h1_ref):
    # ---- conv1 (1 -> 10, 5x5, valid): 5 banded matmuls + bias + relu --------
    acc1 = jnp.dot(x_ref[0, 0:24, :], w1b_ref[0],
                   preferred_element_type=jnp.float32)
    for i in range(1, 5):
        acc1 = acc1 + jnp.dot(x_ref[0, i:i + 24, :], w1b_ref[i],
                              preferred_element_type=jnp.float32)
    h1_ref[...] = jnp.maximum(acc1 + b1_ref[...], 0.0)          # (24, 240)

    # ---- conv2 (10 -> 40, 5x5, valid): 5 banded matmuls + bias + relu -------
    acc2 = jnp.dot(h1_ref[0:20, :], w2b_ref[0],
                   preferred_element_type=jnp.float32)
    for i in range(1, 5):
        acc2 = acc2 + jnp.dot(h1_ref[i:i + 20, :], w2b_ref[i],
                              preferred_element_type=jnp.float32)
    h2 = jnp.maximum(acc2 + b2_ref[...], 0.0)                    # (20, 800)

    # ---- fc (16000 -> 10): single matmul + diagonal-block fold --------------
    e = jnp.dot(h2, wfc_ref[...], preferred_element_type=jnp.float32)   # (20, 200)
    r = jnp.sum(e * mask_ref[...], axis=0, keepdims=True)               # (1, 200)
    logits = jnp.dot(r, sel_ref[...],
                     preferred_element_type=jnp.float32) + bfc_ref[...]  # (1, 10)

    # ---- log_softmax ---------------------------------------------------------
    m = jnp.max(logits, axis=-1, keepdims=True)
    z = logits - m
    lse = jnp.log(jnp.sum(jnp.exp(z), axis=-1, keepdims=True))
    o_ref[0] = (z - lse).astype(o_ref.dtype)


def net_forward(pp, x):
    """Pallas forward.  pp = prepare_params(params); x: (N, 1, 28, 28) f32."""
    n = x.shape[0]
    x2d = x.reshape(n, 28, 28)                   # C=1 -> free reshape

    out = pl.pallas_call(
        _net_fused_kernel,
        out_shape=jax.ShapeDtypeStruct((n, 1, 10), jnp.float32),
        grid_spec=pltpu.PrefetchScalarGridSpec(
            num_scalar_prefetch=0,
            grid=(n,),
            in_specs=[
                pl.BlockSpec((1, 28, 28), lambda i: (i, 0, 0)),    # image
                pl.BlockSpec((5, 28, 240), lambda i: (0, 0, 0)),   # conv1 banded W (resident)
                pl.BlockSpec((1, 240), lambda i: (0, 0)),          # conv1 bias (tiled)
                pl.BlockSpec((5, 240, 800), lambda i: (0, 0, 0)),  # conv2 banded W (resident)
                pl.BlockSpec((1, 800), lambda i: (0, 0)),          # conv2 bias (tiled)
                pl.BlockSpec((800, 200), lambda i: (0, 0)),        # fc weight, K-major
                pl.BlockSpec((20, 200), lambda i: (0, 0)),         # diag-block mask
                pl.BlockSpec((200, 10), lambda i: (0, 0)),         # fold selector
                pl.BlockSpec((1, 10), lambda i: (0, 0)),           # fc bias
            ],
            out_specs=pl.BlockSpec((1, 1, 10), lambda i: (i, 0, 0)),
            scratch_shapes=[pltpu.VMEM((24, 240), jnp.float32)],   # h1
        ),
        compiler_params=pltpu.CompilerParams(
            dimension_semantics=("parallel",),
            vmem_limit_bytes=32 * 1024 * 1024),
    )(x2d, pp["w1b"], pp["b1"], pp["w2b"], pp["b2"],
      pp["wfc"], pp["mask"], pp["sel"], pp["bfc"])
    return out.reshape(n, 10)


# ---------------------------------------------------------------------------
# One-time host-side parameter preparation (banded weights, tiled biases).
# ---------------------------------------------------------------------------
def prepare_params(params):
    w1 = np.asarray(params["w1"], np.float32)     # (10, 1, 5, 5)  (O, I, KH, KW)
    b1 = np.asarray(params["b1"], np.float32)     # (10,)
    w2 = np.asarray(params["w2"], np.float32)     # (40, 10, 5, 5)
    b2 = np.asarray(params["b2"], np.float32)     # (40,)
    wfc = np.asarray(params["wfc"], np.float32)   # (10, 16000)
    bfc = np.asarray(params["bfc"], np.float32)   # (10,)

    # conv1 banded weights: w1b[i, x+j, x*10+c] = w1[c, 0, i, j]
    w1b = np.zeros((5, 28, 24 * 10), np.float32)
    for i in range(5):
        for j in range(5):
            for x in range(24):
                w1b[i, x + j, x * 10:(x + 1) * 10] = w1[:, 0, i, j]

    # conv2 banded weights: w2b[i, (x+j)*10+ci, x*40+co] = w2[co, ci, i, j]
    w2b = np.zeros((5, 24 * 10, 20 * 40), np.float32)
    for i in range(5):
        for j in range(5):
            for x in range(20):
                w2b[i, (x + j) * 10:(x + j + 1) * 10,
                    x * 40:(x + 1) * 40] = w2[:, :, i, j].T      # (ci, co)

    # fc weight, K-major lane-dense: wfc_b[x*40+c, y*10+o] = wfc[o, c*400+y*20+x]
    wfc_b = np.ascontiguousarray(
        wfc.reshape(10, 40, 20, 20).transpose(3, 1, 2, 0).reshape(800, 200))

    # diagonal-block mask (20, 200) and column-fold selector (200, 10)
    mask = np.zeros((20, 200), np.float32)
    for y in range(20):
        mask[y, y * 10:(y + 1) * 10] = 1.0
    sel = np.tile(np.eye(10, dtype=np.float32), (20, 1))          # (200, 10)

    return dict(
        w1b=jnp.asarray(w1b),
        b1=jnp.asarray(np.tile(b1, 24)[None, :]),                 # (1, 240)
        w2b=jnp.asarray(w2b),
        b2=jnp.asarray(np.tile(b2, 20)[None, :]),                 # (1, 800)
        wfc=jnp.asarray(wfc_b),
        mask=jnp.asarray(mask),
        sel=jnp.asarray(sel),
        bfc=jnp.asarray(bfc[None, :]),                            # (1, 10)
    )


def net_forward_ref(params, x):
    """Pure-JAX NCHW reference (high precision), using the ORIGINAL params."""
    dn = ("NCHW", "OIHW", "NCHW")
    h1 = lax.conv_general_dilated(x, params["w1"], (1, 1), "VALID",
                                  dimension_numbers=dn,
                                  precision=lax.Precision.HIGHEST)
    h1 = jax.nn.relu(h1 + params["b1"][None, :, None, None])
    h2 = lax.conv_general_dilated(h1, params["w2"], (1, 1), "VALID",
                                  dimension_numbers=dn,
                                  precision=lax.Precision.HIGHEST)
    h2 = jax.nn.relu(h2 + params["b2"][None, :, None, None])
    flat = h2.reshape(x.shape[0], -1)
    logits = jnp.dot(flat, params["wfc"].T,
                     precision=lax.Precision.HIGHEST) + params["bfc"]
    return jax.nn.log_softmax(logits, axis=1)


if __name__ == "__main__":
    key = jax.random.PRNGKey(0)
    ks = jax.random.split(key, 7)

    def uinit(k, shape, fan_in):
        bound = 1.0 / float(np.sqrt(fan_in))
        return jax.random.uniform(k, shape, jnp.float32, -bound, bound)

    # PyTorch-default-style init (U[-1/sqrt(fan_in), 1/sqrt(fan_in)]).
    params = dict(
        w1=uinit(ks[0], (10, 1, 5, 5), 1 * 5 * 5),
        b1=uinit(ks[1], (10,), 1 * 5 * 5),
        w2=uinit(ks[2], (40, 10, 5, 5), 10 * 5 * 5),
        b2=uinit(ks[3], (40,), 10 * 5 * 5),
        wfc=uinit(ks[4], (10, 16000), 16000),
        bfc=uinit(ks[5], (10,), 16000),
    )

    # batch=2; 28x28 input is implied by fc's 16000 = 40*20*20.
    x = jax.random.normal(ks[6], (2, 1, 28, 28), jnp.float32)

    pp = prepare_params(params)                # one-time layout prep
    out = jax.jit(net_forward)(pp, x)
    out = jax.block_until_ready(out)

    ref = net_forward_ref(params, x)
    np.testing.assert_allclose(np.asarray(out), np.asarray(ref),
                               atol=5e-3, rtol=5e-3)
    print("KERNEL_OK")
</pallas_src>

<mosaic_0001>
module attributes {stable_mosaic.version = 11 : i64} {
  func.func @_net_fused_kernel(%arg0: i32, %arg1: memref<1x28x28xf32, #tpu.memory_space<vmem>>, %arg2: memref<5x28x240xf32, #tpu.memory_space<vmem>>, %arg3: memref<1x240xf32, #tpu.memory_space<vmem>>, %arg4: memref<5x240x800xf32, #tpu.memory_space<vmem>>, %arg5: memref<1x800xf32, #tpu.memory_space<vmem>>, %arg6: memref<800x200xf32, #tpu.memory_space<vmem>>, %arg7: memref<20x200xf32, #tpu.memory_space<vmem>>, %arg8: memref<200x10xf32, #tpu.memory_space<vmem>>, %arg9: memref<1x10xf32, #tpu.memory_space<vmem>>, %arg10: memref<1x1x10xf32, #tpu.memory_space<vmem>>, %arg11: memref<24x240xf32, #tpu.memory_space<vmem>>) attributes {dimension_semantics = [#tpu.dimension_semantics<parallel>], iteration_bounds = array<i64: 2>, scalar_prefetch = 0 : i64, scratch_operands = 1 : i64, tpu.core_type = #tpu.core_type<tc>, window_params = [{transform_indices = @transform_0, window_bounds = array<i64: 1, 28, 28>}, {pipeline_mode = #tpu.pipeline_mode<synchronous>, transform_indices = @transform_1, window_bounds = array<i64: 5, 28, 240>}, {pipeline_mode = #tpu.pipeline_mode<synchronous>, transform_indices = @transform_2, window_bounds = array<i64: 1, 240>}, {pipeline_mode = #tpu.pipeline_mode<synchronous>, transform_indices = @transform_3, window_bounds = array<i64: 5, 240, 800>}, {pipeline_mode = #tpu.pipeline_mode<synchronous>, transform_indices = @transform_4, window_bounds = array<i64: 1, 800>}, {pipeline_mode = #tpu.pipeline_mode<synchronous>, transform_indices = @transform_5, window_bounds = array<i64: 800, 200>}, {pipeline_mode = #tpu.pipeline_mode<synchronous>, transform_indices = @transform_6, window_bounds = array<i64: 20, 200>}, {pipeline_mode = #tpu.pipeline_mode<synchronous>, transform_indices = @transform_7, window_bounds = array<i64: 200, 10>}, {pipeline_mode = #tpu.pipeline_mode<synchronous>, transform_indices = @transform_8, window_bounds = array<i64: 1, 10>}, {transform_indices = @transform_9, window_bounds = array<i64: 1, 1, 10>}]} {
    %c0 = arith.constant 0 : index
    %c0_0 = arith.constant 0 : index
    %c0_1 = arith.constant 0 : index
    %0 = vector.load %arg1[%c0, %c0_0, %c0_1] : memref<1x28x28xf32, #tpu.memory_space<vmem>>, vector<1x24x28xf32>
    %1 = vector.shape_cast %0 : vector<1x24x28xf32> to vector<24x28xf32>
    %c0_2 = arith.constant 0 : index
    %c0_3 = arith.constant 0 : index
    %c0_4 = arith.constant 0 : index
    %2 = vector.load %arg2[%c0_2, %c0_3, %c0_4] : memref<5x28x240xf32, #tpu.memory_space<vmem>>, vector<1x28x240xf32>
    %3 = vector.shape_cast %2 : vector<1x28x240xf32> to vector<28x240xf32>
    %cst = arith.constant dense<0.000000e+00> : vector<24x240xf32>
    %4 = tpu.matmul %1, %3, %cst {dimension_numbers = #tpu.dot_dimension_numbers<[1], [0], [0], [1], [0, 0, 1, 1], [], []>} : vector<24x28xf32>, vector<28x240xf32>, vector<24x240xf32> -> vector<24x240xf32>
    %c0_5 = arith.constant 0 : index
    %c1 = arith.constant 1 : index
    %c0_6 = arith.constant 0 : index
    %5 = vector.load %arg1[%c0_5, %c1, %c0_6] : memref<1x28x28xf32, #tpu.memory_space<vmem>>, vector<1x24x28xf32>
    %6 = vector.shape_cast %5 : vector<1x24x28xf32> to vector<24x28xf32>
    %c1_7 = arith.constant 1 : index
    %c0_8 = arith.constant 0 : index
    %c0_9 = arith.constant 0 : index
    %7 = vector.load %arg2[%c1_7, %c0_8, %c0_9] : memref<5x28x240xf32, #tpu.memory_space<vmem>>, vector<1x28x240xf32>
    %8 = vector.shape_cast %7 : vector<1x28x240xf32> to vector<28x240xf32>
    %cst_10 = arith.constant dense<0.000000e+00> : vector<24x240xf32>
    %9 = tpu.matmul %6, %8, %cst_10 {dimension_numbers = #tpu.dot_dimension_numbers<[1], [0], [0], [1], [0, 0, 1, 1], [], []>} : vector<24x28xf32>, vector<28x240xf32>, vector<24x240xf32> -> vector<24x240xf32>
    %10 = arith.addf %4, %9 : vector<24x240xf32>
    %c0_11 = arith.constant 0 : index
    %c2 = arith.constant 2 : index
    %c0_12 = arith.constant 0 : index
    %11 = vector.load %arg1[%c0_11, %c2, %c0_12] : memref<1x28x28xf32, #tpu.memory_space<vmem>>, vector<1x24x28xf32>
    %12 = vector.shape_cast %11 : vector<1x24x28xf32> to vector<24x28xf32>
    %c2_13 = arith.constant 2 : index
    %c0_14 = arith.constant 0 : index
    %c0_15 = arith.constant 0 : index
    %13 = vector.load %arg2[%c2_13, %c0_14, %c0_15] : memref<5x28x240xf32, #tpu.memory_space<vmem>>, vector<1x28x240xf32>
    %14 = vector.shape_cast %13 : vector<1x28x240xf32> to vector<28x240xf32>
    %cst_16 = arith.constant dense<0.000000e+00> : vector<24x240xf32>
    %15 = tpu.matmul %12, %14, %cst_16 {dimension_numbers = #tpu.dot_dimension_numbers<[1], [0], [0], [1], [0, 0, 1, 1], [], []>} : vector<24x28xf32>, vector<28x240xf32>, vector<24x240xf32> -> vector<24x240xf32>
    %16 = arith.addf %10, %15 : vector<24x240xf32>
    %c0_17 = arith.constant 0 : index
    %c3 = arith.constant 3 : index
    %c0_18 = arith.constant 0 : index
    %17 = vector.load %arg1[%c0_17, %c3, %c0_18] : memref<1x28x28xf32, #tpu.memory_space<vmem>>, vector<1x24x28xf32>
    %18 = vector.shape_cast %17 : vector<1x24x28xf32> to vector<24x28xf32>
    %c3_19 = arith.constant 3 : index
    %c0_20 = arith.constant 0 : index
    %c0_21 = arith.constant 0 : index
    %19 = vector.load %arg2[%c3_19, %c0_20, %c0_21] : memref<5x28x240xf32, #tpu.memory_space<vmem>>, vector<1x28x240xf32>
    %20 = vector.shape_cast %19 : vector<1x28x240xf32> to vector<28x240xf32>
    %cst_22 = arith.constant dense<0.000000e+00> : vector<24x240xf32>
    %21 = tpu.matmul %18, %20, %cst_22 {dimension_numbers = #tpu.dot_dimension_numbers<[1], [0], [0], [1], [0, 0, 1, 1], [], []>} : vector<24x28xf32>, vector<28x240xf32>, vector<24x240xf32> -> vector<24x240xf32>
    %22 = arith.addf %16, %21 : vector<24x240xf32>
    %c0_23 = arith.constant 0 : index
    %c4 = arith.constant 4 : index
    %c0_24 = arith.constant 0 : index
    %23 = vector.load %arg1[%c0_23, %c4, %c0_24] : memref<1x28x28xf32, #tpu.memory_space<vmem>>, vector<1x24x28xf32>
    %24 = vector.shape_cast %23 : vector<1x24x28xf32> to vector<24x28xf32>
    %c4_25 = arith.constant 4 : index
    %c0_26 = arith.constant 0 : index
    %c0_27 = arith.constant 0 : index
    %25 = vector.load %arg2[%c4_25, %c0_26, %c0_27] : memref<5x28x240xf32, #tpu.memory_space<vmem>>, vector<1x28x240xf32>
    %26 = vector.shape_cast %25 : vector<1x28x240xf32> to vector<28x240xf32>
    %cst_28 = arith.constant dense<0.000000e+00> : vector<24x240xf32>
    %27 = tpu.matmul %24, %26, %cst_28 {dimension_numbers = #tpu.dot_dimension_numbers<[1], [0], [0], [1], [0, 0, 1, 1], [], []>} : vector<24x28xf32>, vector<28x240xf32>, vector<24x240xf32> -> vector<24x240xf32>
    %28 = arith.addf %22, %27 : vector<24x240xf32>
    %c0_29 = arith.constant 0 : index
    %c0_30 = arith.constant 0 : index
    %29 = vector.load %arg3[%c0_29, %c0_30] : memref<1x240xf32, #tpu.memory_space<vmem>>, vector<1x240xf32>
    %30 = vector.broadcast %29 : vector<1x240xf32> to vector<24x240xf32>
    %31 = arith.addf %28, %30 : vector<24x240xf32>
    %cst_31 = arith.constant 0.000000e+00 : f32
    %32 = vector.broadcast %cst_31 : f32 to vector<24x240xf32>
    %33 = arith.maximumf %31, %32 : vector<24x240xf32>
    %c0_32 = arith.constant 0 : index
    %c0_33 = arith.constant 0 : index
    %34 = vector.load %arg11[%c0_32, %c0_33] : memref<24x240xf32, #tpu.memory_space<vmem>>, vector<24x240xf32>
    tpu.vector_store %arg11[%c0_32, %c0_33], %33 {strides = array<i32>} : memref<24x240xf32, #tpu.memory_space<vmem>>, vector<24x240xf32>,
    %c0_34 = arith.constant 0 : index
    %c0_35 = arith.constant 0 : index
    %35 = vector.load %arg11[%c0_34, %c0_35] : memref<24x240xf32, #tpu.memory_space<vmem>>, vector<20x240xf32>
    %c0_36 = arith.constant 0 : index
    %c0_37 = arith.constant 0 : index
    %c0_38 = arith.constant 0 : index
    %36 = vector.load %arg4[%c0_36, %c0_37, %c0_38] : memref<5x240x800xf32, #tpu.memory_space<vmem>>, vector<1x240x800xf32>
    %37 = vector.shape_cast %36 : vector<1x240x800xf32> to vector<240x800xf32>
    %cst_39 = arith.constant dense<0.000000e+00> : vector<20x800xf32>
    %38 = tpu.matmul %35, %37, %cst_39 {dimension_numbers = #tpu.dot_dimension_numbers<[1], [0], [0], [1], [0, 0, 1, 1], [], []>} : vector<20x240xf32>, vector<240x800xf32>, vector<20x800xf32> -> vector<20x800xf32>
    %c1_40 = arith.constant 1 : index
    %c0_41 = arith.constant 0 : index
    %39 = vector.load %arg11[%c1_40, %c0_41] : memref<24x240xf32, #tpu.memory_space<vmem>>, vector<20x240xf32>
    %c1_42 = arith.constant 1 : index
    %c0_43 = arith.constant 0 : index
    %c0_44 = arith.constant 0 : index
    %40 = vector.load %arg4[%c1_42, %c0_43, %c0_44] : memref<5x240x800xf32, #tpu.memory_space<vmem>>, vector<1x240x800xf32>
    %41 = vector.shape_cast %40 : vector<1x240x800xf32> to vector<240x800xf32>
    %cst_45 = arith.constant dense<0.000000e+00> : vector<20x800xf32>
    %42 = tpu.matmul %39, %41, %cst_45 {dimension_numbers = #tpu.dot_dimension_numbers<[1], [0], [0], [1], [0, 0, 1, 1], [], []>} : vector<20x240xf32>, vector<240x800xf32>, vector<20x800xf32> -> vector<20x800xf32>
    %43 = arith.addf %38, %42 : vector<20x800xf32>
    %c2_46 = arith.constant 2 : index
    %c0_47 = arith.constant 0 : index
    %44 = vector.load %arg11[%c2_46, %c0_47] : memref<24x240xf32, #tpu.memory_space<vmem>>, vector<20x240xf32>
    %c2_48 = arith.constant 2 : index
    %c0_49 = arith.constant 0 : index
    %c0_50 = arith.constant 0 : index
    %45 = vector.load %arg4[%c2_48, %c0_49, %c0_50] : memref<5x240x800xf32, #tpu.memory_space<vmem>>, vector<1x240x800xf32>
    %46 = vector.shape_cast %45 : vector<1x240x800xf32> to vector<240x800xf32>
    %cst_51 = arith.constant dense<0.000000e+00> : vector<20x800xf32>
    %47 = tpu.matmul %44, %46, %cst_51 {dimension_numbers = #tpu.dot_dimension_numbers<[1], [0], [0], [1], [0, 0, 1, 1], [], []>} : vector<20x240xf32>, vector<240x800xf32>, vector<20x800xf32> -> vector<20x800xf32>
    %48 = arith.addf %43, %47 : vector<20x800xf32>
    %c3_52 = arith.constant 3 : index
    %c0_53 = arith.constant 0 : index
    %49 = vector.load %arg11[%c3_52, %c0_53] : memref<24x240xf32, #tpu.memory_space<vmem>>, vector<20x240xf32>
    %c3_54 = arith.constant 3 : index
    %c0_55 = arith.constant 0 : index
    %c0_56 = arith.constant 0 : index
    %50 = vector.load %arg4[%c3_54, %c0_55, %c0_56] : memref<5x240x800xf32, #tpu.memory_space<vmem>>, vector<1x240x800xf32>
    %51 = vector.shape_cast %50 : vector<1x240x800xf32> to vector<240x800xf32>
    %cst_57 = arith.constant dense<0.000000e+00> : vector<20x800xf32>
    %52 = tpu.matmul %49, %51, %cst_57 {dimension_numbers = #tpu.dot_dimension_numbers<[1], [0], [0], [1], [0, 0, 1, 1], [], []>} : vector<20x240xf32>, vector<240x800xf32>, vector<20x800xf32> -> vector<20x800xf32>
    %53 = arith.addf %48, %52 : vector<20x800xf32>
    %c4_58 = arith.constant 4 : index
    %c0_59 = arith.constant 0 : index
    %54 = vector.load %arg11[%c4_58, %c0_59] : memref<24x240xf32, #tpu.memory_space<vmem>>, vector<20x240xf32>
    %c4_60 = arith.constant 4 : index
    %c0_61 = arith.constant 0 : index
    %c0_62 = arith.constant 0 : index
    %55 = vector.load %arg4[%c4_60, %c0_61, %c0_62] : memref<5x240x800xf32, #tpu.memory_space<vmem>>, vector<1x240x800xf32>
    %56 = vector.shape_cast %55 : vector<1x240x800xf32> to vector<240x800xf32>
    %cst_63 = arith.constant dense<0.000000e+00> : vector<20x800xf32>
    %57 = tpu.matmul %54, %56, %cst_63 {dimension_numbers = #tpu.dot_dimension_numbers<[1], [0], [0], [1], [0, 0, 1, 1], [], []>} : vector<20x240xf32>, vector<240x800xf32>, vector<20x800xf32> -> vector<20x800xf32>
    %58 = arith.addf %53, %57 : vector<20x800xf32>
    %c0_64 = arith.constant 0 : index
    %c0_65 = arith.constant 0 : index
    %59 = vector.load %arg5[%c0_64, %c0_65] : memref<1x800xf32, #tpu.memory_space<vmem>>, vector<1x800xf32>
    %60 = vector.broadcast %59 : vector<1x800xf32> to vector<20x800xf32>
    %61 = arith.addf %58, %60 : vector<20x800xf32>
    %cst_66 = arith.constant 0.000000e+00 : f32
    %62 = vector.broadcast %cst_66 : f32 to vector<20x800xf32>
    %63 = arith.maximumf %61, %62 : vector<20x800xf32>
    %c0_67 = arith.constant 0 : index
    %c0_68 = arith.constant 0 : index
    %64 = vector.load %arg6[%c0_67, %c0_68] : memref<800x200xf32, #tpu.memory_space<vmem>>, vector<800x200xf32>
    %cst_69 = arith.constant dense<0.000000e+00> : vector<20x200xf32>
    %65 = tpu.matmul %63, %64, %cst_69 {dimension_numbers = #tpu.dot_dimension_numbers<[1], [0], [0], [1], [0, 0, 1, 1], [], []>} : vector<20x800xf32>, vector<800x200xf32>, vector<20x200xf32> -> vector<20x200xf32>
    %c0_70 = arith.constant 0 : index
    %c0_71 = arith.constant 0 : index
    %66 = vector.load %arg7[%c0_70, %c0_71] : memref<20x200xf32, #tpu.memory_space<vmem>>, vector<20x200xf32>
    %67 = arith.mulf %65, %66 : vector<20x200xf32>
    %cst_72 = arith.constant dense<0.000000e+00> : vector<200xf32>
    %68 = vector.multi_reduction <add>, %67, %cst_72 [0] : vector<20x200xf32> to vector<200xf32>
    %69 = vector.shape_cast %68 : vector<200xf32> to vector<1x200xf32>
    %c0_73 = arith.constant 0 : index
    %c0_74 = arith.constant 0 : index
    %70 = vector.load %arg8[%c0_73, %c0_74] : memref<200x10xf32, #tpu.memory_space<vmem>>, vector<200x10xf32>
    %cst_75 = arith.constant dense<0.000000e+00> : vector<1x10xf32>
    %71 = tpu.matmul %69, %70, %cst_75 {dimension_numbers = #tpu.dot_dimension_numbers<[1], [0], [0], [1], [0, 0, 1, 1], [], []>} : vector<1x200xf32>, vector<200x10xf32>, vector<1x10xf32> -> vector<1x10xf32>
    %c0_76 = arith.constant 0 : index
    %c0_77 = arith.constant 0 : index
    %72 = vector.load %arg9[%c0_76, %c0_77] : memref<1x10xf32, #tpu.memory_space<vmem>>, vector<1x10xf32>
    %73 = arith.addf %71, %72 : vector<1x10xf32>
    %cst_78 = arith.constant dense<0xFF800000> : vector<1xf32>
    %74 = vector.multi_reduction <maximumf>, %73, %cst_78 [1] : vector<1x10xf32> to vector<1xf32>
    %75 = vector.shape_cast %74 : vector<1xf32> to vector<1x1xf32>
    %76 = vector.broadcast %75 : vector<1x1xf32> to vector<1x10xf32>
    %77 = arith.subf %73, %76 : vector<1x10xf32>
    %78 = math.exp %77 : vector<1x10xf32>
    %cst_79 = arith.constant dense<0.000000e+00> : vector<1xf32>
    %79 = vector.multi_reduction <add>, %78, %cst_79 [1] : vector<1x10xf32> to vector<1xf32>
    %80 = vector.shape_cast %79 : vector<1xf32> to vector<1x1xf32>
    %81 = math.log %80 : vector<1x1xf32>
    %82 = vector.broadcast %81 : vector<1x1xf32> to vector<1x10xf32>
    %83 = arith.subf %77, %82 : vector<1x10xf32>
    %c0_80 = arith.constant 0 : index
    %c0_81 = arith.constant 0 : index
    %c0_82 = arith.constant 0 : index
    %84 = vector.load %arg10[%c0_80, %c0_81, %c0_82] : memref<1x1x10xf32, #tpu.memory_space<vmem>>, vector<1x1x10xf32>
    %85 = vector.shape_cast %84 : vector<1x1x10xf32> to vector<1x10xf32>
    %86 = vector.shape_cast %83 : vector<1x10xf32> to vector<1x1x10xf32>
    tpu.vector_store %arg10[%c0_80, %c0_81, %c0_82], %86 {strides = array<i32>} : memref<1x1x10xf32, #tpu.memory_space<vmem>>, vector<1x1x10xf32>,
    return
  }
  func.func @transform_0(%arg0: i32) -> (i32, i32, i32) {
    %c0_i32 = arith.constant 0 : i32
    %c0_i32_0 = arith.constant 0 : i32
    %c0_i32_1 = arith.constant 0 : i32
    return %arg0, %c0_i32, %c0_i32_0 : i32, i32, i32
  }
  func.func @transform_1(%arg0: i32) -> (i32, i32, i32) {
    %c0_i32 = arith.constant 0 : i32
    %c0_i32_0 = arith.constant 0 : i32
    %c0_i32_1 = arith.constant 0 : i32
    %c0_i32_2 = arith.constant 0 : i32
    return %c0_i32, %c0_i32_0, %c0_i32_1 : i32, i32, i32
  }
  func.func @transform_2(%arg0: i32) -> (i32, i32) {
    %c0_i32 = arith.constant 0 : i32
    %c0_i32_0 = arith.constant 0 : i32
    %c0_i32_1 = arith.constant 0 : i32
    return %c0_i32, %c0_i32_0 : i32, i32
  }
  func.func @transform_3(%arg0: i32) -> (i32, i32, i32) {
    %c0_i32 = arith.constant 0 : i32
    %c0_i32_0 = arith.constant 0 : i32
    %c0_i32_1 = arith.constant 0 : i32
    %c0_i32_2 = arith.constant 0 : i32
    return %c0_i32, %c0_i32_0, %c0_i32_1 : i32, i32, i32
  }
  func.func @transform_4(%arg0: i32) -> (i32, i32) {
    %c0_i32 = arith.constant 0 : i32
    %c0_i32_0 = arith.constant 0 : i32
    %c0_i32_1 = arith.constant 0 : i32
    return %c0_i32, %c0_i32_0 : i32, i32
  }
  func.func @transform_5(%arg0: i32) -> (i32, i32) {
    %c0_i32 = arith.constant 0 : i32
    %c0_i32_0 = arith.constant 0 : i32
    %c0_i32_1 = arith.constant 0 : i32
    return %c0_i32, %c0_i32_0 : i32, i32
  }
  func.func @transform_6(%arg0: i32) -> (i32, i32) {
    %c0_i32 = arith.constant 0 : i32
    %c0_i32_0 = arith.constant 0 : i32
    %c0_i32_1 = arith.constant 0 : i32
    return %c0_i32, %c0_i32_0 : i32, i32
  }
  func.func @transform_7(%arg0: i32) -> (i32, i32) {
    %c0_i32 = arith.constant 0 : i32
    %c0_i32_0 = arith.constant 0 : i32
    %c0_i32_1 = arith.constant 0 : i32
    return %c0_i32, %c0_i32_0 : i32, i32
  }
  func.func @transform_8(%arg0: i32) -> (i32, i32) {
    %c0_i32 = arith.constant 0 : i32
    %c0_i32_0 = arith.constant 0 : i32
    %c0_i32_1 = arith.constant 0 : i32
    return %c0_i32, %c0_i32_0 : i32, i32
  }
  func.func @transform_9(%arg0: i32) -> (i32, i32, i32) {
    %c0_i32 = arith.constant 0 : i32
    %c0_i32_0 = arith.constant 0 : i32
    %c0_i32_1 = arith.constant 0 : i32
    return %arg0, %c0_i32, %c0_i32_0 : i32, i32, i32
  }
}

</mosaic_0001>

<bundles_post_ra>
// kernel: net_forward.1
= control target key start
LH: loop header
LB: loop body
LE: loop exit
PB: predicated region body
PF: predicated region fallthrough
CT: control target
= control target key end

     0   :  { %14 = vsyncpa [#allocation4], 0  ;;  %s10676_s0 = inlined_call_operand.vmem [shape: f32[2,28,28], index: 0, kind: input, shape index: {}]   ;;  %s10677_s1 = inlined_call_operand.vmem [shape: f32[5,28,240], index: 1, kind: input, shape index: {}]   ;;  %s10678_s2 = inlined_call_operand.vmem [shape: f32[1,240], index: 2, kind: input, shape index: {}]   ;;  %s10679_s3 = inlined_call_operand.vmem [shape: f32[5,240,800], index: 3, kind: input, shape index: {}]   ;;  %s10680_s4 = inlined_call_operand.vmem [shape: f32[1,800], index: 4, kind: input, shape index: {}]   ;;  %s10681_s5 = inlined_call_operand.vmem [shape: f32[800,200], index: 5, kind: input, shape index: {}]   ;;  %s10682_s6 = inlined_call_operand.vmem [shape: f32[20,200], index: 6, kind: input, shape index: {}]   ;;  %s10683_s7 = inlined_call_operand.vmem [shape: f32[200,10], index: 7, kind: input, shape index: {}]   ;;  %s10684_s8 = inlined_call_operand.vmem [shape: f32[1,10], index: 8, kind: input, shape index: {}]   ;;  %s10685_s9 = inlined_call_operand.hbm [shape: f32[2,1,10], index: 9, kind: output, shape index: {}]  }
   0x1   :  { %16 = vsyncpa [#allocation4 + $0x1], 0  ;;  %s5790_s30 = smov 0   ;;  %s5792_s10 = smov 0  }
   0x2   :  { %s5794_s11 = smov 0   ;;  %s5796_s12 = smov 0  }
   0x3 LB: > { %s5811_s13 = sadd.s32 4294967295, %s5736_s12   ;;  %s4655_s14 = sadd.s32 4294967294, %s5736_s12   ;;  %s5736_s12 = sphi %s5796_s12, %s10691_s12   ;;  %s5732_s11 = sphi %s5794_s11, %s10690_s11   ;;  %s5728_s10 = sphi %s5792_s10, %s10689_s10   ;;  %s5724_s30 = sphi %s5790_s30, %s10688_s30  }
   0x4   : > { %s5815_s15 = sadd.s32 1, %s5736_s12   ;;  %s223_s16 = sadd.s32 1, %s5732_s11 }
   0x5   : > { %s220_s17 = ssub.s32 %s5736_s12, %s5815_s15  ;;  %p233_p0 = scmp.ne.s32.totalorder %s5732_s11, %s5728_s10 }
   0x6   : > { %p221_p1 = scmp.eq.s32.totalorder %s220_s17, 0  ;;  %p234_p2 = scmp.eq.s32.totalorder %s5811_s13, 1 }
   0x7   : > { %p239_p3 = scmp.ne.s32.totalorder %s5728_s10, %s5724_s30  ;;  %p240_p4 = scmp.eq.s32.totalorder %s4655_s14, 1 }
   0x8   : > { %s5826_s18 = scalar_select %p221_p1, %s5732_s11, %s223_s16  }
   0x9   : > { %p5828_p5 = por %p234_p2, %p233_p0  ;;  %p5832_p6 = por %p240_p4, %p239_p3 }
   0xa   : > { %p4658_p7 = scmp.ge.s32.totalorder %s5736_s12, 1  ;;  %p290_p8 = scmp.lt.s32.totalorder %s5736_s12, 3 }
   0xc   : > { %p291_p9 = pnand %p4658_p7, %p290_p8 }
   0xd   : > { %p325_p10 = scmp.lt.s32.totalorder (!%p291_p9), %s5811_s13, 1  ;;  %s323_s29 = sand.u32 (!%p291_p9), 1, %s5728_s10  }
   0xe   : > { %294 = sbr.rel (%p291_p9) target bundleno = 1816 (0x718), region = 56  ;;  %s4588_s24 = scalar_lea.sflag (!%p291_p9), [#allocation4], %s323_s29 }
   0xf   : > { %s5739_s26 = smov (!%p291_p9), [#allocation3]  }
  0x10   : > { %s5680_s27 = sshll.u32 (!%p291_p9), %s5739_s26, 4  ;;  %s5681_s27 = int_to_ptr.vmem [resolvable:$false] %s5680_s27 }
  0x13   : > { %v4668_v0 = vld [vmem:[%s10677_s1 + $0x78] sm:$0xf]  ;;  %vm363_vm0 = vcmask 1043456   ;;  %v4666_v2 = vld [vmem:[%s10677_s1 + $0x68] sm:$0xff]  ;;  %v4667_v3 = vld [vmem:[%s10677_s1 + $0x70] sm:$0xf] }
  0x14   : > { %v340_v1 = vld [vmem:[%s10677_s1 + $0x38] sm:$0xf]  ;;  %4669 = vmatprep.subr.msk.mxu0 %vm363_vm0, %v4668_v0  ;;  %v339_v4 = vld [vmem:[%s10677_s1 + $0x30] sm:$0xf]  ;;  %v338_v5 = vld [vmem:[%s10677_s1 + $0x28] sm:$0xff]  ;;  %s326_s25 = scalar_select %p325_p10, %s5811_s13, 1 }
  0x15   : > { %4674 = vmatprep.subr.msk.mxu1 %vm363_vm0, %v340_v1  ;;  %4670 = vmatpush1.msk.msra.mxu0 %vm363_vm0, %v4667_v3  ;;  %v4665_v6 = vld [vmem:[%s10677_s1 + $0x60] sm:$0xff]  ;;  %v4664_v8 = vld [vmem:[%s10677_s1 + $0x58] sm:$0xff]  ;;  %v4663_v10 = vld [vmem:[%s10677_s1 + $0x50] sm:$0xff]  ;;  %vm353_vm1 = vcmask 228352   ;;  %v5738_v16 = vmov 0.0   ;;  %vm924_vm2 = vcmask 916480  }
  0x16   : > { %4675 = vmatpush1.msk.msra.mxu1 %vm363_vm0, %v339_v4  ;;  %v337_v7 = vld [vmem:[%s10677_s1 + $0x20] sm:$0xff]  ;;  %396 = vmatprep.subr.mxu0 %v4666_v2  ;;  %v336_v9 = vld [vmem:[%s10677_s1 + $0x18] sm:$0xff]  ;;  %v335_v11 = vld [vmem:[%s10677_s1 + $0x10] sm:$0xff]  ;;  %s5625_s14 = sshll.u32 %s326_s25, 5  ;;  %vm1367_vm3 = vcmask 1046528   ;;  %vm2272_vm4 = vcmask 1045504  }
  0x17   : > { %494 = vmatprep.subr.mxu1 %v338_v5  ;;  %397 = vmatpush1.msra.mxu0 %v4665_v6  ;;  %v4662_v12 = vld [vmem:[%s10677_s1 + $0x48] sm:$0xff]  ;;  %v4661_v14 = vld [vmem:[%s10677_s1 + $0x40] sm:$0xff]  ;;  %s5895_s21 = scalar_lea.vmem %s10676_s0, %s5625_s14  ;;  %v4686_v19 = vld [vmem:[%s10677_s1 + $0xb8] sm:$0xf]  ;;  %vm2861_vm5 = vcmask 1044480   ;;  %vm4098_vm6 = vcmask 261120  }
  0x18   : > { %495 = vmatpush1.msra.mxu1 %v337_v7  ;;  %v334_v13 = vld [vmem:[%s10677_s1 + $0x8] sm:$0xff]  ;;  %398 = vmatprep.subr.mxu0 %v4664_v8  ;;  %v333_v15 = vld [vmem:[%s10677_s1] sm:$0xff]  ;;  %v4685_v20 = vld [vmem:[%s10677_s1 + $0xb0] sm:$0xf]  ;;  %vm4461_vm7 = vcmask 588800   ;;  %vm4465_vm8 = vcmask 584704  }
  0x19   : > { %496 = vmatprep.subr.mxu1 %v336_v9  ;;  %399 = vmatpush1.msra.mxu0 %v4663_v10  ;;  %v341_v17 = vld [vmem:[%s5895_s21 + $0x1] sm:$0xff]  ;;  %v4699_v22 = vld [vmem:[%s10677_s1 + $0xf8] sm:$0xf]  ;;  %v342_v23 = vld [vmem:[%s5895_s21 + $0x9] sm:$0xff]  ;;  %vm4573_vm9 = vcmask 73728   ;;  %s5622_s14 = sshll.u32 %s5811_s13, 4 }
  0x1a   : > { %497 = vmatpush1.msra.mxu1 %v335_v11  ;;  %400 = vmatprep.subr.mxu0 %v4662_v12  ;;  %v330_v18 = vld [vmem:[%s5895_s21] sm:$0xff]  ;;  %v4684_v21 = vld [vmem:[%s10677_s1 + $0xa8] sm:$0xff]  ;;  %v4682_v26 = vld [vmem:[%s10677_s1 + $0x98] sm:$0xff]  ;;  %s4598_s23 = scalar_lea.hbm %s10685_s9, %s5622_s14  ;;  %s5682_s13 = scalar_lea.vmem %s5681_s27, 32 }
  0x1b   : > { %498 = vmatprep.subr.mxu1 %v334_v13  ;;  %401 = vmatpush1.msra.mxu0 %v4661_v14  ;;  %v331_v24 = vld [vmem:[%s5895_s21 + $0x8] sm:$0xff]  ;;  %v4683_v25 = vld [vmem:[%s10677_s1 + $0xa0] sm:$0xff]  ;;  %v4681_v27 = vld [vmem:[%s10677_s1 + $0x90] sm:$0xff] }
  0x1c   : > { %434 = vmatprep.mubr.f32.mxu0 %v5738_v16  ;;  %499 = vmatpush1.msra.mxu1 %v333_v15  ;;  %v4698_v28 = vld [vmem:[%s10677_s1 + $0xf0] sm:$0xf]  ;;  %v4697_v31 = vld [vmem:[%s10677_s1 + $0xe8] sm:$0xff]  ;;  %v4696_v33 = vld [vmem:[%s10677_s1 + $0xe0] sm:$0xff] }
  0x1d   : > { %532 = vmatprep.mubr.f32.mxu1 %v5738_v16  ;;  %4671 = vmatmul.mubr.msk.f32.vlgmr.msra.gmra.mxu0 %vm353_vm1, %v341_v17  ;;  %v343_v29 = vld [vmem:[%s5895_s21 + $0x11] sm:$0xff]  ;;  %v4680_v32 = vld [vmem:[%s10677_s1 + $0x88] sm:$0xff]  ;;  %v4679_v34 = vld [vmem:[%s10677_s1 + $0x80] sm:$0xff] }
  0x1e   : > { %4676 = vmatmul.mubr.msk.f32.vlgmr.msra.gmra.mxu1 %vm353_vm1, %v330_v18  ;;  %4687 = vmatprep.subr.msk.mxu0 %vm363_vm0, %v4686_v19  ;;  %v332_v30 = vld [vmem:[%s5895_s21 + $0x10] sm:$0xff]  ;;  %v4695_v35 = vld [vmem:[%s10677_s1 + $0xd8] sm:$0xff]  ;;  %v551_v37 = vld [vmem:[%s5895_s21 + $0x2] sm:$0xff] }
  0x1f   : > { %440 = vmatprep.mubr.f32.mxu0 %v5738_v16  ;;  %4688 = vmatpush1.msk.msra.mxu0 %vm363_vm0, %v4685_v20  ;;  %v4694_v36 = vld [vmem:[%s10677_s1 + $0xd0] sm:$0xff]  ;;  %v4693_v38 = vld [vmem:[%s10677_s1 + $0xc8] sm:$0xff]  ;;  %v4712_v39 = vld [vmem:[%s10677_s1 + $0x138] sm:$0xf] }
  0x20   : > { %538 = vmatprep.mubr.f32.mxu1 %v5738_v16  ;;  %604 = vmatprep.subr.mxu0 %v4684_v21  ;;  %v4692_v40 = vld [vmem:[%s10677_s1 + $0xc0] sm:$0xff]  ;;  %v4711_v41 = vld [vmem:[%s10677_s1 + $0x130] sm:$0xf]  ;;  %v4710_v43 = vld [vmem:[%s10677_s1 + $0x128] sm:$0xff] }
  0x21   : > { %4700 = vmatprep.subr.msk.mxu1 %vm363_vm0, %v4699_v22  ;;  %4672 = vmatmul.mubr.msk.f32.gmra.mxu0 %vm353_vm1, %v342_v23  ;;  %v667_v42 = vld [vmem:[%s5895_s21 + $0x3] sm:$0xff]  ;;  %v668_v46 = vld [vmem:[%s5895_s21 + $0xb] sm:$0xff]  ;;  %v4708_v47 = vld [vmem:[%s10677_s1 + $0x118] sm:$0xff] }
  0x22   : > { %4677 = vmatmul.mubr.msk.f32.gmra.mxu1 %vm353_vm1, %v331_v24  ;;  %605 = vmatpush1.msra.mxu0 %v4683_v25  ;;  %v552_v44 = vld [vmem:[%s5895_s21 + $0xa] sm:$0xff]  ;;  %v4709_v45 = vld [vmem:[%s10677_s1 + $0x120] sm:$0xff]  ;;  %v553_v49 = vld [vmem:[%s5895_s21 + $0x12] sm:$0xff] }
  0x23   : > { %446 = vmatprep.mubr.f32.mxu0 %v5738_v16  ;;  %606 = vmatprep.subr.mxu0 %v4682_v26  ;;  %v4707_v48 = vld [vmem:[%s10677_s1 + $0x110] sm:$0xff]  ;;  %v4706_v50 = vld [vmem:[%s10677_s1 + $0x108] sm:$0xff]  ;;  %v4705_v51 = vld [vmem:[%s10677_s1 + $0x100] sm:$0xff] }
  0x24   : > { %544 = vmatprep.mubr.f32.mxu1 %v5738_v16  ;;  %607 = vmatpush1.msra.mxu0 %v4681_v27  ;;  %v669_v52 = vld [vmem:[%s5895_s21 + $0x13] sm:$0xff]  ;;  %v4824_v53 = vld [vmem:[%s10679_s3 + $0x9e0] sm:$0xff]  ;;  %v4817_v57 = vld [vmem:[%s10679_s3 + $0x9a8] sm:$0xff] }
  0x25   : > { %4701 = vmatpush1.msk.msra.mxu1 %vm363_vm0, %v4698_v28  ;;  %4673 = vmatmul.mubr.msk.f32.gmra.mxu0 %vm353_vm1, %v343_v29  ;;  %v4826_v54 = vld [vmem:[%s10679_s3 + $0x9f0] sm:$0xff]  ;;  %v4823_v55 = vld [vmem:[%s10679_s3 + $0x9d8] sm:$0xff]  ;;  %v783_v56 = vld [vmem:[%s5895_s21 + $0x4] sm:$0xff] }
  0x26   : > { %4678 = vmatmul.mubr.msk.f32.gmra.mxu1 %vm353_vm1, %v332_v30  ;;  %720 = vmatprep.subr.mxu1 %v4697_v31  ;;  %v4825_v58 = vld [vmem:[%s10679_s3 + $0x9e8] sm:$0xff]  ;;  %v4819_v59 = vld [vmem:[%s10679_s3 + $0x9b8] sm:$0xff]  ;;  %v4816_v60 = vld [vmem:[%s10679_s3 + $0x9a0] sm:$0xff] }
  0x27   : > { %608 = vmatprep.subr.mxu0 %v4680_v32  ;;  %721 = vmatpush1.msra.mxu1 %v4696_v33  ;;  %v4818_v61 = vld [vmem:[%s10679_s3 + $0x9b0] sm:$0xff]  ;;  %v4812_v0 = vld [vmem:[%s10679_s3 + $0x980] sm:$0xff]  ;;  %v4809_v1 = vld [vmem:[%s10679_s3 + $0x968] sm:$0xff] }
  0x28   : > { %609 = vmatpush1.msra.mxu0 %v4679_v34  ;;  %722 = vmatprep.subr.mxu1 %v4695_v35  ;;  %v4810_v62 = vld [vmem:[%s10679_s3 + $0x970] sm:$0xff]  ;;  %v4811_v2 = vld [vmem:[%s10679_s3 + $0x978] sm:$0xff]  ;;  %v4805_v4 = vld [vmem:[%s10679_s3 + $0x948] sm:$0xff] }
  0x29   : > { %642 = vmatprep.mubr.f32.mxu0 %v5738_v16  ;;  %723 = vmatpush1.msra.mxu1 %v4694_v36  ;;  %v784_v63 = vld [vmem:[%s5895_s21 + $0xc] sm:$0xff]  ;;  %v4803_v3 = vld [vmem:[%s10679_s3 + $0x938] sm:$0xff]  ;;  %v4796_v7 = vld [vmem:[%s10679_s3 + $0x900] sm:$0xff] }
  0x2a   : > { %4689 = vmatmul.mubr.msk.f32.vlgmr.msra.gmra.mxu0 %vm353_vm1, %v551_v37  ;;  %724 = vmatprep.subr.mxu1 %v4693_v38  ;;  %v4802_v5 = vld [vmem:[%s10679_s3 + $0x930] sm:$0xff]  ;;  %v4804_v8 = vld [vmem:[%s10679_s3 + $0x940] sm:$0xff]  ;;  %v4795_v9 = vld [vmem:[%s10679_s3 + $0x8f8] sm:$0xff] }
  0x2b   : > { %4713 = vmatprep.subr.msk.mxu0 %vm363_vm0, %v4712_v39  ;;  %725 = vmatpush1.msra.mxu1 %v4692_v40  ;;  %v785_v6 = vld [vmem:[%s5895_s21 + $0x14] sm:$0xff]  ;;  %v4789_v11 = vld [vmem:[%s10679_s3 + $0x8c8] sm:$0xff]  ;;  %v4788_v13 = vld [vmem:[%s10679_s3 + $0x8c0] sm:$0xff]  ;;  %s324_s21 = scalar_lea.vmem [#allocation3], %s323_s29 }
  0x2c   : > { %758 = vmatprep.mubr.f32.mxu1 %v5738_v16  ;;  %4714 = vmatpush1.msk.msra.mxu0 %vm363_vm0, %v4711_v41  ;;  %v4798_v10 = vld [vmem:[%s10679_s3 + $0x910] sm:$0xff]  ;;  %v4797_v12 = vld [vmem:[%s10679_s3 + $0x908] sm:$0xff]  ;;  %v4791_v14 = vld [vmem:[%s10679_s3 + $0x8d8] sm:$0xff]  ;;  %s4600_s16 = sshll.u32 %s324_s21, 4  ;;  %s4601_s16 = int_to_ptr.vmem [resolvable:$true] %s4600_s16 }
  0x2d   : > { %4702 = vmatmul.mubr.msk.f32.vlgmr.msra.gmra.mxu1 %vm353_vm1, %v667_v42  ;;  %648 = vmatprep.mubr.f32.mxu0 %v5738_v16  ;;  %v4790_v15 = vld [vmem:[%s10679_s3 + $0x8d0] sm:$0xff]  ;;  %v4784_v18 = vld [vmem:[%s10679_s3 + $0x8a0] sm:$0xff]  ;;  %v4781_v19 = vld [vmem:[%s10679_s3 + $0x888] sm:$0xff]  ;;  %s5676_s25 = scalar_lea.vmem %s4601_s16, 16  ;;  %p5683_p0 = scmp.lt.s32.totalorder %s4601_s16, %s5681_s27 }
  0x2e   : > { %836 = vmatprep.subr.mxu0 %v4710_v43  ;;  %4690 = vmatmul.mubr.msk.f32.gmra.mxu0 %vm353_vm1, %v552_v44  ;;  %v4782_v17 = vld [vmem:[%s10679_s3 + $0x890] sm:$0xff]  ;;  %v4783_v20 = vld [vmem:[%s10679_s3 + $0x898] sm:$0xff]  ;;  %v4777_v22 = vld [vmem:[%s10679_s3 + $0x868] sm:$0xff]  ;;  %p5677_p11 = scmp.ne.s32.totalorder %s4601_s16, %s5676_s25  ;;  %p5684_p1 = scmp.lt.s32.totalorder %s5682_s13, %s5676_s25 }
  0x2f   : > { %764 = vmatprep.mubr.f32.mxu1 %v5738_v16  ;;  %837 = vmatpush1.msra.mxu0 %v4709_v45  ;;  %v4775_v21 = vld [vmem:[%s10679_s3 + $0x858] sm:$0xff]  ;;  %v4774_v23 = vld [vmem:[%s10679_s3 + $0x850] sm:$0xff]  ;;  %v4776_v24 = vld [vmem:[%s10679_s3 + $0x860] sm:$0xff] }
  0x30   : > { %654 = vmatprep.mubr.f32.mxu0 %v5738_v16  ;;  %838 = vmatprep.subr.mxu0 %v4708_v47  ;;  %v4768_v25 = vld [vmem:[%s10679_s3 + $0x820] sm:$0xff]  ;;  %v4770_v26 = vld [vmem:[%s10679_s3 + $0x830] sm:$0xff]  ;;  %v4767_v27 = vld [vmem:[%s10679_s3 + $0x818] sm:$0xff]  ;;  %p5678_p12 = pnand %p5677_p11, %p5828_p5  ;;  %p5685_p2 = por %p5684_p1, %p5683_p0 }
  0x31   : > { %4703 = vmatmul.mubr.msk.f32.gmra.mxu1 %vm353_vm1, %v668_v46  ;;  %839 = vmatpush1.msra.mxu0 %v4707_v48  ;;  %v4769_v28 = vld [vmem:[%s10679_s3 + $0x828] sm:$0xff]  ;;  %v4763_v30 = vld [vmem:[%s10679_s3 + $0x7f8] sm:$0xff]  ;;  %v4760_v31 = vld [vmem:[%s10679_s3 + $0x7e0] sm:$0xff] }
  0x32   : > { %770 = vmatprep.mubr.f32.mxu1 %v5738_v16  ;;  %4691 = vmatmul.mubr.msk.f32.gmra.mxu0 %vm353_vm1, %v553_v49  ;;  %v4761_v29 = vld [vmem:[%s10679_s3 + $0x7e8] sm:$0xff]  ;;  %v4762_v32 = vld [vmem:[%s10679_s3 + $0x7f0] sm:$0xff]  ;;  %v4756_v34 = vld [vmem:[%s10679_s3 + $0x7c0] sm:$0xff]  ;;  %p5679_p13 = pneg %p5678_p12 }
  0x33   : > { %840 = vmatprep.subr.mxu0 %v4706_v50  ;;  %874 = vmatprep.mubr.f32.mxu0 %v5738_v16  ;;  %v4754_v33 = vld [vmem:[%s10679_s3 + $0x7b0] sm:$0xff]  ;;  %v4753_v35 = vld [vmem:[%s10679_s3 + $0x7a8] sm:$0xff]  ;;  %v4755_v36 = vld [vmem:[%s10679_s3 + $0x7b8] sm:$0xff] }
  0x34   : > { %841 = vmatpush1.msra.mxu0 %v4705_v51  ;;  %1387 = vmatprep.subr.mxu1 %v4824_v53  ;;  %v4747_v37 = vld [vmem:[%s10679_s3 + $0x778] sm:$0xff]  ;;  %v4749_v38 = vld [vmem:[%s10679_s3 + $0x788] sm:$0xff]  ;;  %v4746_v39 = vld [vmem:[%s10679_s3 + $0x770] sm:$0xff]  ;;  %p5686_p3 = pnand %p5685_p2, %p5679_p13 }
  0x35   : > { %4704 = vmatmul.mubr.msk.f32.gmra.mxu1 %vm353_vm1, %v669_v52  ;;  %1470 = vmatprep.subr.mxu0 %v4826_v54  ;;  %v4748_v40 = vld [vmem:[%s10679_s3 + $0x780] sm:$0xff]  ;;  %v4742_v42 = vld [vmem:[%s10679_s3 + $0x750] sm:$0xff]  ;;  %v4739_v43 = vld [vmem:[%s10679_s3 + $0x738] sm:$0xff] }
  0x36   : > { %1388 = vmatpush1.msra.mxu1 %v4823_v55  ;;  %4715 = vmatmul.mubr.msk.f32.vlgmr.msra.gmra.mxu0 %vm353_vm1, %v783_v56  ;;  %v4740_v41 = vld [vmem:[%s10679_s3 + $0x740] sm:$0xff]  ;;  %v4741_v44 = vld [vmem:[%s10679_s3 + $0x748] sm:$0xff]  ;;  %v4735_v46 = vld [vmem:[%s10679_s3 + $0x718] sm:$0xff] }
  0x37   : > { %1389 = vmatprep.subr.mxu1 %v4817_v57  ;;  %880 = vmatprep.mubr.f32.mxu0 %v5738_v16  ;;  %v4733_v45 = vld [vmem:[%s10679_s3 + $0x708] sm:$0xff]  ;;  %v4732_v47 = vld [vmem:[%s10679_s3 + $0x700] sm:$0xff]  ;;  %v4734_v48 = vld [vmem:[%s10679_s3 + $0x710] sm:$0xff] }
  0x38   : > { %1471 = vmatpush1.msra.mxu0 %v4825_v58  ;;  %1390 = vmatpush1.msra.mxu1 %v4816_v60  ;;  %v4726_v49 = vld [vmem:[%s10679_s3 + $0x6d0] sm:$0xff]  ;;  %v4728_v50 = vld [vmem:[%s10679_s3 + $0x6e0] sm:$0xff]  ;;  %v4725_v51 = vld [vmem:[%s10679_s3 + $0x6c8] sm:$0xff] }
  0x39   : > { %1472 = vmatprep.subr.mxu0 %v4819_v59  ;;  %1391 = vmatprep.subr.mxu1 %v4810_v62  ;;  %v4727_v52 = vld [vmem:[%s10679_s3 + $0x6d8] sm:$0xff]  ;;  %v4721_v54 = vld [vmem:[%s10679_s3 + $0x6a8] sm:$0xff]  ;;  %v4718_v55 = vld [vmem:[%s10679_s3 + $0x690] sm:$0xff] }
  0x3a   : > { %1473 = vmatpush1.msra.mxu0 %v4818_v61  ;;  %1392 = vmatpush1.msra.mxu1 %v4809_v1  ;;  %v4719_v53 = vld [vmem:[%s10679_s3 + $0x698] sm:$0xff]  ;;  %v4720_v56 = vld [vmem:[%s10679_s3 + $0x6a0] sm:$0xff]  ;;  %v4922_v57 = vld [vmem:[%s10679_s3 + $0xcf0] sm:$0xff] }
  0x3b   : > { %4716 = vmatmul.mubr.msk.f32.gmra.mxu0 %vm353_vm1, %v784_v63  ;;  %1474 = vmatprep.subr.mxu0 %v4812_v0  ;;  %v4924_v58 = vld [vmem:[%s10679_s3 + $0xd00] sm:$0xff]  ;;  %v4921_v59 = vld [vmem:[%s10679_s3 + $0xce8] sm:$0xff]  ;;  %v4923_v60 = vld [vmem:[%s10679_s3 + $0xcf8] sm:$0xff] }
  0x3c   : > { %886 = vmatprep.mubr.f32.mxu0 %v5738_v16  ;;  %1475 = vmatpush1.msra.mxu0 %v4811_v2  ;;  %v4915_v61 = vld [vmem:[%s10679_s3 + $0xcb8] sm:$0xff]  ;;  %v4917_v62 = vld [vmem:[%s10679_s3 + $0xcc8] sm:$0xff]  ;;  %v4914_v63 = vld [vmem:[%s10679_s3 + $0xcb0] sm:$0xff] }
  0x3d   : > { %1393 = vmatprep.subr.mxu1 %v4803_v3  ;;  %1476 = vmatprep.subr.mxu0 %v4805_v4  ;;  %v4916_v0 = vld [vmem:[%s10679_s3 + $0xcc0] sm:$0xff]  ;;  %v4910_v2 = vld [vmem:[%s10679_s3 + $0xc90] sm:$0xff]  ;;  %v4907_v3 = vld [vmem:[%s10679_s3 + $0xc78] sm:$0xff] }
  0x3e   : > { %1394 = vmatpush1.msra.mxu1 %v4802_v5  ;;  %1477 = vmatpush1.msra.mxu0 %v4804_v8  ;;  %v4908_v1 = vld [vmem:[%s10679_s3 + $0xc80] sm:$0xff]  ;;  %v4909_v4 = vld [vmem:[%s10679_s3 + $0xc88] sm:$0xff]  ;;  %v4902_v8 = vld [vmem:[%s10679_s3 + $0xc50] sm:$0xff] }
  0x3f   : > { %4717 = vmatmul.mubr.msk.f32.gmra.mxu0 %vm353_vm1, %v785_v6  ;;  %1395 = vmatprep.subr.mxu1 %v4796_v7  ;;  %v4901_v5 = vld [vmem:[%s10679_s3 + $0xc48] sm:$0xff]  ;;  %v4903_v6 = vld [vmem:[%s10679_s3 + $0xc58] sm:$0xff]  ;;  %v4900_v7 = vld [vmem:[%s10679_s3 + $0xc40] sm:$0xff] }
  0x40   : > { %1396 = vmatpush1.msra.mxu1 %v4795_v9  ;;  %1478 = vmatprep.subr.mxu0 %v4798_v10  ;;  %v4894_v9 = vld [vmem:[%s10679_s3 + $0xc10] sm:$0xff]  ;;  %v4896_v10 = vld [vmem:[%s10679_s3 + $0xc20] sm:$0xff] }
  0x41   : > { %1397 = vmatprep.subr.mxu1 %v4789_v11  ;;  %1479 = vmatpush1.msra.mxu0 %v4797_v12  ;;  %v4893_v11 = vld [vmem:[%s10679_s3 + $0xc08] sm:$0xff]  ;;  %v4895_v12 = vld [vmem:[%s10679_s3 + $0xc18] sm:$0xff] }
  0x42   : > { %1398 = vmatpush1.msra.mxu1 %v4788_v13  ;;  %1480 = vmatprep.subr.mxu0 %v4791_v14  ;;  %v4887_v13 = vld [vmem:[%s10679_s3 + $0xbd8] sm:$0xff]  ;;  %v4889_v14 = vld [vmem:[%s10679_s3 + $0xbe8] sm:$0xff] }
  0x43   : > { %1481 = vmatpush1.msra.mxu0 %v4790_v15  ;;  %1399 = vmatprep.subr.mxu1 %v4782_v17  ;;  %v4886_v15 = vld [vmem:[%s10679_s3 + $0xbd0] sm:$0xff]  ;;  %v4888_v17 = vld [vmem:[%s10679_s3 + $0xbe0] sm:$0xff] }
  0x44   : > { %1482 = vmatprep.subr.mxu0 %v4784_v18  ;;  %1400 = vmatpush1.msra.mxu1 %v4781_v19  ;;  %v4880_v18 = vld [vmem:[%s10679_s3 + $0xba0] sm:$0xff]  ;;  %v4882_v19 = vld [vmem:[%s10679_s3 + $0xbb0] sm:$0xff] }
  0x45   : > { %1483 = vmatpush1.msra.mxu0 %v4783_v20  ;;  %1401 = vmatprep.subr.mxu1 %v4775_v21  ;;  %v4879_v20 = vld [vmem:[%s10679_s3 + $0xb98] sm:$0xff]  ;;  %v4881_v21 = vld [vmem:[%s10679_s3 + $0xba8] sm:$0xff] }
  0x46   : > { %1484 = vmatprep.subr.mxu0 %v4777_v22  ;;  %1402 = vmatpush1.msra.mxu1 %v4774_v23  ;;  %v4873_v22 = vld [vmem:[%s10679_s3 + $0xb68] sm:$0xff]  ;;  %v4875_v23 = vld [vmem:[%s10679_s3 + $0xb78] sm:$0xff] }
  0x47   : > { %1485 = vmatpush1.msra.mxu0 %v4776_v24  ;;  %1403 = vmatprep.subr.mxu1 %v4768_v25  ;;  %v4872_v24 = vld [vmem:[%s10679_s3 + $0xb60] sm:$0xff]  ;;  %v4874_v25 = vld [vmem:[%s10679_s3 + $0xb70] sm:$0xff] }
  0x48   : > { %1486 = vmatprep.subr.mxu0 %v4770_v26  ;;  %1404 = vmatpush1.msra.mxu1 %v4767_v27  ;;  %v4866_v26 = vld [vmem:[%s10679_s3 + $0xb30] sm:$0xff]  ;;  %v4868_v27 = vld [vmem:[%s10679_s3 + $0xb40] sm:$0xff] }
  0x49   : > { %1487 = vmatpush1.msra.mxu0 %v4769_v28  ;;  %1405 = vmatprep.subr.mxu1 %v4761_v29  ;;  %v4865_v28 = vld [vmem:[%s10679_s3 + $0xb28] sm:$0xff]  ;;  %v4867_v29 = vld [vmem:[%s10679_s3 + $0xb38] sm:$0xff] }
  0x4a   : > { %1488 = vmatprep.subr.mxu0 %v4763_v30  ;;  %1406 = vmatpush1.msra.mxu1 %v4760_v31  ;;  %v4859_v30 = vld [vmem:[%s10679_s3 + $0xaf8] sm:$0xff]  ;;  %v4861_v31 = vld [vmem:[%s10679_s3 + $0xb08] sm:$0xff] }
  0x4b   : > { %1489 = vmatpush1.msra.mxu0 %v4762_v32  ;;  %1407 = vmatprep.subr.mxu1 %v4754_v33  ;;  %v4858_v32 = vld [vmem:[%s10679_s3 + $0xaf0] sm:$0xff]  ;;  %v4860_v33 = vld [vmem:[%s10679_s3 + $0xb00] sm:$0xff] }
  0x4c   : > { %1490 = vmatprep.subr.mxu0 %v4756_v34  ;;  %1408 = vmatpush1.msra.mxu1 %v4753_v35  ;;  %v4852_v34 = vld [vmem:[%s10679_s3 + $0xac0] sm:$0xff]  ;;  %v4854_v35 = vld [vmem:[%s10679_s3 + $0xad0] sm:$0xff] }
  0x4d   : > { %1491 = vmatpush1.msra.mxu0 %v4755_v36  ;;  %1409 = vmatprep.subr.mxu1 %v4747_v37  ;;  %v4851_v36 = vld [vmem:[%s10679_s3 + $0xab8] sm:$0xff]  ;;  %v4853_v37 = vld [vmem:[%s10679_s3 + $0xac8] sm:$0xff] }
  0x4e   : > { %1492 = vmatprep.subr.mxu0 %v4749_v38  ;;  %1410 = vmatpush1.msra.mxu1 %v4746_v39  ;;  %v4845_v38 = vld [vmem:[%s10679_s3 + $0xa88] sm:$0xff]  ;;  %v4847_v39 = vld [vmem:[%s10679_s3 + $0xa98] sm:$0xff] }
  0x4f   : > { %1493 = vmatpush1.msra.mxu0 %v4748_v40  ;;  %1411 = vmatprep.subr.mxu1 %v4740_v41  ;;  %v4844_v40 = vld [vmem:[%s10679_s3 + $0xa80] sm:$0xff]  ;;  %v4846_v41 = vld [vmem:[%s10679_s3 + $0xa90] sm:$0xff] }
  0x50   : > { %1494 = vmatprep.subr.mxu0 %v4742_v42  ;;  %1412 = vmatpush1.msra.mxu1 %v4739_v43  ;;  %v4838_v42 = vld [vmem:[%s10679_s3 + $0xa50] sm:$0xff]  ;;  %v4840_v43 = vld [vmem:[%s10679_s3 + $0xa60] sm:$0xff] }
  0x51   : > { %1495 = vmatpush1.msra.mxu0 %v4741_v44  ;;  %1413 = vmatprep.subr.mxu1 %v4733_v45  ;;  %v4837_v44 = vld [vmem:[%s10679_s3 + $0xa48] sm:$0xff]  ;;  %v4839_v45 = vld [vmem:[%s10679_s3 + $0xa58] sm:$0xff] }
  0x52   : > { %1496 = vmatprep.subr.mxu0 %v4735_v46  ;;  %1414 = vmatpush1.msra.mxu1 %v4732_v47  ;;  %v4831_v46 = vld [vmem:[%s10679_s3 + $0xa18] sm:$0xff]  ;;  %v4833_v47 = vld [vmem:[%s10679_s3 + $0xa28] sm:$0xff] }
  0x53   : > { %1497 = vmatpush1.msra.mxu0 %v4734_v48  ;;  %1415 = vmatprep.subr.mxu1 %v4726_v49  ;;  %v4830_v48 = vld [vmem:[%s10679_s3 + $0xa10] sm:$0xff]  ;;  %v4832_v49 = vld [vmem:[%s10679_s3 + $0xa20] sm:$0xff] }
  0x54   : > { %1498 = vmatprep.subr.mxu0 %v4728_v50  ;;  %1416 = vmatpush1.msra.mxu1 %v4725_v51  ;;  %v4828_v50 = vld [vmem:[%s10679_s3 + $0xa00] sm:$0xff] }
  0x55   : > { %1499 = vmatpush1.msra.mxu0 %v4727_v52  ;;  %1417 = vmatprep.subr.mxu1 %v4719_v53 }
  0x56   : > { %1500 = vmatprep.subr.mxu0 %v4721_v54  ;;  %1418 = vmatpush1.msra.mxu1 %v4718_v55 }
  0x57   : > { %1501 = vmatpush1.msra.mxu0 %v4720_v56  ;;  %1423 = vmatprep.subr.mxu1 %v4922_v57 }
  0x58   : > { %1506 = vmatprep.subr.mxu0 %v4924_v58  ;;  %1424 = vmatpush2.msra.mxu1 %v4921_v59 }
  0x59   : > { %1507 = vmatpush2.msra.mxu0 %v4923_v60  ;;  %1425 = vmatprep.subr.mxu1 %v4915_v61 }
  0x5a   : > { %1508 = vmatprep.subr.mxu0 %v4917_v62  ;;  %1426 = vmatpush2.msra.mxu1 %v4914_v63  ;;  %v901_v63 = vlaneseq }
  0x5b   : > { %1509 = vmatpush2.msra.mxu0 %v4916_v0  ;;  %1427 = vmatprep.subr.mxu1 %v4908_v1 }
  0x5c   : > { %1510 = vmatprep.subr.mxu0 %v4910_v2  ;;  %1428 = vmatpush2.msra.mxu1 %v4907_v3  ;;  %v6384_v3 = vshrl.u32 %v901_v63, 7 }
  0x5d   : > { %1511 = vmatpush2.msra.mxu0 %v4909_v4  ;;  %1429 = vmatprep.subr.mxu1 %v4901_v5 }
  0x5e   : > { %1512 = vmatprep.subr.mxu0 %v4903_v6  ;;  %1430 = vmatpush2.msra.mxu1 %v4900_v7 }
  0x5f   : > { %1513 = vmatpush2.msra.mxu0 %v4902_v8  ;;  %1431 = vmatprep.subr.mxu1 %v4894_v9 }
  0x60   : > { %1514 = vmatprep.subr.mxu0 %v4896_v10  ;;  %1432 = vmatpush2.msra.mxu1 %v4893_v11  ;;  %v903_v11 = vsub.s32 0, %v6384_v3 }
  0x61   : > { %1515 = vmatpush2.msra.mxu0 %v4895_v12  ;;  %1433 = vmatprep.subr.mxu1 %v4887_v13  ;;  %v899_v13 = vld [vmem:[%s10678_s2] sm:$0x3] }
  0x62   : > { %1516 = vmatprep.subr.mxu0 %v4889_v14  ;;  %1434 = vmatpush2.msra.mxu1 %v4886_v15 }
  0x63   : > { %1517 = vmatpush2.msra.mxu0 %v4888_v17  ;;  %1435 = vmatprep.subr.mxu1 %v4880_v18  ;;  %v907_v17 = vsub.s32 1, %v6384_v3 }
  0x64   : > { %1518 = vmatprep.subr.mxu0 %v4882_v19  ;;  %1436 = vmatpush2.msra.mxu1 %v4879_v20 }
  0x65   : > { %1519 = vmatpush2.msra.mxu0 %v4881_v21  ;;  %1437 = vmatprep.subr.mxu1 %v4873_v22 }
  0x66   : > { %1520 = vmatprep.subr.mxu0 %v4875_v23  ;;  %1438 = vmatpush2.msra.mxu1 %v4872_v24  ;;  %v904_v23 = vrot.slane %v899_v13, %v903_v11 }
  0x67   : > { %1521 = vmatpush2.msra.mxu0 %v4874_v25  ;;  %1439 = vmatprep.subr.mxu1 %v4866_v26 }
  0x68   : > { %1522 = vmatprep.subr.mxu0 %v4868_v27  ;;  %1440 = vmatpush2.msra.mxu1 %v4865_v28 }
  0x69   : > { %1523 = vmatpush2.msra.mxu0 %v4867_v29  ;;  %1441 = vmatprep.subr.mxu1 %v4859_v30  ;;  %v908_v29 = vrot.slane %v899_v13, %v907_v17  ;;  %v4820_v13 = vld [vmem:[%s10679_s3 + $0x9c0] sm:$0xff] }
  0x6a   : > { %1524 = vmatprep.subr.mxu0 %v4861_v31  ;;  %1442 = vmatpush2.msra.mxu1 %v4858_v32 }
  0x6b   : > { %1525 = vmatpush2.msra.mxu0 %v4860_v33  ;;  %1443 = vmatprep.subr.mxu1 %v4852_v34 }
  0x6c   : > { %1526 = vmatprep.subr.mxu0 %v4854_v35  ;;  %1444 = vmatpush2.msra.mxu1 %v4851_v36 }
  0x6d   : > { %1527 = vmatpush2.msra.mxu0 %v4853_v37  ;;  %1445 = vmatprep.subr.mxu1 %v4845_v38 }
  0x6e   : > { %1528 = vmatprep.subr.mxu0 %v4847_v39  ;;  %1446 = vmatpush2.msra.mxu1 %v4844_v40 }
  0x6f   : > { %1529 = vmatpush2.msra.mxu0 %v4846_v41  ;;  %1447 = vmatprep.subr.mxu1 %v4838_v42 }
  0x70   : > { %1530 = vmatprep.subr.mxu0 %v4840_v43  ;;  %1448 = vmatpush2.msra.mxu1 %v4837_v44 }
  0x71   : > { %1531 = vmatpush2.msra.mxu0 %v4839_v45  ;;  %1449 = vmatprep.subr.mxu1 %v4831_v46 }
  0x72   : > { %1532 = vmatprep.subr.mxu0 %v4833_v47  ;;  %1450 = vmatpush2.msra.mxu1 %v4830_v48 }
  0x73   : > { %1533 = vmatpush2.msra.mxu0 %v4832_v49  ;;  %1553 = vmatprep.subr.mxu1 %v4828_v50 }
  0x74   : > { %1636 = vmatprep.subr.mxu0 %v5738_v16 }
  0xdd   : > { %v436_v51 = vpop.f32.mrf.mxu0 }
  0xde   : > { %v534_v52 = vpop.f32.mrf.mxu1 }
  0xdf   : > { %v438_v53 = vpop.f32.mrf.mxu0  ;;  %v535_v6 = vadd.f32 %v534_v52, %v436_v51 }
  0xe0   : > { %v536_v54 = vpop.f32.mrf.mxu1 }
  0xe1   : > { %v442_v55 = vpop.f32.mrf.mxu0  ;;  %v537_v9 = vadd.f32 %v536_v54, %v438_v53 }
  0xe2   : > { %v540_v56 = vpop.f32.mrf.mxu1 }
  0xe3   : > { %v444_v57 = vpop.f32.mrf.mxu0  ;;  %v541_v14 = vadd.f32 %v540_v56, %v442_v55 }
  0xe4   : > { %v542_v58 = vpop.f32.mrf.mxu1 }
  0xe5   : > { %v448_v59 = vpop.f32.mrf.mxu0  ;;  %v543_v18 = vadd.f32 %v542_v58, %v444_v57 }
  0xe6   : > { %v546_v60 = vpop.f32.mrf.mxu1 }
  0xe7   : > { %v450_v61 = vpop.f32.mrf.mxu0  ;;  %v547_v26 = vadd.f32 %v546_v60, %v448_v59 }
  0xe8   : > { %v548_v0 = vpop.f32.mrf.mxu1 }
  0xe9   : > { %v549_v30 = vadd.f32 %v548_v0, %v450_v61 }
  0xea   : > { %v644_v62 = vpop.f32.mrf.mxu0 }
  0xeb   : > { %v661_v10 = vadd.f32 %v644_v62, %v535_v6  ;;  %v4827_v6 = vld [vmem:[%s10679_s3 + $0x9f8] sm:$0xff] }
  0xec   : > { %v646_v1 = vpop.f32.mrf.mxu0 }
  0xed   : > { %v760_v2 = vpop.f32.mrf.mxu1  ;;  %v662_v15 = vadd.f32 %v646_v1, %v537_v9 }
  0xee   : > { %v650_v4 = vpop.f32.mrf.mxu0  ;;  %v777_v21 = vadd.f32 %v760_v2, %v661_v10  ;;  %v4821_v10 = vld [vmem:[%s10679_s3 + $0x9c8] sm:$0xff] }
  0xef   : > { %v762_v5 = vpop.f32.mrf.mxu1  ;;  %v663_v22 = vadd.f32 %v650_v4, %v541_v14  ;;  %v4822_v14 = vld [vmem:[%s10679_s3 + $0x9d0] sm:$0xff] }
  0xf0   : > { %v652_v7 = vpop.f32.mrf.mxu0  ;;  %v778_v27 = vadd.f32 %v762_v5, %v662_v15 }
  0xf1   : > { %v766_v8 = vpop.f32.mrf.mxu1  ;;  %v664_v24 = vadd.f32 %v652_v7, %v543_v18  ;;  %v4829_v7 = vld [vmem:[%s10679_s3 + $0xa08] sm:$0xff] }
  0xf2   : > { %v656_v12 = vpop.f32.mrf.mxu0  ;;  %v779_v33 = vadd.f32 %v766_v8, %v663_v22  ;;  %v4815_v22 = vld [vmem:[%s10679_s3 + $0x998] sm:$0xff] }
  0xf3   : > { %v768_v19 = vpop.f32.mrf.mxu1  ;;  %v665_v34 = vadd.f32 %v656_v12, %v547_v26  ;;  %v4808_v26 = vld [vmem:[%s10679_s3 + $0x960] sm:$0xff] }
  0xf4   : > { %v658_v20 = vpop.f32.mrf.mxu0  ;;  %v780_v37 = vadd.f32 %v768_v19, %v664_v24  ;;  %v4807_v24 = vld [vmem:[%s10679_s3 + $0x958] sm:$0xff] }
  0xf5   : > { %v772_v31 = vpop.f32.mrf.mxu1  ;;  %v666_v39 = vadd.f32 %v658_v20, %v549_v30  ;;  %v4814_v20 = vld [vmem:[%s10679_s3 + $0x990] sm:$0xff]  ;;  %v4793_v30 = vld [vmem:[%s10679_s3 + $0x8e8] sm:$0xff] }
  0xf6   : > { %v876_v25 = vpop.f32.mrf.mxu0  ;;  %v781_v45 = vadd.f32 %v772_v31, %v665_v34  ;;  %v4792_v31 = vld [vmem:[%s10679_s3 + $0x8e0] sm:$0xff]  ;;  %v4785_v34 = vld [vmem:[%s10679_s3 + $0x8a8] sm:$0xff] }
  0xf7   : > { %v893_v28 = vadd.f32 %v876_v25, %v777_v21  ;;  %v774_v43 = vpop.f32.mrf.mxu1  ;;  %v4813_v21 = vld [vmem:[%s10679_s3 + $0x988] sm:$0xff]  ;;  %v4806_v25 = vld [vmem:[%s10679_s3 + $0x950] sm:$0xff] }
  0xf8   : > { %v878_v32 = vpop.f32.mrf.mxu0  ;;  %v782_v50 = vadd.f32 %v774_v43, %v666_v39  ;;  %v4772_v39 = vld [vmem:[%s10679_s3 + $0x840] sm:$0xff] }
  0xf9   : > { %v911_v35 = vadd.f32 %v904_v23, %v893_v28  ;;  %v894_v36 = vadd.f32 %v878_v32, %v778_v27  ;;  %v4800_v27 = vld [vmem:[%s10679_s3 + $0x920] sm:$0xff]  ;;  %v4799_v28 = vld [vmem:[%s10679_s3 + $0x918] sm:$0xff]  ;;  %v4794_v32 = vld [vmem:[%s10679_s3 + $0x8f0] sm:$0xff] }
  0xfa   : > { %v4764_v43 = vld [vmem:[%s10679_s3 + $0x800] sm:$0xff] }
  0xfb   : > { %v882_v38 = vpop.f32.mrf.mxu0  ;;  %v917_v40 = vmax.f32 %v911_v35, 0.0  ;;  %v912_v41 = vadd.f32 %v908_v29, %v894_v36  ;;  %v4787_v35 = vld [vmem:[%s10679_s3 + $0x8b8] sm:$0xff] }
  0xfc   : > { %v895_v42 = vadd.f32 %v882_v38, %v779_v33  ;;  %v4786_v33 = vld [vmem:[%s10679_s3 + $0x8b0] sm:$0xff]  ;;  %v4779_v36 = vld [vmem:[%s10679_s3 + $0x878] sm:$0xff]  ;;  %v4780_v38 = vld [vmem:[%s10679_s3 + $0x880] sm:$0xff] }
  0xfd   : > { %v884_v44 = vpop.f32.mrf.mxu0  ;;  %923 = vst [vmem:[#allocation2] sm:$0xff] %v917_v40  ;;  %v918_v46 = vmax.f32 %v912_v41, 0.0  ;;  %v4771_v40 = vld [vmem:[%s10679_s3 + $0x838] sm:$0xff]  ;;  %v4773_v41 = vld [vmem:[%s10679_s3 + $0x848] sm:$0xff] }
  0xfe   : > { %v913_v47 = vadd.f32 %v904_v23, %v895_v42  ;;  %v896_v48 = vadd.f32 %v884_v44, %v780_v37  ;;  %v4778_v37 = vld [vmem:[%s10679_s3 + $0x870] sm:$0xff]  ;;  %v4765_v42 = vld [vmem:[%s10679_s3 + $0x808] sm:$0xff] }
  0xff   : > { %v888_v49 = vpop.f32.mrf.mxu0  ;;  %925 = vst.msk [vmem:[#allocation2 + $0x8] sm:$0xff] %vm924_vm2, %v918_v46  ;;  %v4766_v44 = vld [vmem:[%s10679_s3 + $0x810] sm:$0xff]  ;;  %v4757_v46 = vld [vmem:[%s10679_s3 + $0x7c8] sm:$0xff] }
 0x100   : > { %v919_v51 = vmax.f32 %v913_v47, 0.0  ;;  %v914_v52 = vadd.f32 %v908_v29, %v896_v48  ;;  %v897_v53 = vadd.f32 %v888_v49, %v781_v45  ;;  %v4758_v45 = vld [vmem:[%s10679_s3 + $0x7d0] sm:$0xff]  ;;  %v4759_v47 = vld [vmem:[%s10679_s3 + $0x7d8] sm:$0xff] }
 0x101   : > { %v890_v54 = vpop.f32.mrf.mxu0  ;;  %v4751_v48 = vld [vmem:[%s10679_s3 + $0x798] sm:$0xff]  ;;  %v4750_v49 = vld [vmem:[%s10679_s3 + $0x790] sm:$0xff] }
 0x102   : > { %926 = vst [vmem:[#allocation2 + $0x10] sm:$0xff] %v919_v51  ;;  %v920_v55 = vmax.f32 %v914_v52, 0.0  ;;  %v915_v56 = vadd.f32 %v904_v23, %v897_v53  ;;  %v898_v57 = vadd.f32 %v890_v54, %v782_v50  ;;  %v1369_v4 = vrot.slane %v919_v51, 1  ;;  %v4752_v50 = vld [vmem:[%s10679_s3 + $0x7a0] sm:$0xff]  ;;  %v4743_v52 = vld [vmem:[%s10679_s3 + $0x758] sm:$0xff]  ;;  %v4745_v53 = vld [vmem:[%s10679_s3 + $0x768] sm:$0xff] }
 0x103   : > { %v4744_v51 = vld [vmem:[%s10679_s3 + $0x760] sm:$0xff]  ;;  %v4737_v54 = vld [vmem:[%s10679_s3 + $0x728] sm:$0xff] }
 0x104   : > { %927 = vst.msk [vmem:[#allocation2 + $0x18] sm:$0xff] %vm924_vm2, %v920_v55  ;;  %v921_v58 = vmax.f32 %v915_v56, 0.0  ;;  %v916_v59 = vadd.f32 %v908_v29, %v898_v57  ;;  %v1146_v61 = vld [vmem:[#allocation2] sm:$0xfe]  ;;  %v4801_v29 = vld [vmem:[%s10679_s3 + $0x928] sm:$0xff]  ;;  %v4738_v56 = vld [vmem:[%s10679_s3 + $0x730] sm:$0xff] }
 0x105   : > { %v1368_v0 = vrot.slane %v1146_v61, 1  ;;  %v4736_v55 = vld [vmem:[%s10679_s3 + $0x720] sm:$0xff]  ;;  %v4730_v57 = vld [vmem:[%s10679_s3 + $0x6f0] sm:$0xff] }
 0x106   : > { %928 = vst [vmem:[#allocation2 + $0x20] sm:$0xff] %v921_v58  ;;  %v922_v60 = vmax.f32 %v916_v59, 0.0  ;;  %v1147_v62 = vld [vmem:[#allocation2 + $0x8] sm:$0xfe]  ;;  %v4731_v59 = vld [vmem:[%s10679_s3 + $0x6f8] sm:$0xff]  ;;  %v4722_v61 = vld [vmem:[%s10679_s3 + $0x6b0] sm:$0xff] }
 0x107   : > { %v1371_v1 = vrot.slane %v1147_v62, 1  ;;  %v6411_v9 = vsel %vm1367_vm3, %v1368_v0, %v1369_v4  ;;  %v4729_v58 = vld [vmem:[%s10679_s3 + $0x6e8] sm:$0xff]  ;;  %v4724_v62 = vld [vmem:[%s10679_s3 + $0x6c0] sm:$0xff]  ;;  %v4926_v0 = vld [vmem:[%s10679_s3 + $0xd10] sm:$0xff] }
 0x108   : > { %929 = vst.msk [vmem:[#allocation2 + $0x28] sm:$0xff] %vm924_vm2, %v922_v60  ;;  %v4723_v60 = vld [vmem:[%s10679_s3 + $0x6b8] sm:$0xff] }
 0x10b   : > { %v6398_v63 = vld [vmem:[#allocation2 + $0x18] sm:$0xff] }
 0x10c   : > { %v1372_v2 = vrot.slane %v6398_v63, 1 }
 0x10d   : > { %v1148_v8 = vld [vmem:[#allocation2 + $0x20] sm:$0x1f] }
 0x10e   : > { %v1373_v5 = vsel %vm1367_vm3, %v1371_v1, %v1372_v2  ;;  %v6426_v18 = vrot.slane %v1148_v8, 1  ;;  %v4925_v1 = vld [vmem:[%s10679_s3 + $0xd08] sm:$0xff]  ;;  %v4911_v8 = vld [vmem:[%s10679_s3 + $0xc98] sm:$0xff] }
 0x10f   : > { %4928 = vmatprep.mubr.msk.f32.mxu1 %vm924_vm2, %v1373_v5  ;;  %4931 = vmatprep.mubr.msk.f32.mxu0 %vm924_vm2, %v1373_v5  ;;  %v1149_v12 = vld [vmem:[#allocation2 + $0x28] sm:$0x1f] }
 0x110   : > { %1452 = vmatmul.mubr.f32.vlgmr.msra.gmra.mxu1 %v6411_v9  ;;  %1535 = vmatmul.mubr.f32.vlgmr.msra.gmra.mxu0 %v6411_v9  ;;  %v6424_v15 = vrot.slane %v1149_v12, 1  ;;  %v6449_v23 = vsel %vm1367_vm3, %v1369_v4, %v6426_v18  ;;  %v4919_v4 = vld [vmem:[%s10679_s3 + $0xcd8] sm:$0xff]  ;;  %v4905_v12 = vld [vmem:[%s10679_s3 + $0xc68] sm:$0xff] }
 0x111   : > { %1554 = vmatpush1.msra.mxu1 %v4827_v6  ;;  %1637 = vmatpush1.msra.mxu0 %v4829_v7  ;;  %v4920_v6 = vld [vmem:[%s10679_s3 + $0xce0] sm:$0xff] }
 0x112   : > { %1555 = vmatprep.subr.mxu1 %v4821_v10  ;;  %1638 = vmatprep.subr.mxu0 %v5738_v16  ;;  %v6431_v19 = vsel %vm1367_vm3, %v1372_v2, %v6424_v15  ;;  %v4927_v2 = vld [vmem:[%s10679_s3 + $0xd18] sm:$0xff]  ;;  %v4912_v7 = vld [vmem:[%s10679_s3 + $0xca0] sm:$0xff]  ;;  %v4913_v10 = vld [vmem:[%s10679_s3 + $0xca8] sm:$0xff] }
 0x113   : > { %1556 = vmatpush1.msra.mxu1 %v4820_v13  ;;  %1639 = vmatpush1.msra.mxu0 %v4822_v14  ;;  %v4904_v13 = vld [vmem:[%s10679_s3 + $0xc60] sm:$0xff]  ;;  %v4906_v14 = vld [vmem:[%s10679_s3 + $0xc70] sm:$0xff] }
 0x114   : > { %4929 = vmatprep.mubr.msk.f32.mxu1 %vm924_vm2, %v6431_v19  ;;  %4932 = vmatprep.mubr.msk.f32.mxu0 %vm924_vm2, %v6431_v19 }
 0x115   : > { %1557 = vmatprep.subr.mxu1 %v4814_v20  ;;  %1640 = vmatprep.subr.mxu0 %v5738_v16  ;;  %v4898_v20 = vld [vmem:[%s10679_s3 + $0xc30] sm:$0xff] }
 0x116   : > { %1458 = vmatmul.mubr.f32.gmra.mxu1 %v6449_v23  ;;  %1541 = vmatmul.mubr.f32.gmra.mxu0 %v6449_v23 }
 0x117   : > { %1558 = vmatpush1.msra.mxu1 %v4813_v21  ;;  %1641 = vmatpush1.msra.mxu0 %v4815_v22  ;;  %v4897_v21 = vld [vmem:[%s10679_s3 + $0xc28] sm:$0xff]  ;;  %v4899_v22 = vld [vmem:[%s10679_s3 + $0xc38] sm:$0xff] }
 0x118   : > { %4930 = vmatprep.mubr.msk.f32.mxu1 %vm924_vm2, %v6424_v15  ;;  %4933 = vmatprep.mubr.msk.f32.mxu0 %vm924_vm2, %v6424_v15 }
 0x119   : > { %1559 = vmatprep.subr.mxu1 %v4807_v24  ;;  %1642 = vmatprep.subr.mxu0 %v5738_v16  ;;  %v4891_v24 = vld [vmem:[%s10679_s3 + $0xbf8] sm:$0xff] }
 0x11a   : > { %1560 = vmatpush1.msra.mxu1 %v4806_v25  ;;  %1643 = vmatpush1.msra.mxu0 %v4808_v26  ;;  %v4890_v25 = vld [vmem:[%s10679_s3 + $0xbf0] sm:$0xff]  ;;  %v4892_v26 = vld [vmem:[%s10679_s3 + $0xc00] sm:$0xff] }
 0x11b   : > { %1561 = vmatprep.subr.mxu1 %v4800_v27  ;;  %1644 = vmatprep.subr.mxu0 %v5738_v16  ;;  %v4884_v27 = vld [vmem:[%s10679_s3 + $0xbc0] sm:$0xff] }
 0x11c   : > { %1464 = vmatmul.mubr.f32.gmra.mxu1 %v6426_v18  ;;  %1547 = vmatmul.mubr.f32.gmra.mxu0 %v6426_v18 }
 0x11d   : > { %1562 = vmatpush1.msra.mxu1 %v4799_v28  ;;  %1645 = vmatpush1.msra.mxu0 %v4801_v29  ;;  %v4883_v28 = vld [vmem:[%s10679_s3 + $0xbb8] sm:$0xff]  ;;  %v4885_v29 = vld [vmem:[%s10679_s3 + $0xbc8] sm:$0xff] }
 0x11e   : > { %1563 = vmatprep.subr.mxu1 %v4793_v30  ;;  %4934 = vmatprep.mubr.msk.f32.mxu1 %vm924_vm2, %v1373_v5  ;;  %v4877_v30 = vld [vmem:[%s10679_s3 + $0xb88] sm:$0xff] }
 0x11f   : > { %1646 = vmatprep.subr.mxu0 %v5738_v16  ;;  %4937 = vmatprep.mubr.msk.f32.mxu0 %vm924_vm2, %v1373_v5  ;;  %v4918_v5 = vld [vmem:[%s10679_s3 + $0xcd0] sm:$0xff] }
 0x120   : > { %1564 = vmatpush1.msra.mxu1 %v4792_v31  ;;  %1647 = vmatpush1.msra.mxu0 %v4794_v32  ;;  %v4876_v31 = vld [vmem:[%s10679_s3 + $0xb80] sm:$0xff]  ;;  %v4878_v32 = vld [vmem:[%s10679_s3 + $0xb90] sm:$0xff] }
 0x121   : > { %1565 = vmatprep.subr.mxu1 %v4786_v33  ;;  %1648 = vmatprep.subr.mxu0 %v5738_v16  ;;  %v4870_v33 = vld [vmem:[%s10679_s3 + $0xb50] sm:$0xff] }
 0x122   : > { %1566 = vmatpush1.msra.mxu1 %v4785_v34  ;;  %1649 = vmatpush1.msra.mxu0 %v4787_v35  ;;  %v4869_v34 = vld [vmem:[%s10679_s3 + $0xb48] sm:$0xff]  ;;  %v4871_v35 = vld [vmem:[%s10679_s3 + $0xb58] sm:$0xff] }
 0x123   : > { %1567 = vmatprep.subr.mxu1 %v4779_v36  ;;  %1650 = vmatprep.subr.mxu0 %v5738_v16  ;;  %v4863_v36 = vld [vmem:[%s10679_s3 + $0xb18] sm:$0xff] }
 0x124   : > { %1568 = vmatpush1.msra.mxu1 %v4778_v37  ;;  %1651 = vmatpush1.msra.mxu0 %v4780_v38  ;;  %v4862_v37 = vld [vmem:[%s10679_s3 + $0xb10] sm:$0xff]  ;;  %v4864_v38 = vld [vmem:[%s10679_s3 + $0xb20] sm:$0xff] }
 0x125   : > { %1569 = vmatprep.subr.mxu1 %v4772_v39  ;;  %1652 = vmatprep.subr.mxu0 %v5738_v16  ;;  %v4856_v39 = vld [vmem:[%s10679_s3 + $0xae0] sm:$0xff] }
 0x126   : > { %1570 = vmatpush1.msra.mxu1 %v4771_v40  ;;  %1653 = vmatpush1.msra.mxu0 %v4773_v41  ;;  %v4855_v40 = vld [vmem:[%s10679_s3 + $0xad8] sm:$0xff]  ;;  %v4857_v41 = vld [vmem:[%s10679_s3 + $0xae8] sm:$0xff] }
 0x127   : > { %1571 = vmatprep.subr.mxu1 %v4765_v42  ;;  %1654 = vmatprep.subr.mxu0 %v5738_v16  ;;  %v4849_v42 = vld [vmem:[%s10679_s3 + $0xaa8] sm:$0xff] }
 0x128   : > { %1572 = vmatpush1.msra.mxu1 %v4764_v43  ;;  %1655 = vmatpush1.msra.mxu0 %v4766_v44  ;;  %v4848_v43 = vld [vmem:[%s10679_s3 + $0xaa0] sm:$0xff]  ;;  %v4850_v44 = vld [vmem:[%s10679_s3 + $0xab0] sm:$0xff] }
 0x129   : > { %1573 = vmatprep.subr.mxu1 %v4758_v45  ;;  %1656 = vmatprep.subr.mxu0 %v5738_v16  ;;  %v4842_v45 = vld [vmem:[%s10679_s3 + $0xa70] sm:$0xff] }
 0x12a   : > { %1574 = vmatpush1.msra.mxu1 %v4757_v46  ;;  %1657 = vmatpush1.msra.mxu0 %v4759_v47  ;;  %v4841_v46 = vld [vmem:[%s10679_s3 + $0xa68] sm:$0xff]  ;;  %v4843_v47 = vld [vmem:[%s10679_s3 + $0xa78] sm:$0xff] }
 0x12b   : > { %1575 = vmatprep.subr.mxu1 %v4751_v48  ;;  %1658 = vmatprep.subr.mxu0 %v5738_v16  ;;  %v4835_v48 = vld [vmem:[%s10679_s3 + $0xa38] sm:$0xff] }
 0x12c   : > { %1576 = vmatpush1.msra.mxu1 %v4750_v49  ;;  %1659 = vmatpush1.msra.mxu0 %v4752_v50  ;;  %v4834_v49 = vld [vmem:[%s10679_s3 + $0xa30] sm:$0xff]  ;;  %v4836_v50 = vld [vmem:[%s10679_s3 + $0xa40] sm:$0xff] }
 0x12d   : > { %1577 = vmatprep.subr.mxu1 %v4744_v51  ;;  %1660 = vmatprep.subr.mxu0 %v5738_v16  ;;  %v1042_v51 = vld [vmem:[%s10679_s3 + $0x350] sm:$0xff] }
 0x12e   : > { %1578 = vmatpush1.msra.mxu1 %v4743_v52  ;;  %1661 = vmatpush1.msra.mxu0 %v4745_v53  ;;  %v1044_v52 = vld [vmem:[%s10679_s3 + $0x360] sm:$0xff]  ;;  %v1041_v53 = vld [vmem:[%s10679_s3 + $0x348] sm:$0xff] }
 0x12f   : > { %1579 = vmatprep.subr.mxu1 %v4737_v54  ;;  %1662 = vmatprep.subr.mxu0 %v5738_v16  ;;  %v1043_v54 = vld [vmem:[%s10679_s3 + $0x358] sm:$0xff] }
 0x130   : > { %1580 = vmatpush1.msra.mxu1 %v4736_v55  ;;  %1663 = vmatpush1.msra.mxu0 %v4738_v56  ;;  %v1035_v55 = vld [vmem:[%s10679_s3 + $0x318] sm:$0xff]  ;;  %v1037_v56 = vld [vmem:[%s10679_s3 + $0x328] sm:$0xff] }
 0x131   : > { %1581 = vmatprep.subr.mxu1 %v4730_v57  ;;  %1664 = vmatprep.subr.mxu0 %v5738_v16  ;;  %v1036_v57 = vld [vmem:[%s10679_s3 + $0x320] sm:$0xff] }
 0x132   : > { %1582 = vmatpush1.msra.mxu1 %v4729_v58  ;;  %1665 = vmatpush1.msra.mxu0 %v4731_v59  ;;  %v1028_v58 = vld [vmem:[%s10679_s3 + $0x2e0] sm:$0xff]  ;;  %v1027_v59 = vld [vmem:[%s10679_s3 + $0x2d8] sm:$0xff] }
 0x133   : > { %1583 = vmatprep.subr.mxu1 %v4723_v60  ;;  %1666 = vmatprep.subr.mxu0 %v5738_v16  ;;  %v1029_v60 = vld [vmem:[%s10679_s3 + $0x2e8] sm:$0xff] }
 0x134   : > { %1584 = vmatpush1.msra.mxu1 %v4722_v61  ;;  %1667 = vmatpush1.msra.mxu0 %v4724_v62  ;;  %v1021_v61 = vld [vmem:[%s10679_s3 + $0x2a8] sm:$0xff]  ;;  %v1023_v62 = vld [vmem:[%s10679_s3 + $0x2b8] sm:$0xff] }
 0x135   : > { %1589 = vmatprep.subr.mxu1 %v4926_v0  ;;  %1672 = vmatprep.subr.mxu0 %v5738_v16  ;;  %v1022_v0 = vld [vmem:[%s10679_s3 + $0x2b0] sm:$0xff] }
 0x136   : > { %1590 = vmatpush2.msra.mxu1 %v4925_v1  ;;  %1673 = vmatpush2.msra.mxu0 %v4927_v2  ;;  %v1014_v1 = vld [vmem:[%s10679_s3 + $0x270] sm:$0xff]  ;;  %v1013_v2 = vld [vmem:[%s10679_s3 + $0x268] sm:$0xff] }
 0x137   : > { %1591 = vmatprep.subr.mxu1 %v4919_v4  ;;  %1674 = vmatprep.subr.mxu0 %v5738_v16  ;;  %v1015_v4 = vld [vmem:[%s10679_s3 + $0x278] sm:$0xff] }
 0x138   : > { %1592 = vmatpush2.msra.mxu1 %v4918_v5  ;;  %1675 = vmatpush2.msra.mxu0 %v4920_v6  ;;  %v6805_v5 = vld [vmem:[#allocation2 + $0x8] sm:$0xff]  ;;  %v1007_v6 = vld [vmem:[%s10679_s3 + $0x238] sm:$0xff] }
 0x139   : > { %1593 = vmatprep.subr.mxu1 %v4912_v7  ;;  %1676 = vmatprep.subr.mxu0 %v5738_v16  ;;  %v1009_v7 = vld [vmem:[%s10679_s3 + $0x248] sm:$0xff] }
 0x13a   : > { %1594 = vmatpush2.msra.mxu1 %v4911_v8  ;;  %1677 = vmatpush2.msra.mxu0 %v4913_v10  ;;  %v1008_v8 = vld [vmem:[%s10679_s3 + $0x240] sm:$0xff] }
 0x13b   : > { %1595 = vmatprep.subr.mxu1 %v4905_v12  ;;  %1678 = vmatprep.subr.mxu0 %v5738_v16  ;;  %v1000_v10 = vld [vmem:[%s10679_s3 + $0x200] sm:$0xff]  ;;  %v1002_v12 = vld [vmem:[%s10679_s3 + $0x210] sm:$0xff] }
 0x13c   : > { %1596 = vmatpush2.msra.mxu1 %v4904_v13  ;;  %1679 = vmatpush2.msra.mxu0 %v4906_v14  ;;  %v999_v13 = vld [vmem:[%s10679_s3 + $0x1f8] sm:$0xff]  ;;  %v1001_v14 = vld [vmem:[%s10679_s3 + $0x208] sm:$0xff] }
 0x13d   : > { %1597 = vmatprep.subr.mxu1 %v4898_v20  ;;  %1680 = vmatprep.subr.mxu0 %v5738_v16  ;;  %v993_v20 = vld [vmem:[%s10679_s3 + $0x1c8] sm:$0xff] }
 0x13e   : > { %1598 = vmatpush2.msra.mxu1 %v4897_v21  ;;  %1681 = vmatpush2.msra.mxu0 %v4899_v22  ;;  %v995_v21 = vld [vmem:[%s10679_s3 + $0x1d8] sm:$0xff]  ;;  %v992_v22 = vld [vmem:[%s10679_s3 + $0x1c0] sm:$0xff] }
 0x13f   : > { %1599 = vmatprep.subr.mxu1 %v4891_v24  ;;  %1682 = vmatprep.subr.mxu0 %v5738_v16  ;;  %v994_v24 = vld [vmem:[%s10679_s3 + $0x1d0] sm:$0xff] }
 0x140   : > { %1600 = vmatpush2.msra.mxu1 %v4890_v25  ;;  %1683 = vmatpush2.msra.mxu0 %v4892_v26  ;;  %v986_v25 = vld [vmem:[%s10679_s3 + $0x190] sm:$0xff]  ;;  %v988_v26 = vld [vmem:[%s10679_s3 + $0x1a0] sm:$0xff] }
 0x141   : > { %1601 = vmatprep.subr.mxu1 %v4884_v27  ;;  %1684 = vmatprep.subr.mxu0 %v5738_v16  ;;  %v985_v27 = vld [vmem:[%s10679_s3 + $0x188] sm:$0xff] }
 0x142   : > { %1602 = vmatpush2.msra.mxu1 %v4883_v28  ;;  %1685 = vmatpush2.msra.mxu0 %v4885_v29  ;;  %v987_v28 = vld [vmem:[%s10679_s3 + $0x198] sm:$0xff] }
 0x143   : > { %1603 = vmatprep.subr.mxu1 %v4877_v30  ;;  %1686 = vmatprep.subr.mxu0 %v5738_v16  ;;  %v979_v29 = vld [vmem:[%s10679_s3 + $0x158] sm:$0xff]  ;;  %v981_v30 = vld [vmem:[%s10679_s3 + $0x168] sm:$0xff] }
 0x144   : > { %1604 = vmatpush2.msra.mxu1 %v4876_v31  ;;  %1687 = vmatpush2.msra.mxu0 %v4878_v32  ;;  %v978_v31 = vld [vmem:[%s10679_s3 + $0x150] sm:$0xff]  ;;  %v980_v32 = vld [vmem:[%s10679_s3 + $0x160] sm:$0xff] }
 0x145   : > { %1605 = vmatprep.subr.mxu1 %v4870_v33  ;;  %1688 = vmatprep.subr.mxu0 %v5738_v16  ;;  %v972_v33 = vld [vmem:[%s10679_s3 + $0x120] sm:$0xff] }
 0x146   : > { %1606 = vmatpush2.msra.mxu1 %v4869_v34  ;;  %1689 = vmatpush2.msra.mxu0 %v4871_v35  ;;  %v974_v34 = vld [vmem:[%s10679_s3 + $0x130] sm:$0xff]  ;;  %v971_v35 = vld [vmem:[%s10679_s3 + $0x118] sm:$0xff] }
 0x147   : > { %1607 = vmatprep.subr.mxu1 %v4863_v36  ;;  %1690 = vmatprep.subr.mxu0 %v5738_v16  ;;  %v973_v36 = vld [vmem:[%s10679_s3 + $0x128] sm:$0xff] }
 0x148   : > { %1608 = vmatpush2.msra.mxu1 %v4862_v37  ;;  %1691 = vmatpush2.msra.mxu0 %v4864_v38  ;;  %v965_v37 = vld [vmem:[%s10679_s3 + $0xe8] sm:$0xff]  ;;  %v967_v38 = vld [vmem:[%s10679_s3 + $0xf8] sm:$0xff] }
 0x149   : > { %1609 = vmatprep.subr.mxu1 %v4856_v39  ;;  %1692 = vmatprep.subr.mxu0 %v5738_v16  ;;  %v964_v39 = vld [vmem:[%s10679_s3 + $0xe0] sm:$0xff] }
 0x14a   : > { %1610 = vmatpush2.msra.mxu1 %v4855_v40  ;;  %1693 = vmatpush2.msra.mxu0 %v4857_v41  ;;  %v966_v40 = vld [vmem:[%s10679_s3 + $0xf0] sm:$0xff] }
 0x14b   : > { %1611 = vmatprep.subr.mxu1 %v4849_v42  ;;  %1694 = vmatprep.subr.mxu0 %v5738_v16  ;;  %v958_v41 = vld [vmem:[%s10679_s3 + $0xb0] sm:$0xff]  ;;  %v960_v42 = vld [vmem:[%s10679_s3 + $0xc0] sm:$0xff] }
 0x14c   : > { %1612 = vmatpush2.msra.mxu1 %v4848_v43  ;;  %1695 = vmatpush2.msra.mxu0 %v4850_v44  ;;  %v957_v43 = vld [vmem:[%s10679_s3 + $0xa8] sm:$0xff]  ;;  %v959_v44 = vld [vmem:[%s10679_s3 + $0xb8] sm:$0xff] }
 0x14d   : > { %1613 = vmatprep.subr.mxu1 %v4842_v45  ;;  %1696 = vmatprep.subr.mxu0 %v5738_v16  ;;  %v951_v45 = vld [vmem:[%s10679_s3 + $0x78] sm:$0xff] }
 0x14e   : > { %1614 = vmatpush2.msra.mxu1 %v4841_v46  ;;  %1697 = vmatpush2.msra.mxu0 %v4843_v47  ;;  %v953_v46 = vld [vmem:[%s10679_s3 + $0x88] sm:$0xff]  ;;  %v950_v47 = vld [vmem:[%s10679_s3 + $0x70] sm:$0xff] }
 0x14f   : > { %1615 = vmatprep.subr.mxu1 %v4835_v48  ;;  %1698 = vmatprep.subr.mxu0 %v5738_v16  ;;  %v952_v48 = vld [vmem:[%s10679_s3 + $0x80] sm:$0xff] }
 0x150   : > { %1616 = vmatpush2.msra.mxu1 %v4834_v49  ;;  %1699 = vmatpush2.msra.mxu0 %v4836_v50  ;;  %v944_v49 = vld [vmem:[%s10679_s3 + $0x40] sm:$0xff]  ;;  %v946_v50 = vld [vmem:[%s10679_s3 + $0x50] sm:$0xff] }
 0x151   : > { %1618 = vmatmul.mubr.f32.vlgmr.msra.gmra.mxu1 %v6411_v9  ;;  %1701 = vmatmul.mubr.f32.vlgmr.msra.gmra.mxu0 %v6411_v9  ;;  %v1034_v9 = vld [vmem:[%s10679_s3 + $0x310] sm:$0xff] }
 0x152   : > { %1724 = vmatprep.subr.mxu1 %v1042_v51  ;;  %1807 = vmatprep.subr.mxu0 %v1044_v52  ;;  %v943_v51 = vld [vmem:[%s10679_s3 + $0x38] sm:$0xff]  ;;  %v945_v52 = vld [vmem:[%s10679_s3 + $0x48] sm:$0xff] }
 0x153   : > { %4935 = vmatprep.mubr.msk.f32.mxu1 %vm924_vm2, %v6431_v19  ;;  %4938 = vmatprep.mubr.msk.f32.mxu0 %vm924_vm2, %v6431_v19  ;;  %v1030_v19 = vld [vmem:[%s10679_s3 + $0x2f0] sm:$0xff] }
 0x154   : > { %1725 = vmatpush1.msra.mxu1 %v1041_v53  ;;  %1808 = vmatpush1.msra.mxu0 %v1043_v54  ;;  %v937_v53 = vld [vmem:[%s10679_s3 + $0x8] sm:$0xff]  ;;  %v939_v54 = vld [vmem:[%s10679_s3 + $0x18] sm:$0xff] }
 0x155   : > { %1726 = vmatprep.subr.mxu1 %v1035_v55  ;;  %1809 = vmatprep.subr.mxu0 %v1037_v56  ;;  %v936_v55 = vld [vmem:[%s10679_s3] sm:$0xff]  ;;  %v938_v56 = vld [vmem:[%s10679_s3 + $0x10] sm:$0xff] }
 0x156   : > { %1727 = vmatpush1.msra.mxu1 %v1034_v9  ;;  %1810 = vmatpush1.msra.mxu0 %v1036_v57  ;;  %v1140_v9 = vld [vmem:[%s10679_s3 + $0x660] sm:$0xff]  ;;  %v1142_v57 = vld [vmem:[%s10679_s3 + $0x670] sm:$0xff] }
 0x157   : > { %1624 = vmatmul.mubr.f32.gmra.mxu1 %v6449_v23  ;;  %1706 = vmatmul.mubr.f32.gmra.mxu0 %v6449_v23  ;;  %v1020_v23 = vld [vmem:[%s10679_s3 + $0x2a0] sm:$0xff] }
 0x158   : > { %1728 = vmatprep.subr.mxu1 %v1028_v58  ;;  %1811 = vmatprep.subr.mxu0 %v1030_v19  ;;  %v1139_v58 = vld [vmem:[%s10679_s3 + $0x658] sm:$0xff]  ;;  %v1141_v19 = vld [vmem:[%s10679_s3 + $0x668] sm:$0xff] }
 0x159   : > { %4936 = vmatprep.mubr.msk.f32.mxu1 %vm924_vm2, %v6424_v15  ;;  %4939 = vmatprep.mubr.msk.f32.mxu0 %vm924_vm2, %v6424_v15  ;;  %v1016_v15 = vld [vmem:[%s10679_s3 + $0x280] sm:$0xff] }
 0x15a   : > { %1729 = vmatpush1.msra.mxu1 %v1027_v59  ;;  %1812 = vmatpush1.msra.mxu0 %v1029_v60  ;;  %v1133_v59 = vld [vmem:[%s10679_s3 + $0x628] sm:$0xff]  ;;  %v1135_v60 = vld [vmem:[%s10679_s3 + $0x638] sm:$0xff] }
 0x15b   : > { %1730 = vmatprep.subr.mxu1 %v1021_v61  ;;  %1813 = vmatprep.subr.mxu0 %v1023_v62  ;;  %v1132_v61 = vld [vmem:[%s10679_s3 + $0x620] sm:$0xff]  ;;  %v1134_v62 = vld [vmem:[%s10679_s3 + $0x630] sm:$0xff] }
 0x15c   : > { %1731 = vmatpush1.msra.mxu1 %v1020_v23  ;;  %1814 = vmatpush1.msra.mxu0 %v1022_v0  ;;  %v1126_v23 = vld [vmem:[%s10679_s3 + $0x5f0] sm:$0xff]  ;;  %v1128_v0 = vld [vmem:[%s10679_s3 + $0x600] sm:$0xff] }
 0x15d   : > { %1630 = vmatmul.mubr.f32.gmra.mxu1 %v6426_v18  ;;  %1711 = vmatmul.mubr.f32.gmra.mxu0 %v6426_v18  ;;  %v1006_v18 = vld [vmem:[%s10679_s3 + $0x230] sm:$0xff] }
 0x15e   : > { %1732 = vmatprep.subr.mxu1 %v1014_v1  ;;  %1815 = vmatprep.subr.mxu0 %v1016_v15  ;;  %v1125_v1 = vld [vmem:[%s10679_s3 + $0x5e8] sm:$0xff]  ;;  %v1127_v15 = vld [vmem:[%s10679_s3 + $0x5f8] sm:$0xff] }
 0x15f   : > { %1733 = vmatpush1.msra.mxu1 %v1013_v2  ;;  %4940 = vmatprep.mubr.msk.f32.mxu1 %vm924_vm2, %v6805_v5  ;;  %v1119_v2 = vld [vmem:[%s10679_s3 + $0x5b8] sm:$0xff] }
 0x160   : > { %1816 = vmatpush1.msra.mxu0 %v1015_v4  ;;  %4943 = vmatprep.mubr.msk.f32.mxu0 %vm924_vm2, %v6805_v5  ;;  %v1121_v4 = vld [vmem:[%s10679_s3 + $0x5c8] sm:$0xff] }
 0x161   : > { %1734 = vmatprep.subr.mxu1 %v1007_v6  ;;  %1817 = vmatprep.subr.mxu0 %v1009_v7  ;;  %v1118_v6 = vld [vmem:[%s10679_s3 + $0x5b0] sm:$0xff]  ;;  %v1120_v7 = vld [vmem:[%s10679_s3 + $0x5c0] sm:$0xff] }
 0x162   : > { %1735 = vmatpush1.msra.mxu1 %v1006_v18  ;;  %1818 = vmatpush1.msra.mxu0 %v1008_v8  ;;  %v1112_v18 = vld [vmem:[%s10679_s3 + $0x580] sm:$0xff]  ;;  %v1114_v8 = vld [vmem:[%s10679_s3 + $0x590] sm:$0xff] }
 0x163   : > { %1736 = vmatprep.subr.mxu1 %v1000_v10  ;;  %1819 = vmatprep.subr.mxu0 %v1002_v12  ;;  %v1111_v10 = vld [vmem:[%s10679_s3 + $0x578] sm:$0xff]  ;;  %v1113_v12 = vld [vmem:[%s10679_s3 + $0x588] sm:$0xff] }
 0x164   : > { %1737 = vmatpush1.msra.mxu1 %v999_v13  ;;  %1820 = vmatpush1.msra.mxu0 %v1001_v14  ;;  %v1105_v13 = vld [vmem:[%s10679_s3 + $0x548] sm:$0xff]  ;;  %v1107_v14 = vld [vmem:[%s10679_s3 + $0x558] sm:$0xff] }
 0x165   : > { %1738 = vmatprep.subr.mxu1 %v993_v20  ;;  %1821 = vmatprep.subr.mxu0 %v995_v21  ;;  %v1104_v20 = vld [vmem:[%s10679_s3 + $0x540] sm:$0xff]  ;;  %v1106_v21 = vld [vmem:[%s10679_s3 + $0x550] sm:$0xff] }
 0x166   : > { %1739 = vmatpush1.msra.mxu1 %v992_v22  ;;  %1822 = vmatpush1.msra.mxu0 %v994_v24  ;;  %v1098_v22 = vld [vmem:[%s10679_s3 + $0x510] sm:$0xff]  ;;  %v1100_v24 = vld [vmem:[%s10679_s3 + $0x520] sm:$0xff] }
 0x167   : > { %1740 = vmatprep.subr.mxu1 %v986_v25  ;;  %1823 = vmatprep.subr.mxu0 %v988_v26  ;;  %v1097_v25 = vld [vmem:[%s10679_s3 + $0x508] sm:$0xff]  ;;  %v1099_v26 = vld [vmem:[%s10679_s3 + $0x518] sm:$0xff] }
 0x168   : > { %1741 = vmatpush1.msra.mxu1 %v985_v27  ;;  %1824 = vmatpush1.msra.mxu0 %v987_v28  ;;  %v1091_v27 = vld [vmem:[%s10679_s3 + $0x4d8] sm:$0xff]  ;;  %v1093_v28 = vld [vmem:[%s10679_s3 + $0x4e8] sm:$0xff] }
 0x169   : > { %1742 = vmatprep.subr.mxu1 %v979_v29  ;;  %1825 = vmatprep.subr.mxu0 %v981_v30  ;;  %v1090_v29 = vld [vmem:[%s10679_s3 + $0x4d0] sm:$0xff]  ;;  %v1092_v30 = vld [vmem:[%s10679_s3 + $0x4e0] sm:$0xff] }
 0x16a   : > { %1743 = vmatpush1.msra.mxu1 %v978_v31  ;;  %1826 = vmatpush1.msra.mxu0 %v980_v32  ;;  %v1084_v31 = vld [vmem:[%s10679_s3 + $0x4a0] sm:$0xff]  ;;  %v1086_v32 = vld [vmem:[%s10679_s3 + $0x4b0] sm:$0xff] }
 0x16b   : > { %1744 = vmatprep.subr.mxu1 %v972_v33  ;;  %1827 = vmatprep.subr.mxu0 %v974_v34  ;;  %v1083_v33 = vld [vmem:[%s10679_s3 + $0x498] sm:$0xff]  ;;  %v1085_v34 = vld [vmem:[%s10679_s3 + $0x4a8] sm:$0xff] }
 0x16c   : > { %1745 = vmatpush1.msra.mxu1 %v971_v35  ;;  %1828 = vmatpush1.msra.mxu0 %v973_v36  ;;  %v1077_v35 = vld [vmem:[%s10679_s3 + $0x468] sm:$0xff]  ;;  %v1079_v36 = vld [vmem:[%s10679_s3 + $0x478] sm:$0xff] }
 0x16d   : > { %1746 = vmatprep.subr.mxu1 %v965_v37  ;;  %1829 = vmatprep.subr.mxu0 %v967_v38  ;;  %v1076_v37 = vld [vmem:[%s10679_s3 + $0x460] sm:$0xff]  ;;  %v1078_v38 = vld [vmem:[%s10679_s3 + $0x470] sm:$0xff] }
 0x16e   : > { %1747 = vmatpush1.msra.mxu1 %v964_v39  ;;  %1830 = vmatpush1.msra.mxu0 %v966_v40  ;;  %v1070_v39 = vld [vmem:[%s10679_s3 + $0x430] sm:$0xff]  ;;  %v1072_v40 = vld [vmem:[%s10679_s3 + $0x440] sm:$0xff] }
 0x16f   : > { %1748 = vmatprep.subr.mxu1 %v958_v41  ;;  %1831 = vmatprep.subr.mxu0 %v960_v42  ;;  %v1069_v41 = vld [vmem:[%s10679_s3 + $0x428] sm:$0xff]  ;;  %v1071_v42 = vld [vmem:[%s10679_s3 + $0x438] sm:$0xff] }
 0x170   : > { %1749 = vmatpush1.msra.mxu1 %v957_v43  ;;  %1832 = vmatpush1.msra.mxu0 %v959_v44  ;;  %v1063_v43 = vld [vmem:[%s10679_s3 + $0x3f8] sm:$0xff]  ;;  %v1065_v44 = vld [vmem:[%s10679_s3 + $0x408] sm:$0xff] }
 0x171   : > { %1750 = vmatprep.subr.mxu1 %v951_v45  ;;  %1833 = vmatprep.subr.mxu0 %v953_v46  ;;  %v1062_v45 = vld [vmem:[%s10679_s3 + $0x3f0] sm:$0xff]  ;;  %v1064_v46 = vld [vmem:[%s10679_s3 + $0x400] sm:$0xff] }
 0x172   : > { %1751 = vmatpush1.msra.mxu1 %v950_v47  ;;  %1834 = vmatpush1.msra.mxu0 %v952_v48  ;;  %v1056_v47 = vld [vmem:[%s10679_s3 + $0x3c0] sm:$0xff]  ;;  %v1058_v48 = vld [vmem:[%s10679_s3 + $0x3d0] sm:$0xff] }
 0x173   : > { %1752 = vmatprep.subr.mxu1 %v944_v49  ;;  %1835 = vmatprep.subr.mxu0 %v946_v50  ;;  %v1055_v49 = vld [vmem:[%s10679_s3 + $0x3b8] sm:$0xff]  ;;  %v1057_v50 = vld [vmem:[%s10679_s3 + $0x3c8] sm:$0xff] }
 0x174   : > { %1753 = vmatpush1.msra.mxu1 %v943_v51  ;;  %1836 = vmatpush1.msra.mxu0 %v945_v52  ;;  %v1049_v51 = vld [vmem:[%s10679_s3 + $0x388] sm:$0xff]  ;;  %v1051_v52 = vld [vmem:[%s10679_s3 + $0x398] sm:$0xff] }
 0x175   : > { %1754 = vmatprep.subr.mxu1 %v937_v53  ;;  %1837 = vmatprep.subr.mxu0 %v939_v54  ;;  %v1048_v53 = vld [vmem:[%s10679_s3 + $0x380] sm:$0xff]  ;;  %v1050_v54 = vld [vmem:[%s10679_s3 + $0x390] sm:$0xff] }
 0x176   : > { %1755 = vmatpush1.msra.mxu1 %v936_v55  ;;  %1838 = vmatpush1.msra.mxu0 %v938_v56  ;;  %v1046_v55 = vld [vmem:[%s10679_s3 + $0x370] sm:$0xff]  ;;  %v7114_v56 = vld [vmem:[#allocation2] sm:$0xff] }
 0x177   : > { %1760 = vmatprep.subr.mxu1 %v1140_v9  ;;  %1843 = vmatprep.subr.mxu0 %v1142_v57  ;;  %v1045_v9 = vld [vmem:[%s10679_s3 + $0x368] sm:$0xff]  ;;  %v1047_v57 = vld [vmem:[%s10679_s3 + $0x378] sm:$0xff] }
 0x178   : > { %1761 = vmatpush2.msra.mxu1 %v1139_v58  ;;  %1844 = vmatpush2.msra.mxu0 %v1141_v19  ;;  %v1039_v58 = vld [vmem:[%s10679_s3 + $0x338] sm:$0xff]  ;;  %v1038_v19 = vld [vmem:[%s10679_s3 + $0x330] sm:$0xff] }
 0x179   : > { %1762 = vmatprep.subr.mxu1 %v1133_v59  ;;  %1845 = vmatprep.subr.mxu0 %v1135_v60  ;;  %v1040_v59 = vld [vmem:[%s10679_s3 + $0x340] sm:$0xff] }
 0x17a   : > { %1763 = vmatpush2.msra.mxu1 %v1132_v61  ;;  %1846 = vmatpush2.msra.mxu0 %v1134_v62  ;;  %v1032_v60 = vld [vmem:[%s10679_s3 + $0x300] sm:$0xff]  ;;  %v1031_v61 = vld [vmem:[%s10679_s3 + $0x2f8] sm:$0xff]  ;;  %v1033_v62 = vld [vmem:[%s10679_s3 + $0x308] sm:$0xff] }
 0x17b   : > { %1764 = vmatprep.subr.mxu1 %v1126_v23  ;;  %1847 = vmatprep.subr.mxu0 %v1128_v0  ;;  %v7153_v23 = vld [vmem:[#allocation2 + $0x28] sm:$0xf] }
 0x17c   : > { %1765 = vmatpush2.msra.mxu1 %v1125_v1  ;;  %1848 = vmatpush2.msra.mxu0 %v1127_v15  ;;  %v1025_v0 = vld [vmem:[%s10679_s3 + $0x2c8] sm:$0xff]  ;;  %v1024_v1 = vld [vmem:[%s10679_s3 + $0x2c0] sm:$0xff]  ;;  %v1026_v15 = vld [vmem:[%s10679_s3 + $0x2d0] sm:$0xff] }
 0x17d   : > { %1766 = vmatprep.subr.mxu1 %v1119_v2  ;;  %1849 = vmatprep.subr.mxu0 %v1121_v4  ;;  %v1018_v2 = vld [vmem:[%s10679_s3 + $0x290] sm:$0xff]  ;;  %v7172_v4 = vld [vmem:[#allocation2 + $0x20] sm:$0xf] }
 0x17e   : > { %1767 = vmatpush2.msra.mxu1 %v1118_v6  ;;  %1850 = vmatpush2.msra.mxu0 %v1120_v7  ;;  %v1017_v6 = vld [vmem:[%s10679_s3 + $0x288] sm:$0xff]  ;;  %v1019_v7 = vld [vmem:[%s10679_s3 + $0x298] sm:$0xff] }
 0x17f   : > { %1768 = vmatprep.subr.mxu1 %v1112_v18  ;;  %1851 = vmatprep.subr.mxu0 %v1114_v8  ;;  %v1011_v18 = vld [vmem:[%s10679_s3 + $0x258] sm:$0xff]  ;;  %v1010_v8 = vld [vmem:[%s10679_s3 + $0x250] sm:$0xff] }
 0x180   : > { %1769 = vmatpush2.msra.mxu1 %v1111_v10  ;;  %1852 = vmatpush2.msra.mxu0 %v1113_v12  ;;  %v1012_v10 = vld [vmem:[%s10679_s3 + $0x260] sm:$0xff] }
 0x181   : > { %1770 = vmatprep.subr.mxu1 %v1105_v13  ;;  %1853 = vmatprep.subr.mxu0 %v1107_v14  ;;  %v1004_v12 = vld [vmem:[%s10679_s3 + $0x220] sm:$0xff]  ;;  %v1003_v13 = vld [vmem:[%s10679_s3 + $0x218] sm:$0xff]  ;;  %v1005_v14 = vld [vmem:[%s10679_s3 + $0x228] sm:$0xff] }
 0x182   : > { %1771 = vmatpush2.msra.mxu1 %v1104_v20  ;;  %1854 = vmatpush2.msra.mxu0 %v1106_v21  ;;  %v996_v20 = vld [vmem:[%s10679_s3 + $0x1e0] sm:$0xff]  ;;  %v998_v21 = vld [vmem:[%s10679_s3 + $0x1f0] sm:$0xff] }
 0x183   : > { %1772 = vmatprep.subr.mxu1 %v1098_v22  ;;  %1855 = vmatprep.subr.mxu0 %v1100_v24  ;;  %v990_v22 = vld [vmem:[%s10679_s3 + $0x1b0] sm:$0xff]  ;;  %v989_v24 = vld [vmem:[%s10679_s3 + $0x1a8] sm:$0xff] }
 0x184   : > { %1773 = vmatpush2.msra.mxu1 %v1097_v25  ;;  %1856 = vmatpush2.msra.mxu0 %v1099_v26  ;;  %v991_v25 = vld [vmem:[%s10679_s3 + $0x1b8] sm:$0xff] }
 0x185   : > { %1774 = vmatprep.subr.mxu1 %v1091_v27  ;;  %1857 = vmatprep.subr.mxu0 %v1093_v28  ;;  %v983_v26 = vld [vmem:[%s10679_s3 + $0x178] sm:$0xff]  ;;  %v982_v27 = vld [vmem:[%s10679_s3 + $0x170] sm:$0xff]  ;;  %v984_v28 = vld [vmem:[%s10679_s3 + $0x180] sm:$0xff] }
 0x186   : > { %1775 = vmatpush2.msra.mxu1 %v1090_v29  ;;  %1858 = vmatpush2.msra.mxu0 %v1092_v30  ;;  %v976_v29 = vld [vmem:[%s10679_s3 + $0x140] sm:$0xff]  ;;  %v975_v30 = vld [vmem:[%s10679_s3 + $0x138] sm:$0xff] }
 0x187   : > { %1776 = vmatprep.subr.mxu1 %v1084_v31  ;;  %1859 = vmatprep.subr.mxu0 %v1086_v32  ;;  %v977_v31 = vld [vmem:[%s10679_s3 + $0x148] sm:$0xff] }
 0x188   : > { %1777 = vmatpush2.msra.mxu1 %v1083_v33  ;;  %1860 = vmatpush2.msra.mxu0 %v1085_v34  ;;  %v969_v32 = vld [vmem:[%s10679_s3 + $0x108] sm:$0xff]  ;;  %v968_v33 = vld [vmem:[%s10679_s3 + $0x100] sm:$0xff]  ;;  %v970_v34 = vld [vmem:[%s10679_s3 + $0x110] sm:$0xff] }
 0x189   : > { %1778 = vmatprep.subr.mxu1 %v1077_v35  ;;  %1861 = vmatprep.subr.mxu0 %v1079_v36  ;;  %v962_v35 = vld [vmem:[%s10679_s3 + $0xd0] sm:$0xff]  ;;  %v961_v36 = vld [vmem:[%s10679_s3 + $0xc8] sm:$0xff] }
 0x18a   : > { %1779 = vmatpush2.msra.mxu1 %v1076_v37  ;;  %1862 = vmatpush2.msra.mxu0 %v1078_v38  ;;  %v963_v37 = vld [vmem:[%s10679_s3 + $0xd8] sm:$0xff] }
 0x18b   : > { %1780 = vmatprep.subr.mxu1 %v1070_v39  ;;  %1863 = vmatprep.subr.mxu0 %v1072_v40  ;;  %v955_v38 = vld [vmem:[%s10679_s3 + $0x98] sm:$0xff]  ;;  %v954_v39 = vld [vmem:[%s10679_s3 + $0x90] sm:$0xff]  ;;  %v956_v40 = vld [vmem:[%s10679_s3 + $0xa0] sm:$0xff] }
 0x18c   : > { %1781 = vmatpush2.msra.mxu1 %v1069_v41  ;;  %1864 = vmatpush2.msra.mxu0 %v1071_v42  ;;  %v948_v41 = vld [vmem:[%s10679_s3 + $0x60] sm:$0xff]  ;;  %v947_v42 = vld [vmem:[%s10679_s3 + $0x58] sm:$0xff] }
 0x18d   : > { %1782 = vmatprep.subr.mxu1 %v1063_v43  ;;  %1865 = vmatprep.subr.mxu0 %v1065_v44  ;;  %v949_v43 = vld [vmem:[%s10679_s3 + $0x68] sm:$0xff] }
 0x18e   : > { %1783 = vmatpush2.msra.mxu1 %v1062_v45  ;;  %1866 = vmatpush2.msra.mxu0 %v1064_v46  ;;  %v941_v44 = vld [vmem:[%s10679_s3 + $0x28] sm:$0xff]  ;;  %v940_v45 = vld [vmem:[%s10679_s3 + $0x20] sm:$0xff]  ;;  %v942_v46 = vld [vmem:[%s10679_s3 + $0x30] sm:$0xff] }
 0x18f   : > { %1784 = vmatprep.subr.mxu1 %v1056_v47  ;;  %1867 = vmatprep.subr.mxu0 %v1058_v48  ;;  %v1144_v47 = vld [vmem:[%s10679_s3 + $0x680] sm:$0xff]  ;;  %v1143_v48 = vld [vmem:[%s10679_s3 + $0x678] sm:$0xff] }
 0x190   : > { %1785 = vmatpush2.msra.mxu1 %v1055_v49  ;;  %1868 = vmatpush2.msra.mxu0 %v1057_v50  ;;  %v1145_v49 = vld [vmem:[%s10679_s3 + $0x688] sm:$0xff] }
 0x191   : > { %1786 = vmatprep.subr.mxu1 %v1049_v51  ;;  %1869 = vmatprep.subr.mxu0 %v1051_v52  ;;  %v1137_v50 = vld [vmem:[%s10679_s3 + $0x648] sm:$0xff]  ;;  %v1136_v51 = vld [vmem:[%s10679_s3 + $0x640] sm:$0xff]  ;;  %v1138_v52 = vld [vmem:[%s10679_s3 + $0x650] sm:$0xff] }
 0x192   : > { %1787 = vmatpush2.msra.mxu1 %v1048_v53  ;;  %1870 = vmatpush2.msra.mxu0 %v1050_v54  ;;  %v1130_v53 = vld [vmem:[%s10679_s3 + $0x610] sm:$0xff]  ;;  %v1129_v54 = vld [vmem:[%s10679_s3 + $0x608] sm:$0xff] }
 0x193   : > { %1789 = vmatmul.mubr.f32.vlgmr.msra.gmra.mxu1 %v7114_v56  ;;  %1872 = vmatmul.mubr.f32.vlgmr.msra.gmra.mxu0 %v7114_v56 }
 0x194   : > { %1890 = vmatprep.subr.mxu1 %v1046_v55  ;;  %1973 = vmatprep.subr.mxu0 %v5738_v16  ;;  %v1131_v55 = vld [vmem:[%s10679_s3 + $0x618] sm:$0xff] }
 0x195   : > { %4941 = vmatprep.mubr.msk.f32.mxu1 %vm924_vm2, %v6398_v63  ;;  %4944 = vmatprep.mubr.msk.f32.mxu0 %vm924_vm2, %v6398_v63  ;;  %v7142_v63 = vld [vmem:[#allocation2 + $0x10] sm:$0xff] }
 0x196   : > { %1891 = vmatpush1.msra.mxu1 %v1045_v9  ;;  %1974 = vmatpush1.msra.mxu0 %v1047_v57  ;;  %v1123_v9 = vld [vmem:[%s10679_s3 + $0x5d8] sm:$0xff]  ;;  %v1122_v57 = vld [vmem:[%s10679_s3 + $0x5d0] sm:$0xff] }
 0x197   : > { %1892 = vmatprep.subr.mxu1 %v1039_v58  ;;  %1975 = vmatprep.subr.mxu0 %v5738_v16  ;;  %v1124_v58 = vld [vmem:[%s10679_s3 + $0x5e0] sm:$0xff] }
 0x198   : > { %1893 = vmatpush1.msra.mxu1 %v1038_v19  ;;  %1976 = vmatpush1.msra.mxu0 %v1040_v59  ;;  %v1116_v19 = vld [vmem:[%s10679_s3 + $0x5a0] sm:$0xff]  ;;  %v1115_v59 = vld [vmem:[%s10679_s3 + $0x598] sm:$0xff] }
 0x199   : > { %1795 = vmatmul.mubr.f32.gmra.mxu1 %v7142_v63  ;;  %1878 = vmatmul.mubr.f32.gmra.mxu0 %v7142_v63 }
 0x19a   : > { %1894 = vmatprep.subr.mxu1 %v1032_v60  ;;  %1977 = vmatprep.subr.mxu0 %v5738_v16  ;;  %v1117_v60 = vld [vmem:[%s10679_s3 + $0x5a8] sm:$0xff] }
 0x19b   : > { %4942 = vmatprep.mubr.msk.f32.mxu1 %vm924_vm2, %v7153_v23  ;;  %4945 = vmatprep.mubr.msk.f32.mxu0 %vm924_vm2, %v7153_v23 }
 0x19c   : > { %1895 = vmatpush1.msra.mxu1 %v1031_v61  ;;  %1978 = vmatpush1.msra.mxu0 %v1033_v62  ;;  %v1109_v61 = vld [vmem:[%s10679_s3 + $0x568] sm:$0xff]  ;;  %v1108_v62 = vld [vmem:[%s10679_s3 + $0x560] sm:$0xff] }
 0x19d   : > { %1896 = vmatprep.subr.mxu1 %v1025_v0  ;;  %1979 = vmatprep.subr.mxu0 %v5738_v16  ;;  %v1110_v0 = vld [vmem:[%s10679_s3 + $0x570] sm:$0xff] }
 0x19e   : > { %1897 = vmatpush1.msra.mxu1 %v1024_v1  ;;  %1980 = vmatpush1.msra.mxu0 %v1026_v15  ;;  %v1102_v1 = vld [vmem:[%s10679_s3 + $0x530] sm:$0xff]  ;;  %v1101_v15 = vld [vmem:[%s10679_s3 + $0x528] sm:$0xff] }
 0x19f   : > { %1801 = vmatmul.mubr.f32.gmra.mxu1 %v7172_v4  ;;  %1884 = vmatmul.mubr.f32.gmra.mxu0 %v7172_v4 }
 0x1a0   : > { %1898 = vmatprep.subr.mxu1 %v1018_v2  ;;  %1981 = vmatprep.subr.mxu0 %v5738_v16  ;;  %v1103_v2 = vld [vmem:[%s10679_s3 + $0x538] sm:$0xff] }
 0x1a1   : > { %1899 = vmatpush1.msra.mxu1 %v1017_v6  ;;  %4946 = vmatprep.mubr.msk.f32.mxu1 %vm924_vm2, %v6805_v5  ;;  %v1095_v6 = vld [vmem:[%s10679_s3 + $0x4f8] sm:$0xff] }
 0x1a2   : > { %1982 = vmatpush1.msra.mxu0 %v1019_v7  ;;  %4949 = vmatprep.mubr.msk.f32.mxu0 %vm924_vm2, %v6805_v5  ;;  %v997_v5 = vld [vmem:[%s10679_s3 + $0x1e8] sm:$0xff]  ;;  %v1094_v7 = vld [vmem:[%s10679_s3 + $0x4f0] sm:$0xff] }
 0x1a3   : > { %1900 = vmatprep.subr.mxu1 %v1011_v18  ;;  %1983 = vmatprep.subr.mxu0 %v5738_v16  ;;  %v1096_v18 = vld [vmem:[%s10679_s3 + $0x500] sm:$0xff] }
 0x1a4   : > { %1901 = vmatpush1.msra.mxu1 %v1010_v8  ;;  %1984 = vmatpush1.msra.mxu0 %v1012_v10  ;;  %v1088_v8 = vld [vmem:[%s10679_s3 + $0x4c0] sm:$0xff]  ;;  %v1087_v10 = vld [vmem:[%s10679_s3 + $0x4b8] sm:$0xff] }
 0x1a5   : > { %1902 = vmatprep.subr.mxu1 %v1004_v12  ;;  %1985 = vmatprep.subr.mxu0 %v5738_v16  ;;  %v1089_v12 = vld [vmem:[%s10679_s3 + $0x4c8] sm:$0xff] }
 0x1a6   : > { %1903 = vmatpush1.msra.mxu1 %v1003_v13  ;;  %1986 = vmatpush1.msra.mxu0 %v1005_v14  ;;  %v1081_v13 = vld [vmem:[%s10679_s3 + $0x488] sm:$0xff]  ;;  %v1080_v14 = vld [vmem:[%s10679_s3 + $0x480] sm:$0xff] }
 0x1a7   : > { %1904 = vmatprep.subr.mxu1 %v997_v5  ;;  %1987 = vmatprep.subr.mxu0 %v5738_v16  ;;  %v1082_v5 = vld [vmem:[%s10679_s3 + $0x490] sm:$0xff] }
 0x1a8   : > { %1905 = vmatpush1.msra.mxu1 %v996_v20  ;;  %1988 = vmatpush1.msra.mxu0 %v998_v21  ;;  %v1074_v20 = vld [vmem:[%s10679_s3 + $0x450] sm:$0xff]  ;;  %v1073_v21 = vld [vmem:[%s10679_s3 + $0x448] sm:$0xff] }
 0x1a9   : > { %1906 = vmatprep.subr.mxu1 %v990_v22  ;;  %1989 = vmatprep.subr.mxu0 %v5738_v16  ;;  %v1075_v22 = vld [vmem:[%s10679_s3 + $0x458] sm:$0xff] }
 0x1aa   : > { %1907 = vmatpush1.msra.mxu1 %v989_v24  ;;  %1990 = vmatpush1.msra.mxu0 %v991_v25  ;;  %v1067_v24 = vld [vmem:[%s10679_s3 + $0x418] sm:$0xff]  ;;  %v1066_v25 = vld [vmem:[%s10679_s3 + $0x410] sm:$0xff] }
 0x1ab   : > { %1908 = vmatprep.subr.mxu1 %v983_v26  ;;  %1991 = vmatprep.subr.mxu0 %v5738_v16  ;;  %v1068_v26 = vld [vmem:[%s10679_s3 + $0x420] sm:$0xff] }
 0x1ac   : > { %1909 = vmatpush1.msra.mxu1 %v982_v27  ;;  %1992 = vmatpush1.msra.mxu0 %v984_v28  ;;  %v1060_v27 = vld [vmem:[%s10679_s3 + $0x3e0] sm:$0xff]  ;;  %v1059_v28 = vld [vmem:[%s10679_s3 + $0x3d8] sm:$0xff] }
 0x1ad   : > { %1910 = vmatprep.subr.mxu1 %v976_v29  ;;  %1993 = vmatprep.subr.mxu0 %v5738_v16  ;;  %v1061_v29 = vld [vmem:[%s10679_s3 + $0x3e8] sm:$0xff] }
 0x1ae   : > { %1911 = vmatpush1.msra.mxu1 %v975_v30  ;;  %1994 = vmatpush1.msra.mxu0 %v977_v31  ;;  %v1053_v30 = vld [vmem:[%s10679_s3 + $0x3a8] sm:$0xff]  ;;  %v1052_v31 = vld [vmem:[%s10679_s3 + $0x3a0] sm:$0xff] }
 0x1af   : > { %1912 = vmatprep.subr.mxu1 %v969_v32  ;;  %1995 = vmatprep.subr.mxu0 %v5738_v16  ;;  %v1054_v32 = vld [vmem:[%s10679_s3 + $0x3b0] sm:$0xff] }
 0x1b0   : > { %1913 = vmatpush1.msra.mxu1 %v968_v33  ;;  %1996 = vmatpush1.msra.mxu0 %v970_v34  ;;  %v5058_v33 = vld [vmem:[%s10679_s3 + $0x1070] sm:$0xff]  ;;  %v5060_v34 = vld [vmem:[%s10679_s3 + $0x1080] sm:$0xff] }
 0x1b1   : > { %1914 = vmatprep.subr.mxu1 %v962_v35  ;;  %1997 = vmatprep.subr.mxu0 %v5738_v16  ;;  %v5057_v35 = vld [vmem:[%s10679_s3 + $0x1068] sm:$0xff] }
 0x1b2   : > { %1915 = vmatpush1.msra.mxu1 %v961_v36  ;;  %1998 = vmatpush1.msra.mxu0 %v963_v37  ;;  %v5059_v36 = vld [vmem:[%s10679_s3 + $0x1078] sm:$0xff] }
 0x1b3   : > { %1916 = vmatprep.subr.mxu1 %v955_v38  ;;  %1999 = vmatprep.subr.mxu0 %v5738_v16  ;;  %v5051_v37 = vld [vmem:[%s10679_s3 + $0x1038] sm:$0xff]  ;;  %v5053_v38 = vld [vmem:[%s10679_s3 + $0x1048] sm:$0xff] }
 0x1b4   : > { %1917 = vmatpush1.msra.mxu1 %v954_v39  ;;  %2000 = vmatpush1.msra.mxu0 %v956_v40  ;;  %v7457_v39 = vld [vmem:[#allocation2 + $0x18] sm:$0xff]  ;;  %v5052_v40 = vld [vmem:[%s10679_s3 + $0x1040] sm:$0xff] }
 0x1b5   : > { %1918 = vmatprep.subr.mxu1 %v948_v41  ;;  %2001 = vmatprep.subr.mxu0 %v5738_v16  ;;  %v5044_v41 = vld [vmem:[%s10679_s3 + $0x1000] sm:$0xff] }
 0x1b6   : > { %1919 = vmatpush1.msra.mxu1 %v947_v42  ;;  %2002 = vmatpush1.msra.mxu0 %v949_v43  ;;  %v5046_v42 = vld [vmem:[%s10679_s3 + $0x1010] sm:$0xff]  ;;  %v5043_v43 = vld [vmem:[%s10679_s3 + $0xff8] sm:$0xff] }
 0x1b7   : > { %1920 = vmatprep.subr.mxu1 %v941_v44  ;;  %2003 = vmatprep.subr.mxu0 %v5738_v16  ;;  %v5045_v44 = vld [vmem:[%s10679_s3 + $0x1008] sm:$0xff] }
 0x1b8   : > { %1921 = vmatpush1.msra.mxu1 %v940_v45  ;;  %2004 = vmatpush1.msra.mxu0 %v942_v46  ;;  %v5037_v45 = vld [vmem:[%s10679_s3 + $0xfc8] sm:$0xff]  ;;  %v5039_v46 = vld [vmem:[%s10679_s3 + $0xfd8] sm:$0xff] }
 0x1b9   : > { %1926 = vmatprep.subr.mxu1 %v1144_v47  ;;  %2009 = vmatprep.subr.mxu0 %v5738_v16  ;;  %v5036_v47 = vld [vmem:[%s10679_s3 + $0xfc0] sm:$0xff] }
 0x1ba   : > { %1927 = vmatpush2.msra.mxu1 %v1143_v48  ;;  %2010 = vmatpush2.msra.mxu0 %v1145_v49  ;;  %v5038_v48 = vld [vmem:[%s10679_s3 + $0xfd0] sm:$0xff]  ;;  %v2054_v49 = vld [vmem:[#allocation2 + $0x8] sm:$0xfc] }
 0x1bb   : > { %1928 = vmatprep.subr.mxu1 %v1137_v50  ;;  %2011 = vmatprep.subr.mxu0 %v5738_v16  ;;  %v2277_v50 = vrot.slane %v7457_v39, 2 }
 0x1bc   : > { %1929 = vmatpush2.msra.mxu1 %v1136_v51  ;;  %2012 = vmatpush2.msra.mxu0 %v1138_v52  ;;  %v5030_v51 = vld [vmem:[%s10679_s3 + $0xf90] sm:$0xff]  ;;  %v5029_v52 = vld [vmem:[%s10679_s3 + $0xf88] sm:$0xff] }
 0x1bd   : > { %1930 = vmatprep.subr.mxu1 %v1130_v53  ;;  %2013 = vmatprep.subr.mxu0 %v5738_v16  ;;  %v2276_v53 = vrot.slane %v2054_v49, 2 }
 0x1be   : > { %1931 = vmatpush2.msra.mxu1 %v1129_v54  ;;  %2014 = vmatpush2.msra.mxu0 %v1131_v55  ;;  %v5031_v54 = vld [vmem:[%s10679_s3 + $0xf98] sm:$0xff] }
 0x1bf   : > { %1932 = vmatprep.subr.mxu1 %v1123_v9  ;;  %2015 = vmatprep.subr.mxu0 %v5738_v16  ;;  %v7517_v55 = vsel %vm2272_vm4, %v2276_v53, %v2277_v50  ;;  %v5023_v9 = vld [vmem:[%s10679_s3 + $0xf58] sm:$0xff]  ;;  %v5144_v53 = vld [vmem:[%s10679_s3 + $0x1320] sm:$0xff] }
 0x1c0   : > { %1933 = vmatpush2.msra.mxu1 %v1122_v57  ;;  %2016 = vmatpush2.msra.mxu0 %v1124_v58  ;;  %v5022_v57 = vld [vmem:[%s10679_s3 + $0xf50] sm:$0xff]  ;;  %v5024_v58 = vld [vmem:[%s10679_s3 + $0xf60] sm:$0xff] }
 0x1c1   : > { %1934 = vmatprep.subr.mxu1 %v1116_v19  ;;  %2017 = vmatprep.subr.mxu0 %v5738_v16  ;;  %v5016_v19 = vld [vmem:[%s10679_s3 + $0xf20] sm:$0xff] }
 0x1c2   : > { %1935 = vmatpush2.msra.mxu1 %v1115_v59  ;;  %2018 = vmatpush2.msra.mxu0 %v1117_v60  ;;  %v5018_v59 = vld [vmem:[%s10679_s3 + $0xf30] sm:$0xff]  ;;  %v5015_v60 = vld [vmem:[%s10679_s3 + $0xf18] sm:$0xff] }
 0x1c3   : > { %1936 = vmatprep.subr.mxu1 %v1109_v61  ;;  %2019 = vmatprep.subr.mxu0 %v5738_v16  ;;  %v5017_v61 = vld [vmem:[%s10679_s3 + $0xf28] sm:$0xff] }
 0x1c4   : > { %1937 = vmatpush2.msra.mxu1 %v1108_v62  ;;  %2020 = vmatpush2.msra.mxu0 %v1110_v0  ;;  %v5009_v62 = vld [vmem:[%s10679_s3 + $0xee8] sm:$0xff]  ;;  %v5011_v0 = vld [vmem:[%s10679_s3 + $0xef8] sm:$0xff] }
 0x1c5   : > { %1938 = vmatprep.subr.mxu1 %v1102_v1  ;;  %2021 = vmatprep.subr.mxu0 %v5738_v16  ;;  %v5008_v1 = vld [vmem:[%s10679_s3 + $0xee0] sm:$0xff] }
 0x1c6   : > { %1939 = vmatpush2.msra.mxu1 %v1101_v15  ;;  %2022 = vmatpush2.msra.mxu0 %v1103_v2  ;;  %v5010_v15 = vld [vmem:[%s10679_s3 + $0xef0] sm:$0xff] }
 0x1c7   : > { %1940 = vmatprep.subr.mxu1 %v1095_v6  ;;  %2023 = vmatprep.subr.mxu0 %v5738_v16  ;;  %v5002_v2 = vld [vmem:[%s10679_s3 + $0xeb0] sm:$0xff]  ;;  %v5004_v6 = vld [vmem:[%s10679_s3 + $0xec0] sm:$0xff] }
 0x1c8   : > { %1941 = vmatpush2.msra.mxu1 %v1094_v7  ;;  %2024 = vmatpush2.msra.mxu0 %v1096_v18  ;;  %v5001_v7 = vld [vmem:[%s10679_s3 + $0xea8] sm:$0xff]  ;;  %v5003_v18 = vld [vmem:[%s10679_s3 + $0xeb8] sm:$0xff] }
 0x1c9   : > { %1942 = vmatprep.subr.mxu1 %v1088_v8  ;;  %2025 = vmatprep.subr.mxu0 %v5738_v16  ;;  %v4995_v8 = vld [vmem:[%s10679_s3 + $0xe78] sm:$0xff] }
 0x1ca   : > { %1943 = vmatpush2.msra.mxu1 %v1087_v10  ;;  %2026 = vmatpush2.msra.mxu0 %v1089_v12  ;;  %v4997_v10 = vld [vmem:[%s10679_s3 + $0xe88] sm:$0xff]  ;;  %v4994_v12 = vld [vmem:[%s10679_s3 + $0xe70] sm:$0xff] }
 0x1cb   : > { %1944 = vmatprep.subr.mxu1 %v1081_v13  ;;  %2027 = vmatprep.subr.mxu0 %v5738_v16  ;;  %v4996_v13 = vld [vmem:[%s10679_s3 + $0xe80] sm:$0xff] }
 0x1cc   : > { %1945 = vmatpush2.msra.mxu1 %v1080_v14  ;;  %2028 = vmatpush2.msra.mxu0 %v1082_v5  ;;  %v4988_v14 = vld [vmem:[%s10679_s3 + $0xe40] sm:$0xff]  ;;  %v4990_v5 = vld [vmem:[%s10679_s3 + $0xe50] sm:$0xff] }
 0x1cd   : > { %1946 = vmatprep.subr.mxu1 %v1074_v20  ;;  %2029 = vmatprep.subr.mxu0 %v5738_v16  ;;  %v4987_v20 = vld [vmem:[%s10679_s3 + $0xe38] sm:$0xff] }
 0x1ce   : > { %1947 = vmatpush2.msra.mxu1 %v1073_v21  ;;  %2030 = vmatpush2.msra.mxu0 %v1075_v22  ;;  %v4989_v21 = vld [vmem:[%s10679_s3 + $0xe48] sm:$0xff] }
 0x1cf   : > { %1948 = vmatprep.subr.mxu1 %v1067_v24  ;;  %2031 = vmatprep.subr.mxu0 %v5738_v16  ;;  %v4981_v22 = vld [vmem:[%s10679_s3 + $0xe08] sm:$0xff]  ;;  %v4983_v24 = vld [vmem:[%s10679_s3 + $0xe18] sm:$0xff] }
 0x1d0   : > { %1949 = vmatpush2.msra.mxu1 %v1066_v25  ;;  %2032 = vmatpush2.msra.mxu0 %v1068_v26  ;;  %v4980_v25 = vld [vmem:[%s10679_s3 + $0xe00] sm:$0xff]  ;;  %v4982_v26 = vld [vmem:[%s10679_s3 + $0xe10] sm:$0xff]  ;;  %v7673_v49 = vpop.f32.mrf.mxu0 }
 0x1d1   : > { %1950 = vmatprep.subr.mxu1 %v1060_v27  ;;  %2033 = vmatprep.subr.mxu0 %v5738_v16  ;;  %v4974_v27 = vld [vmem:[%s10679_s3 + $0xdd0] sm:$0xff] }
 0x1d2   : > { %1951 = vmatpush2.msra.mxu1 %v1059_v28  ;;  %2034 = vmatpush2.msra.mxu0 %v1061_v29  ;;  %v4976_v28 = vld [vmem:[%s10679_s3 + $0xde0] sm:$0xff]  ;;  %v4973_v29 = vld [vmem:[%s10679_s3 + $0xdc8] sm:$0xff] }
 0x1d3   : > { %1952 = vmatprep.subr.mxu1 %v1053_v30  ;;  %2035 = vmatprep.subr.mxu0 %v5738_v16  ;;  %v4975_v30 = vld [vmem:[%s10679_s3 + $0xdd8] sm:$0xff] }
 0x1d4   : > { %1953 = vmatpush2.msra.mxu1 %v1052_v31  ;;  %2036 = vmatpush2.msra.mxu0 %v1054_v32  ;;  %v4967_v31 = vld [vmem:[%s10679_s3 + $0xd98] sm:$0xff]  ;;  %v4969_v32 = vld [vmem:[%s10679_s3 + $0xda8] sm:$0xff] }
 0x1d5   : > { %1955 = vmatmul.mubr.f32.vlgmr.msra.gmra.mxu1 %v7114_v56  ;;  %2038 = vmatmul.mubr.f32.vlgmr.msra.gmra.mxu0 %v7114_v56  ;;  %v5050_v56 = vld [vmem:[%s10679_s3 + $0x1030] sm:$0xff] }
 0x1d6   : > { %2292 = vmatprep.subr.mxu1 %v5058_v33  ;;  %2375 = vmatprep.subr.mxu0 %v5060_v34  ;;  %v4966_v33 = vld [vmem:[%s10679_s3 + $0xd90] sm:$0xff]  ;;  %v4968_v34 = vld [vmem:[%s10679_s3 + $0xda0] sm:$0xff] }
 0x1d7   : > { %4947 = vmatprep.mubr.msk.f32.mxu1 %vm924_vm2, %v7457_v39  ;;  %4950 = vmatprep.mubr.msk.f32.mxu0 %vm924_vm2, %v7457_v39  ;;  %v5056_v39 = vld [vmem:[%s10679_s3 + $0x1060] sm:$0xff] }
 0x1d8   : > { %2293 = vmatpush1.msra.mxu1 %v5057_v35  ;;  %2376 = vmatpush1.msra.mxu0 %v5059_v36  ;;  %v4960_v35 = vld [vmem:[%s10679_s3 + $0xd60] sm:$0xff]  ;;  %v4962_v36 = vld [vmem:[%s10679_s3 + $0xd70] sm:$0xff] }
 0x1d9   : > { %2294 = vmatprep.subr.mxu1 %v5051_v37  ;;  %2377 = vmatprep.subr.mxu0 %v5053_v38  ;;  %v4959_v37 = vld [vmem:[%s10679_s3 + $0xd58] sm:$0xff]  ;;  %v4961_v38 = vld [vmem:[%s10679_s3 + $0xd68] sm:$0xff] }
 0x1da   : > { %2295 = vmatpush1.msra.mxu1 %v5050_v56  ;;  %2378 = vmatpush1.msra.mxu0 %v5052_v40  ;;  %v4953_v56 = vld [vmem:[%s10679_s3 + $0xd28] sm:$0xff]  ;;  %v4955_v40 = vld [vmem:[%s10679_s3 + $0xd38] sm:$0xff] }
 0x1db   : > { %1961 = vmatmul.mubr.f32.gmra.mxu1 %v7142_v63  ;;  %2043 = vmatmul.mubr.f32.gmra.mxu0 %v7142_v63 }
 0x1dc   : > { %2296 = vmatprep.subr.mxu1 %v5044_v41  ;;  %2379 = vmatprep.subr.mxu0 %v5046_v42  ;;  %v4952_v41 = vld [vmem:[%s10679_s3 + $0xd20] sm:$0xff]  ;;  %v4954_v42 = vld [vmem:[%s10679_s3 + $0xd30] sm:$0xff] }
 0x1dd   : > { %4948 = vmatprep.mubr.msk.f32.mxu1 %vm924_vm2, %v7153_v23  ;;  %4951 = vmatprep.mubr.msk.f32.mxu0 %vm924_vm2, %v7153_v23  ;;  %v5032_v23 = vld [vmem:[%s10679_s3 + $0xfa0] sm:$0xff] }
 0x1de   : > { %2297 = vmatpush1.msra.mxu1 %v5043_v43  ;;  %2380 = vmatpush1.msra.mxu0 %v5045_v44  ;;  %v5156_v43 = vld [vmem:[%s10679_s3 + $0x1380] sm:$0xff]  ;;  %v5158_v44 = vld [vmem:[%s10679_s3 + $0x1390] sm:$0xff] }
 0x1df   : > { %2298 = vmatprep.subr.mxu1 %v5037_v45  ;;  %2381 = vmatprep.subr.mxu0 %v5039_v46  ;;  %v5155_v45 = vld [vmem:[%s10679_s3 + $0x1378] sm:$0xff]  ;;  %v5157_v46 = vld [vmem:[%s10679_s3 + $0x1388] sm:$0xff] }
 0x1e0   : > { %2299 = vmatpush1.msra.mxu1 %v5036_v47  ;;  %2382 = vmatpush1.msra.mxu0 %v5038_v48  ;;  %v5149_v47 = vld [vmem:[%s10679_s3 + $0x1348] sm:$0xff]  ;;  %v5151_v48 = vld [vmem:[%s10679_s3 + $0x1358] sm:$0xff] }
 0x1e1   : > { %1967 = vmatmul.mubr.f32.gmra.mxu1 %v7172_v4  ;;  %2048 = vmatmul.mubr.f32.gmra.mxu0 %v7172_v4  ;;  %v5025_v4 = vld [vmem:[%s10679_s3 + $0xf68] sm:$0xff] }
 0x1e2   : > { %2300 = vmatprep.subr.mxu1 %v5030_v51  ;;  %2383 = vmatprep.subr.mxu0 %v5032_v23  ;;  %v5148_v51 = vld [vmem:[%s10679_s3 + $0x1340] sm:$0xff]  ;;  %v5150_v23 = vld [vmem:[%s10679_s3 + $0x1350] sm:$0xff] }
 0x1e3   : > { %2301 = vmatpush1.msra.mxu1 %v5029_v52  ;;  %5162 = vmatprep.mubr.msk.f32.mxu1 %vm924_vm2, %v7517_v55  ;;  %v5142_v52 = vld [vmem:[%s10679_s3 + $0x1310] sm:$0xff] }
 0x1e4   : > { %2384 = vmatpush1.msra.mxu0 %v5031_v54  ;;  %5165 = vmatprep.mubr.msk.f32.mxu0 %vm924_vm2, %v7517_v55  ;;  %v5141_v54 = vld [vmem:[%s10679_s3 + $0x1308] sm:$0xff] }
 0x1e5   : > { %2302 = vmatprep.subr.mxu1 %v5023_v9  ;;  %2385 = vmatprep.subr.mxu0 %v5025_v4  ;;  %v5143_v9 = vld [vmem:[%s10679_s3 + $0x1318] sm:$0xff] }
 0x1e6   : > { %2303 = vmatpush1.msra.mxu1 %v5022_v57  ;;  %2386 = vmatpush1.msra.mxu0 %v5024_v58  ;;  %v5135_v4 = vld [vmem:[%s10679_s3 + $0x12d8] sm:$0xff]  ;;  %v5137_v57 = vld [vmem:[%s10679_s3 + $0x12e8] sm:$0xff]  ;;  %v7699_v58 = vpop.f32.mrf.mxu0 }
 0x1e7   : > { %2304 = vmatprep.subr.mxu1 %v5016_v19  ;;  %2387 = vmatprep.subr.mxu0 %v5018_v59  ;;  %v5134_v19 = vld [vmem:[%s10679_s3 + $0x12d0] sm:$0xff]  ;;  %v5136_v59 = vld [vmem:[%s10679_s3 + $0x12e0] sm:$0xff] }
 0x1e8   : > { %2305 = vmatpush1.msra.mxu1 %v5015_v60  ;;  %2388 = vmatpush1.msra.mxu0 %v5017_v61  ;;  %v5128_v60 = vld [vmem:[%s10679_s3 + $0x12a0] sm:$0xff]  ;;  %v5130_v61 = vld [vmem:[%s10679_s3 + $0x12b0] sm:$0xff] }
 0x1e9   : > { %2306 = vmatprep.subr.mxu1 %v5009_v62  ;;  %2389 = vmatprep.subr.mxu0 %v5011_v0  ;;  %v5127_v62 = vld [vmem:[%s10679_s3 + $0x1298] sm:$0xff]  ;;  %v5129_v0 = vld [vmem:[%s10679_s3 + $0x12a8] sm:$0xff] }
 0x1ea   : > { %2307 = vmatpush1.msra.mxu1 %v5008_v1  ;;  %2390 = vmatpush1.msra.mxu0 %v5010_v15  ;;  %v5121_v1 = vld [vmem:[%s10679_s3 + $0x1268] sm:$0xff]  ;;  %v5123_v15 = vld [vmem:[%s10679_s3 + $0x1278] sm:$0xff] }
 0x1eb   : > { %2308 = vmatprep.subr.mxu1 %v5002_v2  ;;  %2391 = vmatprep.subr.mxu0 %v5004_v6  ;;  %v7725_v2 = vpop.f32.mrf.mxu0  ;;  %v5120_v6 = vld [vmem:[%s10679_s3 + $0x1260] sm:$0xff] }
 0x1ec   : > { %2309 = vmatpush1.msra.mxu1 %v5001_v7  ;;  %2392 = vmatpush1.msra.mxu0 %v5003_v18  ;;  %v5122_v7 = vld [vmem:[%s10679_s3 + $0x1270] sm:$0xff] }
 0x1ed   : > { %2310 = vmatprep.subr.mxu1 %v4995_v8  ;;  %2393 = vmatprep.subr.mxu0 %v4997_v10  ;;  %v5114_v18 = vld [vmem:[%s10679_s3 + $0x1230] sm:$0xff]  ;;  %v5116_v8 = vld [vmem:[%s10679_s3 + $0x1240] sm:$0xff]  ;;  %v5113_v10 = vld [vmem:[%s10679_s3 + $0x1228] sm:$0xff] }
 0x1ee   : > { %2311 = vmatpush1.msra.mxu1 %v4994_v12  ;;  %2394 = vmatpush1.msra.mxu0 %v4996_v13  ;;  %v5115_v12 = vld [vmem:[%s10679_s3 + $0x1238] sm:$0xff] }
 0x1ef   : > { %2312 = vmatprep.subr.mxu1 %v4988_v14  ;;  %2395 = vmatprep.subr.mxu0 %v4990_v5  ;;  %v5107_v13 = vld [vmem:[%s10679_s3 + $0x11f8] sm:$0xff]  ;;  %v5109_v14 = vld [vmem:[%s10679_s3 + $0x1208] sm:$0xff]  ;;  %v7751_v5 = vpop.f32.mrf.mxu0 }
 0x1f0   : > { %2313 = vmatpush1.msra.mxu1 %v4987_v20  ;;  %2396 = vmatpush1.msra.mxu0 %v4989_v21  ;;  %v5106_v20 = vld [vmem:[%s10679_s3 + $0x11f0] sm:$0xff]  ;;  %v5108_v21 = vld [vmem:[%s10679_s3 + $0x1200] sm:$0xff] }
 0x1f1   : > { %2314 = vmatprep.subr.mxu1 %v4981_v22  ;;  %2397 = vmatprep.subr.mxu0 %v4983_v24  ;;  %v5100_v22 = vld [vmem:[%s10679_s3 + $0x11c0] sm:$0xff]  ;;  %v5102_v24 = vld [vmem:[%s10679_s3 + $0x11d0] sm:$0xff] }
 0x1f2   : > { %2315 = vmatpush1.msra.mxu1 %v4980_v25  ;;  %2398 = vmatpush1.msra.mxu0 %v4982_v26  ;;  %v5099_v25 = vld [vmem:[%s10679_s3 + $0x11b8] sm:$0xff]  ;;  %v5101_v26 = vld [vmem:[%s10679_s3 + $0x11c8] sm:$0xff] }
 0x1f3   : > { %2316 = vmatprep.subr.mxu1 %v4974_v27  ;;  %2399 = vmatprep.subr.mxu0 %v4976_v28  ;;  %v5093_v27 = vld [vmem:[%s10679_s3 + $0x1188] sm:$0xff]  ;;  %v5095_v28 = vld [vmem:[%s10679_s3 + $0x1198] sm:$0xff] }
 0x1f4   : > { %2317 = vmatpush1.msra.mxu1 %v4973_v29  ;;  %2400 = vmatpush1.msra.mxu0 %v4975_v30  ;;  %v7777_v29 = vpop.f32.mrf.mxu0  ;;  %v5092_v30 = vld [vmem:[%s10679_s3 + $0x1180] sm:$0xff] }
 0x1f5   : > { %2318 = vmatprep.subr.mxu1 %v4967_v31  ;;  %2401 = vmatprep.subr.mxu0 %v4969_v32  ;;  %v5094_v31 = vld [vmem:[%s10679_s3 + $0x1190] sm:$0xff] }
 0x1f6   : > { %2319 = vmatpush1.msra.mxu1 %v4966_v33  ;;  %2402 = vmatpush1.msra.mxu0 %v4968_v34  ;;  %v5086_v32 = vld [vmem:[%s10679_s3 + $0x1150] sm:$0xff]  ;;  %v5088_v33 = vld [vmem:[%s10679_s3 + $0x1160] sm:$0xff]  ;;  %v5085_v34 = vld [vmem:[%s10679_s3 + $0x1148] sm:$0xff] }
 0x1f7   : > { %2320 = vmatprep.subr.mxu1 %v4960_v35  ;;  %2403 = vmatprep.subr.mxu0 %v4962_v36  ;;  %v5087_v35 = vld [vmem:[%s10679_s3 + $0x1158] sm:$0xff] }
 0x1f8   : > { %2321 = vmatpush1.msra.mxu1 %v4959_v37  ;;  %2404 = vmatpush1.msra.mxu0 %v4961_v38  ;;  %v5079_v36 = vld [vmem:[%s10679_s3 + $0x1118] sm:$0xff]  ;;  %v5081_v37 = vld [vmem:[%s10679_s3 + $0x1128] sm:$0xff]  ;;  %v7803_v38 = vpop.f32.mrf.mxu0 }
 0x1f9   : > { %2322 = vmatprep.subr.mxu1 %v4953_v56  ;;  %2405 = vmatprep.subr.mxu0 %v4955_v40  ;;  %v5078_v56 = vld [vmem:[%s10679_s3 + $0x1110] sm:$0xff]  ;;  %v5080_v40 = vld [vmem:[%s10679_s3 + $0x1120] sm:$0xff] }
 0x1fa   : > { %2323 = vmatpush1.msra.mxu1 %v4952_v41  ;;  %2406 = vmatpush1.msra.mxu0 %v4954_v42  ;;  %v2053_v41 = vld [vmem:[#allocation2] sm:$0xfc] }
 0x1fb   : > { %2328 = vmatprep.subr.mxu1 %v5156_v43  ;;  %2411 = vmatprep.subr.mxu0 %v5158_v44  ;;  %v5072_v42 = vld [vmem:[%s10679_s3 + $0x10e0] sm:$0xff]  ;;  %v5074_v43 = vld [vmem:[%s10679_s3 + $0x10f0] sm:$0xff]  ;;  %v5071_v44 = vld [vmem:[%s10679_s3 + $0x10d8] sm:$0xff] }
 0x1fc   : > { %2329 = vmatpush2.msra.mxu1 %v5155_v45  ;;  %2412 = vmatpush2.msra.mxu0 %v5157_v46  ;;  %v5073_v45 = vld [vmem:[%s10679_s3 + $0x10e8] sm:$0xff] }
 0x1fd   : > { %2330 = vmatprep.subr.mxu1 %v5149_v47  ;;  %2413 = vmatprep.subr.mxu0 %v5151_v48  ;;  %v2056_v46 = vld [vmem:[#allocation2 + $0x28] sm:$0x3f] }
 0x1fe   : > { %2331 = vmatpush2.msra.mxu1 %v5148_v51  ;;  %2414 = vmatpush2.msra.mxu0 %v5150_v23  ;;  %v5065_v48 = vld [vmem:[%s10679_s3 + $0x10a8] sm:$0xff]  ;;  %v5067_v51 = vld [vmem:[%s10679_s3 + $0x10b8] sm:$0xff]  ;;  %v2273_v23 = vrot.slane %v2053_v41, 2  ;;  %v4992_v41 = vld [vmem:[%s10679_s3 + $0xe60] sm:$0xff] }
 0x1ff   : > { %2332 = vmatprep.subr.mxu1 %v5142_v52  ;;  %2415 = vmatprep.subr.mxu0 %v5144_v53  ;;  %v5064_v52 = vld [vmem:[%s10679_s3 + $0x10a0] sm:$0xff]  ;;  %v5066_v53 = vld [vmem:[%s10679_s3 + $0x10b0] sm:$0xff] }
 0x200   : > { %2333 = vmatpush2.msra.mxu1 %v5141_v54  ;;  %2416 = vmatpush2.msra.mxu0 %v5143_v9  ;;  %v2274_v9 = vrot.slane %v7142_v63, 2  ;;  %v5061_v63 = vld [vmem:[%s10679_s3 + $0x1088] sm:$0xff] }
 0x201   : > { %2334 = vmatprep.subr.mxu1 %v5135_v4  ;;  %2417 = vmatprep.subr.mxu0 %v5137_v57  ;;  %v7838_v4 = vrot.slane %v2056_v46, 2  ;;  %v5062_v57 = vld [vmem:[%s10679_s3 + $0x1090] sm:$0xff] }
 0x202   : > { %2335 = vmatpush2.msra.mxu1 %v5134_v19  ;;  %2418 = vmatpush2.msra.mxu0 %v5136_v59  ;;  %v2055_v19 = vld [vmem:[#allocation2 + $0x20] sm:$0x3f]  ;;  %v7844_v59 = vsel %vm2272_vm4, %v2273_v23, %v2274_v9  ;;  %v4986_v46 = vld [vmem:[%s10679_s3 + $0xe30] sm:$0xff]  ;;  %v4979_v23 = vld [vmem:[%s10679_s3 + $0xdf8] sm:$0xff] }
 0x203   : > { %2336 = vmatprep.subr.mxu1 %v5128_v60  ;;  %2419 = vmatprep.subr.mxu0 %v5130_v61  ;;  %v5063_v60 = vld [vmem:[%s10679_s3 + $0x1098] sm:$0xff] }
 0x204   : > { %2337 = vmatpush2.msra.mxu1 %v5127_v62  ;;  %2420 = vmatpush2.msra.mxu0 %v5129_v0  ;;  %v7861_v62 = vsel %vm2272_vm4, %v2277_v50, %v7838_v4  ;;  %v5055_v0 = vld [vmem:[%s10679_s3 + $0x1058] sm:$0xff] }
 0x205   : > { %2338 = vmatprep.subr.mxu1 %v5121_v1  ;;  %2421 = vmatprep.subr.mxu0 %v5123_v15  ;;  %v7866_v1 = vrot.slane %v2055_v19, 2  ;;  %v5054_v15 = vld [vmem:[%s10679_s3 + $0x1050] sm:$0xff]  ;;  %v4965_v19 = vld [vmem:[%s10679_s3 + $0xd88] sm:$0xff] }
 0x206   : > { %2339 = vmatpush2.msra.mxu1 %v5120_v6  ;;  %2422 = vmatpush2.msra.mxu0 %v5122_v7  ;;  %v5048_v6 = vld [vmem:[%s10679_s3 + $0x1020] sm:$0xff] }
 0x207   : > { %2340 = vmatprep.subr.mxu1 %v5114_v18  ;;  %2423 = vmatprep.subr.mxu0 %v5116_v8  ;;  %v7884_v7 = vsel %vm2272_vm4, %v2274_v9, %v7866_v1  ;;  %v5047_v18 = vld [vmem:[%s10679_s3 + $0x1018] sm:$0xff]  ;;  %v5049_v8 = vld [vmem:[%s10679_s3 + $0x1028] sm:$0xff]  ;;  %v4964_v9 = vld [vmem:[%s10679_s3 + $0xd80] sm:$0xff] }
 0x208   : > { %2341 = vmatpush2.msra.mxu1 %v5113_v10  ;;  %2424 = vmatpush2.msra.mxu0 %v5115_v12  ;;  %v5041_v12 = vld [vmem:[%s10679_s3 + $0xfe8] sm:$0xff] }
 0x209   : > { %2342 = vmatprep.subr.mxu1 %v5107_v13  ;;  %2425 = vmatprep.subr.mxu0 %v5109_v14  ;;  %v5040_v13 = vld [vmem:[%s10679_s3 + $0xfe0] sm:$0xff]  ;;  %v5042_v14 = vld [vmem:[%s10679_s3 + $0xff0] sm:$0xff] }
 0x20a   : > { %2343 = vmatpush2.msra.mxu1 %v5106_v20  ;;  %2426 = vmatpush2.msra.mxu0 %v5108_v21  ;;  %v5034_v21 = vld [vmem:[%s10679_s3 + $0xfb0] sm:$0xff] }
 0x20b   : > { %2344 = vmatprep.subr.mxu1 %v5100_v22  ;;  %2427 = vmatprep.subr.mxu0 %v5102_v24  ;;  %v5033_v22 = vld [vmem:[%s10679_s3 + $0xfa8] sm:$0xff]  ;;  %v5035_v24 = vld [vmem:[%s10679_s3 + $0xfb8] sm:$0xff] }
 0x20c   : > { %2345 = vmatpush2.msra.mxu1 %v5099_v25  ;;  %2428 = vmatpush2.msra.mxu0 %v5101_v26  ;;  %v5027_v25 = vld [vmem:[%s10679_s3 + $0xf78] sm:$0xff]  ;;  %v5026_v26 = vld [vmem:[%s10679_s3 + $0xf70] sm:$0xff] }
 0x20d   : > { %2346 = vmatprep.subr.mxu1 %v5093_v27  ;;  %2429 = vmatprep.subr.mxu0 %v5095_v28  ;;  %v5028_v27 = vld [vmem:[%s10679_s3 + $0xf80] sm:$0xff] }
 0x20e   : > { %2347 = vmatpush2.msra.mxu1 %v5092_v30  ;;  %2430 = vmatpush2.msra.mxu0 %v5094_v31  ;;  %v5020_v28 = vld [vmem:[%s10679_s3 + $0xf40] sm:$0xff]  ;;  %v5019_v30 = vld [vmem:[%s10679_s3 + $0xf38] sm:$0xff]  ;;  %v5021_v31 = vld [vmem:[%s10679_s3 + $0xf48] sm:$0xff] }
 0x20f   : > { %2348 = vmatprep.subr.mxu1 %v5086_v32  ;;  %2431 = vmatprep.subr.mxu0 %v5088_v33  ;;  %v5012_v32 = vld [vmem:[%s10679_s3 + $0xf00] sm:$0xff]  ;;  %v5014_v33 = vld [vmem:[%s10679_s3 + $0xf10] sm:$0xff] }
 0x210   : > { %2349 = vmatpush2.msra.mxu1 %v5085_v34  ;;  %2432 = vmatpush2.msra.mxu0 %v5087_v35  ;;  %v5006_v34 = vld [vmem:[%s10679_s3 + $0xed0] sm:$0xff]  ;;  %v5005_v35 = vld [vmem:[%s10679_s3 + $0xec8] sm:$0xff] }
 0x211   : > { %2350 = vmatprep.subr.mxu1 %v5079_v36  ;;  %2433 = vmatprep.subr.mxu0 %v5081_v37  ;;  %v7823_v47 = vpop.f32.mrf.mxu0  ;;  %v5007_v36 = vld [vmem:[%s10679_s3 + $0xed8] sm:$0xff] }
 0x212   : > { %2351 = vmatpush2.msra.mxu1 %v5078_v56  ;;  %2434 = vmatpush2.msra.mxu0 %v5080_v40  ;;  %v4999_v37 = vld [vmem:[%s10679_s3 + $0xe98] sm:$0xff]  ;;  %v4998_v56 = vld [vmem:[%s10679_s3 + $0xe90] sm:$0xff]  ;;  %v5000_v40 = vld [vmem:[%s10679_s3 + $0xea0] sm:$0xff] }
 0x213   : > { %2352 = vmatprep.subr.mxu1 %v5072_v42  ;;  %2435 = vmatprep.subr.mxu0 %v5074_v43  ;;  %v1704_v54 = vpop.f32.mrf.mxu0  ;;  %v4991_v42 = vld [vmem:[%s10679_s3 + $0xe58] sm:$0xff]  ;;  %v4993_v43 = vld [vmem:[%s10679_s3 + $0xe68] sm:$0xff] }
 0x214   : > { %2353 = vmatpush2.msra.mxu1 %v5071_v44  ;;  %2436 = vmatpush2.msra.mxu0 %v5073_v45  ;;  %v4985_v44 = vld [vmem:[%s10679_s3 + $0xe28] sm:$0xff]  ;;  %v4984_v45 = vld [vmem:[%s10679_s3 + $0xe20] sm:$0xff] }
 0x215   : > { %2354 = vmatprep.subr.mxu1 %v5065_v48  ;;  %2437 = vmatprep.subr.mxu0 %v5067_v51  ;;  %v4978_v48 = vld [vmem:[%s10679_s3 + $0xdf0] sm:$0xff]  ;;  %v4977_v51 = vld [vmem:[%s10679_s3 + $0xde8] sm:$0xff]  ;;  %v4972_v54 = vld [vmem:[%s10679_s3 + $0xdc0] sm:$0xff] }
 0x216   : > { %2355 = vmatpush2.msra.mxu1 %v5064_v52  ;;  %2438 = vmatpush2.msra.mxu0 %v5066_v53  ;;  %v4971_v52 = vld [vmem:[%s10679_s3 + $0xdb8] sm:$0xff]  ;;  %v4970_v53 = vld [vmem:[%s10679_s3 + $0xdb0] sm:$0xff] }
 0x217   : > { %2357 = vmatmul.mubr.f32.vlgmr.msra.gmra.mxu1 %v7844_v59  ;;  %2440 = vmatmul.mubr.f32.vlgmr.msra.gmra.mxu0 %v7844_v59  ;;  %v7854_v61 = vpop.f32.mrf.mxu0 }
 0x218   : > { %2458 = vmatprep.subr.mxu1 %v5062_v57  ;;  %2541 = vmatprep.subr.mxu0 %v5738_v16  ;;  %v4963_v57 = vld [vmem:[%s10679_s3 + $0xd78] sm:$0xff] }
 0x219   : > { %5163 = vmatprep.mubr.msk.f32.mxu1 %vm924_vm2, %v7861_v62  ;;  %5166 = vmatprep.mubr.msk.f32.mxu0 %vm924_vm2, %v7861_v62  ;;  %v1709_v50 = vpop.f32.mrf.mxu0 }
 0x21a   : > { %2459 = vmatpush1.msra.mxu1 %v5061_v63  ;;  %2542 = vmatpush1.msra.mxu0 %v5063_v60  ;;  %v4957_v63 = vld [vmem:[%s10679_s3 + $0xd48] sm:$0xff]  ;;  %v4956_v60 = vld [vmem:[%s10679_s3 + $0xd40] sm:$0xff] }
 0x21b   : > { %2460 = vmatprep.subr.mxu1 %v5055_v0  ;;  %2543 = vmatprep.subr.mxu0 %v5738_v16  ;;  %v4958_v0 = vld [vmem:[%s10679_s3 + $0xd50] sm:$0xff]  ;;  %v5161_v50 = vld [vmem:[%s10679_s3 + $0x13a8] sm:$0xff] }
 0x21c   : > { %2461 = vmatpush1.msra.mxu1 %v5054_v15  ;;  %2544 = vmatpush1.msra.mxu0 %v5056_v39  ;;  %v5160_v15 = vld [vmem:[%s10679_s3 + $0x13a0] sm:$0xff]  ;;  %v5159_v39 = vld [vmem:[%s10679_s3 + $0x1398] sm:$0xff] }
 0x21d   : > { %2363 = vmatmul.mubr.f32.gmra.mxu1 %v7884_v7  ;;  %2446 = vmatmul.mubr.f32.gmra.mxu0 %v7884_v7  ;;  %v7894_v10 = vpop.f32.mrf.mxu0 }
 0x21e   : > { %2462 = vmatprep.subr.mxu1 %v5048_v6  ;;  %2545 = vmatprep.subr.mxu0 %v5738_v16  ;;  %v5153_v6 = vld [vmem:[%s10679_s3 + $0x1368] sm:$0xff] }
 0x21f   : > { %5164 = vmatprep.mubr.msk.f32.mxu1 %vm924_vm2, %v7838_v4  ;;  %5167 = vmatprep.mubr.msk.f32.mxu0 %vm924_vm2, %v7838_v4  ;;  %v1714_v20 = vpop.f32.mrf.mxu0 }
 0x220   : > { %2463 = vmatpush1.msra.mxu1 %v5047_v18  ;;  %2546 = vmatpush1.msra.mxu0 %v5049_v8  ;;  %v5152_v18 = vld [vmem:[%s10679_s3 + $0x1360] sm:$0xff]  ;;  %v5154_v8 = vld [vmem:[%s10679_s3 + $0x1370] sm:$0xff]  ;;  %v5139_v20 = vld [vmem:[%s10679_s3 + $0x12f8] sm:$0xff] }
 0x221   : > { %2464 = vmatprep.subr.mxu1 %v5041_v12  ;;  %2547 = vmatprep.subr.mxu0 %v5738_v16  ;;  %v5146_v12 = vld [vmem:[%s10679_s3 + $0x1330] sm:$0xff] }
 0x222   : > { %2465 = vmatpush1.msra.mxu1 %v5040_v13  ;;  %2548 = vmatpush1.msra.mxu0 %v5042_v14  ;;  %v5145_v13 = vld [vmem:[%s10679_s3 + $0x1328] sm:$0xff]  ;;  %v5147_v14 = vld [vmem:[%s10679_s3 + $0x1338] sm:$0xff] }
 0x223   : > { %2369 = vmatmul.mubr.f32.gmra.mxu1 %v7866_v1  ;;  %2452 = vmatmul.mubr.f32.gmra.mxu0 %v7866_v1 }
 0x224   : > { %2466 = vmatprep.subr.mxu1 %v5034_v21  ;;  %2549 = vmatprep.subr.mxu0 %v5738_v16  ;;  %v5138_v21 = vld [vmem:[%s10679_s3 + $0x12f0] sm:$0xff] }
 0x225   : > { %2467 = vmatpush1.msra.mxu1 %v5033_v22  ;;  %5168 = vmatprep.mubr.msk.f32.mxu1 %vm924_vm2, %v7517_v55  ;;  %v5140_v22 = vld [vmem:[%s10679_s3 + $0x1300] sm:$0xff] }
 0x226   : > { %2550 = vmatpush1.msra.mxu0 %v5035_v24  ;;  %5171 = vmatprep.mubr.msk.f32.mxu0 %vm924_vm2, %v7517_v55  ;;  %v5013_v55 = vld [vmem:[%s10679_s3 + $0xf08] sm:$0xff]  ;;  %v5132_v24 = vld [vmem:[%s10679_s3 + $0x12c0] sm:$0xff] }
 0x227   : > { %2468 = vmatprep.subr.mxu1 %v5027_v25  ;;  %2551 = vmatprep.subr.mxu0 %v5738_v16  ;;  %v5131_v25 = vld [vmem:[%s10679_s3 + $0x12b8] sm:$0xff] }
 0x228   : > { %2469 = vmatpush1.msra.mxu1 %v5026_v26  ;;  %2552 = vmatpush1.msra.mxu0 %v5028_v27  ;;  %v5133_v26 = vld [vmem:[%s10679_s3 + $0x12c8] sm:$0xff] }
 0x229   : > { %2470 = vmatprep.subr.mxu1 %v5020_v28  ;;  %2553 = vmatprep.subr.mxu0 %v5738_v16  ;;  %v5125_v27 = vld [vmem:[%s10679_s3 + $0x1288] sm:$0xff]  ;;  %v5124_v28 = vld [vmem:[%s10679_s3 + $0x1280] sm:$0xff] }
 0x22a   : > { %2471 = vmatpush1.msra.mxu1 %v5019_v30  ;;  %2554 = vmatpush1.msra.mxu0 %v5021_v31  ;;  %v5126_v30 = vld [vmem:[%s10679_s3 + $0x1290] sm:$0xff] }
 0x22b   : > { %2472 = vmatprep.subr.mxu1 %v5013_v55  ;;  %2555 = vmatprep.subr.mxu0 %v5738_v16  ;;  %v5118_v31 = vld [vmem:[%s10679_s3 + $0x1250] sm:$0xff]  ;;  %v5117_v55 = vld [vmem:[%s10679_s3 + $0x1248] sm:$0xff] }
 0x22c   : > { %2473 = vmatpush1.msra.mxu1 %v5012_v32  ;;  %2556 = vmatpush1.msra.mxu0 %v5014_v33  ;;  %v5119_v32 = vld [vmem:[%s10679_s3 + $0x1258] sm:$0xff] }
 0x22d   : > { %2474 = vmatprep.subr.mxu1 %v5006_v34  ;;  %2557 = vmatprep.subr.mxu0 %v5738_v16  ;;  %v5111_v33 = vld [vmem:[%s10679_s3 + $0x1218] sm:$0xff]  ;;  %v5110_v34 = vld [vmem:[%s10679_s3 + $0x1210] sm:$0xff] }
 0x22e   : > { %2475 = vmatpush1.msra.mxu1 %v5005_v35  ;;  %2558 = vmatpush1.msra.mxu0 %v5007_v36  ;;  %v5112_v35 = vld [vmem:[%s10679_s3 + $0x1220] sm:$0xff] }
 0x22f   : > { %2476 = vmatprep.subr.mxu1 %v4999_v37  ;;  %2559 = vmatprep.subr.mxu0 %v5738_v16  ;;  %v5104_v36 = vld [vmem:[%s10679_s3 + $0x11e0] sm:$0xff]  ;;  %v5103_v37 = vld [vmem:[%s10679_s3 + $0x11d8] sm:$0xff] }
 0x230   : > { %2477 = vmatpush1.msra.mxu1 %v4998_v56  ;;  %2560 = vmatpush1.msra.mxu0 %v5000_v40  ;;  %v5105_v56 = vld [vmem:[%s10679_s3 + $0x11e8] sm:$0xff] }
 0x231   : > { %2478 = vmatprep.subr.mxu1 %v4992_v41  ;;  %2561 = vmatprep.subr.mxu0 %v5738_v16  ;;  %v5097_v40 = vld [vmem:[%s10679_s3 + $0x11a8] sm:$0xff]  ;;  %v5096_v41 = vld [vmem:[%s10679_s3 + $0x11a0] sm:$0xff] }
 0x232   : > { %2479 = vmatpush1.msra.mxu1 %v4991_v42  ;;  %2562 = vmatpush1.msra.mxu0 %v4993_v43  ;;  %v5098_v42 = vld [vmem:[%s10679_s3 + $0x11b0] sm:$0xff] }
 0x233   : > { %2480 = vmatprep.subr.mxu1 %v4985_v44  ;;  %2563 = vmatprep.subr.mxu0 %v5738_v16  ;;  %v5090_v43 = vld [vmem:[%s10679_s3 + $0x1170] sm:$0xff]  ;;  %v5089_v44 = vld [vmem:[%s10679_s3 + $0x1168] sm:$0xff] }
 0x234   : > { %2481 = vmatpush1.msra.mxu1 %v4984_v45  ;;  %2564 = vmatpush1.msra.mxu0 %v4986_v46  ;;  %v5091_v45 = vld [vmem:[%s10679_s3 + $0x1178] sm:$0xff] }
 0x235   : > { %2482 = vmatprep.subr.mxu1 %v4978_v48  ;;  %2565 = vmatprep.subr.mxu0 %v5738_v16  ;;  %v5083_v46 = vld [vmem:[%s10679_s3 + $0x1138] sm:$0xff]  ;;  %v5082_v48 = vld [vmem:[%s10679_s3 + $0x1130] sm:$0xff] }
 0x236   : > { %2483 = vmatpush1.msra.mxu1 %v4977_v51  ;;  %2566 = vmatpush1.msra.mxu0 %v4979_v23  ;;  %v5084_v51 = vld [vmem:[%s10679_s3 + $0x1140] sm:$0xff] }
 0x237   : > { %2484 = vmatprep.subr.mxu1 %v4971_v52  ;;  %2567 = vmatprep.subr.mxu0 %v5738_v16  ;;  %v5076_v23 = vld [vmem:[%s10679_s3 + $0x1100] sm:$0xff]  ;;  %v5075_v52 = vld [vmem:[%s10679_s3 + $0x10f8] sm:$0xff] }
 0x238   : > { %2485 = vmatpush1.msra.mxu1 %v4970_v53  ;;  %2568 = vmatpush1.msra.mxu0 %v4972_v54  ;;  %v5077_v53 = vld [vmem:[%s10679_s3 + $0x1108] sm:$0xff] }
 0x239   : > { %2486 = vmatprep.subr.mxu1 %v4964_v9  ;;  %2569 = vmatprep.subr.mxu0 %v5738_v16  ;;  %v5069_v54 = vld [vmem:[%s10679_s3 + $0x10c8] sm:$0xff]  ;;  %v5068_v9 = vld [vmem:[%s10679_s3 + $0x10c0] sm:$0xff] }
 0x23a   : > { %2487 = vmatpush1.msra.mxu1 %v4963_v57  ;;  %2570 = vmatpush1.msra.mxu0 %v4965_v19  ;;  %v5070_v57 = vld [vmem:[%s10679_s3 + $0x10d0] sm:$0xff]  ;;  %v5280_v19 = vld [vmem:[%s10679_s3 + $0x1700] sm:$0xff] }
 0x23b   : > { %2488 = vmatprep.subr.mxu1 %v4957_v63  ;;  %2571 = vmatprep.subr.mxu0 %v5738_v16  ;;  %v5282_v63 = vld [vmem:[%s10679_s3 + $0x1710] sm:$0xff] }
 0x23c   : > { %2489 = vmatpush1.msra.mxu1 %v4956_v60  ;;  %2572 = vmatpush1.msra.mxu0 %v4958_v0  ;;  %v5279_v60 = vld [vmem:[%s10679_s3 + $0x16f8] sm:$0xff]  ;;  %v5281_v0 = vld [vmem:[%s10679_s3 + $0x1708] sm:$0xff] }
 0x23d   : > { %2494 = vmatprep.subr.mxu1 %v5160_v15  ;;  %2577 = vmatprep.subr.mxu0 %v5738_v16  ;;  %v5273_v15 = vld [vmem:[%s10679_s3 + $0x16c8] sm:$0xff] }
 0x23e   : > { %2495 = vmatpush2.msra.mxu1 %v5159_v39  ;;  %2578 = vmatpush2.msra.mxu0 %v5161_v50  ;;  %v5275_v39 = vld [vmem:[%s10679_s3 + $0x16d8] sm:$0xff]  ;;  %v5274_v50 = vld [vmem:[%s10679_s3 + $0x16d0] sm:$0xff] }
 0x23f   : > { %2496 = vmatprep.subr.mxu1 %v5153_v6  ;;  %2579 = vmatprep.subr.mxu0 %v5738_v16  ;;  %v5266_v6 = vld [vmem:[%s10679_s3 + $0x1690] sm:$0xff] }
 0x240   : > { %2497 = vmatpush2.msra.mxu1 %v5152_v18  ;;  %2580 = vmatpush2.msra.mxu0 %v5154_v8  ;;  %v5265_v18 = vld [vmem:[%s10679_s3 + $0x1688] sm:$0xff]  ;;  %v5267_v8 = vld [vmem:[%s10679_s3 + $0x1698] sm:$0xff] }
 0x241   : > { %2498 = vmatprep.subr.mxu1 %v5146_v12  ;;  %2581 = vmatprep.subr.mxu0 %v5738_v16  ;;  %v5259_v12 = vld [vmem:[%s10679_s3 + $0x1658] sm:$0xff] }
 0x242   : > { %2499 = vmatpush2.msra.mxu1 %v5145_v13  ;;  %2582 = vmatpush2.msra.mxu0 %v5147_v14  ;;  %v5261_v13 = vld [vmem:[%s10679_s3 + $0x1668] sm:$0xff]  ;;  %v5260_v14 = vld [vmem:[%s10679_s3 + $0x1660] sm:$0xff] }
 0x243   : > { %2500 = vmatprep.subr.mxu1 %v5139_v20  ;;  %2583 = vmatprep.subr.mxu0 %v5738_v16  ;;  %v2643_v20 = vld [vmem:[#allocation2 + $0x8] sm:$0xf8] }
 0x244   : > { %2501 = vmatpush2.msra.mxu1 %v5138_v21  ;;  %2584 = vmatpush2.msra.mxu0 %v5140_v22  ;;  %v8237_v21 = vld [vmem:[#allocation2 + $0x18] sm:$0xff] }
 0x245   : > { %2502 = vmatprep.subr.mxu1 %v5132_v24  ;;  %2585 = vmatprep.subr.mxu0 %v5738_v16  ;;  %v2866_v22 = vrot.slane %v8237_v21, 3  ;;  %v5254_v24 = vld [vmem:[%s10679_s3 + $0x1630] sm:$0xff] }
 0x246   : > { %2503 = vmatpush2.msra.mxu1 %v5131_v25  ;;  %2586 = vmatpush2.msra.mxu0 %v5133_v26  ;;  %v5251_v25 = vld [vmem:[%s10679_s3 + $0x1618] sm:$0xff]  ;;  %v2865_v26 = vrot.slane %v2643_v20, 3  ;;  %v5174_v20 = vld [vmem:[%s10679_s3 + $0x13b0] sm:$0xff] }
 0x247   : > { %2504 = vmatprep.subr.mxu1 %v5125_v27  ;;  %2587 = vmatprep.subr.mxu0 %v5738_v16  ;;  %v5253_v27 = vld [vmem:[%s10679_s3 + $0x1628] sm:$0xff]  ;;  %v5278_v21 = vld [vmem:[%s10679_s3 + $0x16f0] sm:$0xff] }
 0x248   : > { %2505 = vmatpush2.msra.mxu1 %v5124_v28  ;;  %2588 = vmatpush2.msra.mxu0 %v5126_v30  ;;  %v8257_v28 = vsel %vm2861_vm5, %v2865_v26, %v2866_v22  ;;  %v5245_v30 = vld [vmem:[%s10679_s3 + $0x15e8] sm:$0xff] }
 0x249   : > { %2506 = vmatprep.subr.mxu1 %v5118_v31  ;;  %2589 = vmatprep.subr.mxu0 %v5738_v16  ;;  %v5244_v31 = vld [vmem:[%s10679_s3 + $0x15e0] sm:$0xff]  ;;  %v5377_v26 = vld [vmem:[%s10679_s3 + $0x1a08] sm:$0xff] }
 0x24a   : > { %2507 = vmatpush2.msra.mxu1 %v5117_v55  ;;  %2590 = vmatpush2.msra.mxu0 %v5119_v32  ;;  %v5246_v55 = vld [vmem:[%s10679_s3 + $0x15f0] sm:$0xff] }
 0x24b   : > { %2508 = vmatprep.subr.mxu1 %v5111_v33  ;;  %2591 = vmatprep.subr.mxu0 %v5738_v16  ;;  %v5238_v32 = vld [vmem:[%s10679_s3 + $0x15b0] sm:$0xff]  ;;  %v5240_v33 = vld [vmem:[%s10679_s3 + $0x15c0] sm:$0xff] }
 0x24c   : > { %2509 = vmatpush2.msra.mxu1 %v5110_v34  ;;  %2592 = vmatpush2.msra.mxu0 %v5112_v35  ;;  %v5237_v34 = vld [vmem:[%s10679_s3 + $0x15a8] sm:$0xff]  ;;  %v5239_v35 = vld [vmem:[%s10679_s3 + $0x15b8] sm:$0xff] }
 0x24d   : > { %2510 = vmatprep.subr.mxu1 %v5104_v36  ;;  %2593 = vmatprep.subr.mxu0 %v5738_v16  ;;  %v5231_v36 = vld [vmem:[%s10679_s3 + $0x1578] sm:$0xff] }
 0x24e   : > { %2511 = vmatpush2.msra.mxu1 %v5103_v37  ;;  %2594 = vmatpush2.msra.mxu0 %v5105_v56  ;;  %v5233_v37 = vld [vmem:[%s10679_s3 + $0x1588] sm:$0xff]  ;;  %v5230_v56 = vld [vmem:[%s10679_s3 + $0x1570] sm:$0xff] }
 0x24f   : > { %2512 = vmatprep.subr.mxu1 %v5097_v40  ;;  %2595 = vmatprep.subr.mxu0 %v5738_v16  ;;  %v5232_v40 = vld [vmem:[%s10679_s3 + $0x1580] sm:$0xff] }
 0x250   : > { %2513 = vmatpush2.msra.mxu1 %v5096_v41  ;;  %2596 = vmatpush2.msra.mxu0 %v5098_v42  ;;  %v5224_v41 = vld [vmem:[%s10679_s3 + $0x1540] sm:$0xff]  ;;  %v5226_v42 = vld [vmem:[%s10679_s3 + $0x1550] sm:$0xff] }
 0x251   : > { %2514 = vmatprep.subr.mxu1 %v5090_v43  ;;  %2597 = vmatprep.subr.mxu0 %v5738_v16  ;;  %v5223_v43 = vld [vmem:[%s10679_s3 + $0x1538] sm:$0xff] }
 0x252   : > { %2515 = vmatpush2.msra.mxu1 %v5089_v44  ;;  %2598 = vmatpush2.msra.mxu0 %v5091_v45  ;;  %v5225_v44 = vld [vmem:[%s10679_s3 + $0x1548] sm:$0xff] }
 0x253   : > { %2516 = vmatprep.subr.mxu1 %v5083_v46  ;;  %2599 = vmatprep.subr.mxu0 %v5738_v16  ;;  %v5217_v45 = vld [vmem:[%s10679_s3 + $0x1508] sm:$0xff]  ;;  %v5219_v46 = vld [vmem:[%s10679_s3 + $0x1518] sm:$0xff] }
 0x254   : > { %2517 = vmatpush2.msra.mxu1 %v5082_v48  ;;  %2600 = vmatpush2.msra.mxu0 %v5084_v51  ;;  %v5216_v48 = vld [vmem:[%s10679_s3 + $0x1500] sm:$0xff]  ;;  %v5218_v51 = vld [vmem:[%s10679_s3 + $0x1510] sm:$0xff] }
 0x255   : > { %2518 = vmatprep.subr.mxu1 %v5076_v23  ;;  %2601 = vmatprep.subr.mxu0 %v5738_v16  ;;  %v5210_v23 = vld [vmem:[%s10679_s3 + $0x14d0] sm:$0xff] }
 0x256   : > { %2519 = vmatpush2.msra.mxu1 %v5075_v52  ;;  %2602 = vmatpush2.msra.mxu0 %v5077_v53  ;;  %v5212_v52 = vld [vmem:[%s10679_s3 + $0x14e0] sm:$0xff]  ;;  %v5209_v53 = vld [vmem:[%s10679_s3 + $0x14c8] sm:$0xff] }
 0x257   : > { %2520 = vmatprep.subr.mxu1 %v5069_v54  ;;  %2603 = vmatprep.subr.mxu0 %v5738_v16  ;;  %v5211_v54 = vld [vmem:[%s10679_s3 + $0x14d8] sm:$0xff] }
 0x258   : > { %2521 = vmatpush2.msra.mxu1 %v5068_v9  ;;  %2604 = vmatpush2.msra.mxu0 %v5070_v57  ;;  %v5203_v9 = vld [vmem:[%s10679_s3 + $0x1498] sm:$0xff]  ;;  %v5205_v57 = vld [vmem:[%s10679_s3 + $0x14a8] sm:$0xff] }
 0x259   : > { %2523 = vmatmul.mubr.f32.vlgmr.msra.gmra.mxu1 %v7844_v59  ;;  %2606 = vmatmul.mubr.f32.vlgmr.msra.gmra.mxu0 %v7844_v59  ;;  %v5272_v59 = vld [vmem:[%s10679_s3 + $0x16c0] sm:$0xff] }
 0x25a   : > { %2881 = vmatprep.subr.mxu1 %v5280_v19  ;;  %2964 = vmatprep.subr.mxu0 %v5282_v63  ;;  %v5202_v19 = vld [vmem:[%s10679_s3 + $0x1490] sm:$0xff]  ;;  %v5204_v63 = vld [vmem:[%s10679_s3 + $0x14a0] sm:$0xff] }
 0x25b   : > { %5169 = vmatprep.mubr.msk.f32.mxu1 %vm924_vm2, %v7861_v62  ;;  %5172 = vmatprep.mubr.msk.f32.mxu0 %vm924_vm2, %v7861_v62  ;;  %v5268_v62 = vld [vmem:[%s10679_s3 + $0x16a0] sm:$0xff] }
 0x25c   : > { %2882 = vmatpush1.msra.mxu1 %v5279_v60  ;;  %2965 = vmatpush1.msra.mxu0 %v5281_v0  ;;  %v5196_v60 = vld [vmem:[%s10679_s3 + $0x1460] sm:$0xff]  ;;  %v5198_v0 = vld [vmem:[%s10679_s3 + $0x1470] sm:$0xff] }
 0x25d   : > { %2883 = vmatprep.subr.mxu1 %v5273_v15  ;;  %2966 = vmatprep.subr.mxu0 %v5275_v39  ;;  %v5195_v15 = vld [vmem:[%s10679_s3 + $0x1458] sm:$0xff]  ;;  %v5197_v39 = vld [vmem:[%s10679_s3 + $0x1468] sm:$0xff] }
 0x25e   : > { %2884 = vmatpush1.msra.mxu1 %v5272_v59  ;;  %2967 = vmatpush1.msra.mxu0 %v5274_v50  ;;  %v5189_v59 = vld [vmem:[%s10679_s3 + $0x1428] sm:$0xff]  ;;  %v5191_v50 = vld [vmem:[%s10679_s3 + $0x1438] sm:$0xff] }
 0x25f   : > { %2529 = vmatmul.mubr.f32.gmra.mxu1 %v7884_v7  ;;  %2611 = vmatmul.mubr.f32.gmra.mxu0 %v7884_v7  ;;  %v5258_v7 = vld [vmem:[%s10679_s3 + $0x1650] sm:$0xff] }
 0x260   : > { %2885 = vmatprep.subr.mxu1 %v5266_v6  ;;  %2968 = vmatprep.subr.mxu0 %v5268_v62  ;;  %v5188_v6 = vld [vmem:[%s10679_s3 + $0x1420] sm:$0xff]  ;;  %v5190_v62 = vld [vmem:[%s10679_s3 + $0x1430] sm:$0xff] }
 0x261   : > { %5170 = vmatprep.mubr.msk.f32.mxu1 %vm924_vm2, %v7838_v4  ;;  %5173 = vmatprep.mubr.msk.f32.mxu0 %vm924_vm2, %v7838_v4  ;;  %v5252_v4 = vld [vmem:[%s10679_s3 + $0x1620] sm:$0xff] }
 0x262   : > { %2886 = vmatpush1.msra.mxu1 %v5265_v18  ;;  %2969 = vmatpush1.msra.mxu0 %v5267_v8  ;;  %v5182_v18 = vld [vmem:[%s10679_s3 + $0x13f0] sm:$0xff]  ;;  %v5184_v8 = vld [vmem:[%s10679_s3 + $0x1400] sm:$0xff] }
 0x263   : > { %2887 = vmatprep.subr.mxu1 %v5259_v12  ;;  %2970 = vmatprep.subr.mxu0 %v5261_v13  ;;  %v5181_v12 = vld [vmem:[%s10679_s3 + $0x13e8] sm:$0xff]  ;;  %v5183_v13 = vld [vmem:[%s10679_s3 + $0x13f8] sm:$0xff] }
 0x264   : > { %2888 = vmatpush1.msra.mxu1 %v5258_v7  ;;  %2971 = vmatpush1.msra.mxu0 %v5260_v14  ;;  %v5175_v7 = vld [vmem:[%s10679_s3 + $0x13b8] sm:$0xff]  ;;  %v5177_v14 = vld [vmem:[%s10679_s3 + $0x13c8] sm:$0xff] }
 0x265   : > { %2535 = vmatmul.mubr.f32.gmra.mxu1 %v7866_v1  ;;  %2616 = vmatmul.mubr.f32.gmra.mxu0 %v7866_v1  ;;  %v5247_v1 = vld [vmem:[%s10679_s3 + $0x15f8] sm:$0xff] }
 0x266   : > { %2889 = vmatprep.subr.mxu1 %v5252_v4  ;;  %2972 = vmatprep.subr.mxu0 %v5254_v24  ;;  %v5176_v4 = vld [vmem:[%s10679_s3 + $0x13c0] sm:$0xff]  ;;  %v5378_v24 = vld [vmem:[%s10679_s3 + $0x1a10] sm:$0xff] }
 0x267   : > { %2890 = vmatpush1.msra.mxu1 %v5251_v25  ;;  %5384 = vmatprep.mubr.msk.f32.mxu1 %vm924_vm2, %v8257_v28  ;;  %v5380_v25 = vld [vmem:[%s10679_s3 + $0x1a20] sm:$0xff] }
 0x268   : > { %2973 = vmatpush1.msra.mxu0 %v5253_v27  ;;  %5387 = vmatprep.mubr.msk.f32.mxu0 %vm924_vm2, %v8257_v28  ;;  %v5379_v27 = vld [vmem:[%s10679_s3 + $0x1a18] sm:$0xff] }
 0x269   : > { %2891 = vmatprep.subr.mxu1 %v5245_v30  ;;  %2974 = vmatprep.subr.mxu0 %v5247_v1  ;;  %v5371_v30 = vld [vmem:[%s10679_s3 + $0x19d8] sm:$0xff]  ;;  %v5373_v1 = vld [vmem:[%s10679_s3 + $0x19e8] sm:$0xff] }
 0x26a   : > { %2892 = vmatpush1.msra.mxu1 %v5244_v31  ;;  %2975 = vmatpush1.msra.mxu0 %v5246_v55  ;;  %v8413_v31 = vpop.f32.mrf.mxu0  ;;  %v5370_v55 = vld [vmem:[%s10679_s3 + $0x19d0] sm:$0xff] }
 0x26b   : > { %2893 = vmatprep.subr.mxu1 %v5238_v32  ;;  %2976 = vmatprep.subr.mxu0 %v5240_v33  ;;  %v5372_v32 = vld [vmem:[%s10679_s3 + $0x19e0] sm:$0xff] }
 0x26c   : > { %2894 = vmatpush1.msra.mxu1 %v5237_v34  ;;  %2977 = vmatpush1.msra.mxu0 %v5239_v35  ;;  %v5364_v33 = vld [vmem:[%s10679_s3 + $0x19a0] sm:$0xff]  ;;  %v5366_v34 = vld [vmem:[%s10679_s3 + $0x19b0] sm:$0xff]  ;;  %v5363_v35 = vld [vmem:[%s10679_s3 + $0x1998] sm:$0xff] }
 0x26d   : > { %2895 = vmatprep.subr.mxu1 %v5231_v36  ;;  %2978 = vmatprep.subr.mxu0 %v5233_v37  ;;  %v5365_v36 = vld [vmem:[%s10679_s3 + $0x19a8] sm:$0xff] }
 0x26e   : > { %2896 = vmatpush1.msra.mxu1 %v5230_v56  ;;  %2979 = vmatpush1.msra.mxu0 %v5232_v40  ;;  %v5357_v37 = vld [vmem:[%s10679_s3 + $0x1968] sm:$0xff]  ;;  %v5359_v56 = vld [vmem:[%s10679_s3 + $0x1978] sm:$0xff]  ;;  %v8439_v40 = vpop.f32.mrf.mxu0 }
 0x26f   : > { %2897 = vmatprep.subr.mxu1 %v5224_v41  ;;  %2980 = vmatprep.subr.mxu0 %v5226_v42  ;;  %v5356_v41 = vld [vmem:[%s10679_s3 + $0x1960] sm:$0xff]  ;;  %v5358_v42 = vld [vmem:[%s10679_s3 + $0x1970] sm:$0xff] }
 0x270   : > { %2898 = vmatpush1.msra.mxu1 %v5223_v43  ;;  %2981 = vmatpush1.msra.mxu0 %v5225_v44  ;;  %v5350_v43 = vld [vmem:[%s10679_s3 + $0x1930] sm:$0xff]  ;;  %v5352_v44 = vld [vmem:[%s10679_s3 + $0x1940] sm:$0xff] }
 0x271   : > { %2899 = vmatprep.subr.mxu1 %v5217_v45  ;;  %2982 = vmatprep.subr.mxu0 %v5219_v46  ;;  %v5349_v45 = vld [vmem:[%s10679_s3 + $0x1928] sm:$0xff]  ;;  %v5351_v46 = vld [vmem:[%s10679_s3 + $0x1938] sm:$0xff] }
 0x272   : > { %2900 = vmatpush1.msra.mxu1 %v5216_v48  ;;  %2983 = vmatpush1.msra.mxu0 %v5218_v51  ;;  %v5343_v48 = vld [vmem:[%s10679_s3 + $0x18f8] sm:$0xff]  ;;  %v5345_v51 = vld [vmem:[%s10679_s3 + $0x1908] sm:$0xff] }
 0x273   : > { %2901 = vmatprep.subr.mxu1 %v5210_v23  ;;  %2984 = vmatprep.subr.mxu0 %v5212_v52  ;;  %v8465_v23 = vpop.f32.mrf.mxu0  ;;  %v5342_v52 = vld [vmem:[%s10679_s3 + $0x18f0] sm:$0xff] }
 0x274   : > { %2902 = vmatpush1.msra.mxu1 %v5209_v53  ;;  %2985 = vmatpush1.msra.mxu0 %v5211_v54  ;;  %v5344_v53 = vld [vmem:[%s10679_s3 + $0x1900] sm:$0xff] }
 0x275   : > { %2903 = vmatprep.subr.mxu1 %v5203_v9  ;;  %2986 = vmatprep.subr.mxu0 %v5205_v57  ;;  %v5336_v54 = vld [vmem:[%s10679_s3 + $0x18c0] sm:$0xff]  ;;  %v5338_v9 = vld [vmem:[%s10679_s3 + $0x18d0] sm:$0xff]  ;;  %v5335_v57 = vld [vmem:[%s10679_s3 + $0x18b8] sm:$0xff] }
 0x276   : > { %2904 = vmatpush1.msra.mxu1 %v5202_v19  ;;  %2987 = vmatpush1.msra.mxu0 %v5204_v63  ;;  %v5337_v19 = vld [vmem:[%s10679_s3 + $0x18c8] sm:$0xff] }
 0x277   : > { %2905 = vmatprep.subr.mxu1 %v5196_v60  ;;  %2988 = vmatprep.subr.mxu0 %v5198_v0  ;;  %v5329_v63 = vld [vmem:[%s10679_s3 + $0x1888] sm:$0xff]  ;;  %v5331_v60 = vld [vmem:[%s10679_s3 + $0x1898] sm:$0xff]  ;;  %v8491_v0 = vpop.f32.mrf.mxu0 }
 0x278   : > { %2906 = vmatpush1.msra.mxu1 %v5195_v15  ;;  %2989 = vmatpush1.msra.mxu0 %v5197_v39  ;;  %v5328_v15 = vld [vmem:[%s10679_s3 + $0x1880] sm:$0xff]  ;;  %v5330_v39 = vld [vmem:[%s10679_s3 + $0x1890] sm:$0xff] }
 0x279   : > { %2907 = vmatprep.subr.mxu1 %v5189_v59  ;;  %2990 = vmatprep.subr.mxu0 %v5191_v50  ;;  %v5322_v59 = vld [vmem:[%s10679_s3 + $0x1850] sm:$0xff]  ;;  %v5324_v50 = vld [vmem:[%s10679_s3 + $0x1860] sm:$0xff] }
 0x27a   : > { %2908 = vmatpush1.msra.mxu1 %v5188_v6  ;;  %2991 = vmatpush1.msra.mxu0 %v5190_v62  ;;  %v5321_v6 = vld [vmem:[%s10679_s3 + $0x1848] sm:$0xff]  ;;  %v5323_v62 = vld [vmem:[%s10679_s3 + $0x1858] sm:$0xff] }
 0x27b   : > { %2909 = vmatprep.subr.mxu1 %v5182_v18  ;;  %2992 = vmatprep.subr.mxu0 %v5184_v8  ;;  %v5315_v18 = vld [vmem:[%s10679_s3 + $0x1818] sm:$0xff]  ;;  %v5317_v8 = vld [vmem:[%s10679_s3 + $0x1828] sm:$0xff] }
 0x27c   : > { %2910 = vmatpush1.msra.mxu1 %v5181_v12  ;;  %2993 = vmatpush1.msra.mxu0 %v5183_v13  ;;  %v8517_v12 = vpop.f32.mrf.mxu0  ;;  %v5314_v13 = vld [vmem:[%s10679_s3 + $0x1810] sm:$0xff] }
 0x27d   : > { %2911 = vmatprep.subr.mxu1 %v5175_v7  ;;  %2994 = vmatprep.subr.mxu0 %v5177_v14  ;;  %v5316_v7 = vld [vmem:[%s10679_s3 + $0x1820] sm:$0xff] }
 0x27e   : > { %2912 = vmatpush1.msra.mxu1 %v5174_v20  ;;  %2995 = vmatpush1.msra.mxu0 %v5176_v4  ;;  %v5308_v14 = vld [vmem:[%s10679_s3 + $0x17e0] sm:$0xff]  ;;  %v5310_v20 = vld [vmem:[%s10679_s3 + $0x17f0] sm:$0xff]  ;;  %v5307_v4 = vld [vmem:[%s10679_s3 + $0x17d8] sm:$0xff] }
 0x27f   : > { %2917 = vmatprep.subr.mxu1 %v5378_v24  ;;  %3000 = vmatprep.subr.mxu0 %v5380_v25  ;;  %v5309_v24 = vld [vmem:[%s10679_s3 + $0x17e8] sm:$0xff] }
 0x280   : > { %2918 = vmatpush2.msra.mxu1 %v5377_v26  ;;  %3001 = vmatpush2.msra.mxu0 %v5379_v27  ;;  %v5301_v25 = vld [vmem:[%s10679_s3 + $0x17a8] sm:$0xff]  ;;  %v5303_v26 = vld [vmem:[%s10679_s3 + $0x17b8] sm:$0xff]  ;;  %v8543_v27 = vpop.f32.mrf.mxu0 }
 0x281   : > { %2919 = vmatprep.subr.mxu1 %v5371_v30  ;;  %3002 = vmatprep.subr.mxu0 %v5373_v1  ;;  %v5300_v30 = vld [vmem:[%s10679_s3 + $0x17a0] sm:$0xff]  ;;  %v5302_v1 = vld [vmem:[%s10679_s3 + $0x17b0] sm:$0xff] }
 0x282   : > { %2920 = vmatpush2.msra.mxu1 %v5370_v55  ;;  %3003 = vmatpush2.msra.mxu0 %v5372_v32  ;;  %v2642_v55 = vld [vmem:[#allocation2] sm:$0xf8]  ;;  %v5294_v32 = vld [vmem:[%s10679_s3 + $0x1770] sm:$0xff] }
 0x283   : > { %2921 = vmatprep.subr.mxu1 %v5364_v33  ;;  %3004 = vmatprep.subr.mxu0 %v5366_v34  ;;  %v5296_v33 = vld [vmem:[%s10679_s3 + $0x1780] sm:$0xff]  ;;  %v5293_v34 = vld [vmem:[%s10679_s3 + $0x1768] sm:$0xff] }
 0x284   : > { %2922 = vmatpush2.msra.mxu1 %v5363_v35  ;;  %3005 = vmatpush2.msra.mxu0 %v5365_v36  ;;  %v5295_v35 = vld [vmem:[%s10679_s3 + $0x1778] sm:$0xff]  ;;  %v2645_v36 = vld [vmem:[#allocation2 + $0x28] sm:$0x7f] }
 0x285   : > { %2923 = vmatprep.subr.mxu1 %v5357_v37  ;;  %3006 = vmatprep.subr.mxu0 %v5359_v56  ;;  %v5287_v56 = vld [vmem:[%s10679_s3 + $0x1738] sm:$0xff] }
 0x286   : > { %2924 = vmatpush2.msra.mxu1 %v5356_v41  ;;  %3007 = vmatpush2.msra.mxu0 %v5358_v42  ;;  %v5289_v41 = vld [vmem:[%s10679_s3 + $0x1748] sm:$0xff]  ;;  %v2862_v42 = vrot.slane %v2642_v55, 3  ;;  %v8678_v55 = vpop.f32.mrf.mxu1 }
 0x287   : > { %2925 = vmatprep.subr.mxu1 %v5350_v43  ;;  %3008 = vmatprep.subr.mxu0 %v5352_v44  ;;  %v5286_v43 = vld [vmem:[%s10679_s3 + $0x1730] sm:$0xff]  ;;  %v5288_v44 = vld [vmem:[%s10679_s3 + $0x1740] sm:$0xff] }
 0x288   : > { %2926 = vmatpush2.msra.mxu1 %v5349_v45  ;;  %3009 = vmatpush2.msra.mxu0 %v5351_v46  ;;  %v5673_v46 = vld [vmem:[#allocation2 + $0x10] sm:$0xff] }
 0x289   : > { %2927 = vmatprep.subr.mxu1 %v5343_v48  ;;  %3010 = vmatprep.subr.mxu0 %v5345_v51  ;;  %v2863_v48 = vrot.slane %v5673_v46, 3  ;;  %v8577_v51 = vrot.slane %v2645_v36, 3  ;;  %v5228_v36 = vld [vmem:[%s10679_s3 + $0x1560] sm:$0xff]  ;;  %v5214_v46 = vld [vmem:[%s10679_s3 + $0x14f0] sm:$0xff] }
 0x28a   : > { %2928 = vmatpush2.msra.mxu1 %v5342_v52  ;;  %3011 = vmatpush2.msra.mxu0 %v5344_v53  ;;  %v5284_v52 = vld [vmem:[%s10679_s3 + $0x1720] sm:$0xff] }
 0x28b   : > { %2929 = vmatprep.subr.mxu1 %v5336_v54  ;;  %3012 = vmatprep.subr.mxu0 %v5338_v9  ;;  %v2644_v53 = vld [vmem:[#allocation2 + $0x20] sm:$0x7f]  ;;  %v8583_v54 = vsel %vm2861_vm5, %v2862_v42, %v2863_v48  ;;  %v5283_v9 = vld [vmem:[%s10679_s3 + $0x1718] sm:$0xff]  ;;  %v5229_v42 = vld [vmem:[%s10679_s3 + $0x1568] sm:$0xff] }
 0x28c   : > { %2930 = vmatpush2.msra.mxu1 %v5335_v57  ;;  %3013 = vmatpush2.msra.mxu0 %v5337_v19  ;;  %v5285_v57 = vld [vmem:[%s10679_s3 + $0x1728] sm:$0xff] }
 0x28d   : > { %2931 = vmatprep.subr.mxu1 %v5329_v63  ;;  %3014 = vmatprep.subr.mxu0 %v5331_v60  ;;  %v8600_v63 = vsel %vm2861_vm5, %v2866_v22, %v8577_v51  ;;  %v5277_v60 = vld [vmem:[%s10679_s3 + $0x16e8] sm:$0xff] }
 0x28e   : > { %2932 = vmatpush2.msra.mxu1 %v5328_v15  ;;  %3015 = vmatpush2.msra.mxu0 %v5330_v39  ;;  %v8605_v15 = vrot.slane %v2644_v53, 3  ;;  %v5276_v39 = vld [vmem:[%s10679_s3 + $0x16e0] sm:$0xff]  ;;  %v5215_v53 = vld [vmem:[%s10679_s3 + $0x14f8] sm:$0xff] }
 0x28f   : > { %2933 = vmatprep.subr.mxu1 %v5322_v59  ;;  %3016 = vmatprep.subr.mxu0 %v5324_v50  ;;  %v5270_v59 = vld [vmem:[%s10679_s3 + $0x16b0] sm:$0xff] }
 0x290   : > { %2934 = vmatpush2.msra.mxu1 %v5321_v6  ;;  %3017 = vmatpush2.msra.mxu0 %v5323_v62  ;;  %v8623_v50 = vsel %vm2861_vm5, %v2863_v48, %v8605_v15  ;;  %v5269_v6 = vld [vmem:[%s10679_s3 + $0x16a8] sm:$0xff]  ;;  %v5271_v62 = vld [vmem:[%s10679_s3 + $0x16b8] sm:$0xff] }
 0x291   : > { %2935 = vmatprep.subr.mxu1 %v5315_v18  ;;  %3018 = vmatprep.subr.mxu0 %v5317_v8  ;;  %v5263_v8 = vld [vmem:[%s10679_s3 + $0x1678] sm:$0xff] }
 0x292   : > { %2936 = vmatpush2.msra.mxu1 %v5314_v13  ;;  %3019 = vmatpush2.msra.mxu0 %v5316_v7  ;;  %v5262_v13 = vld [vmem:[%s10679_s3 + $0x1670] sm:$0xff]  ;;  %v5264_v7 = vld [vmem:[%s10679_s3 + $0x1680] sm:$0xff] }
 0x293   : > { %2937 = vmatprep.subr.mxu1 %v5308_v14  ;;  %3020 = vmatprep.subr.mxu0 %v5310_v20  ;;  %v5256_v20 = vld [vmem:[%s10679_s3 + $0x1640] sm:$0xff] }
 0x294   : > { %2938 = vmatpush2.msra.mxu1 %v5307_v4  ;;  %3021 = vmatpush2.msra.mxu0 %v5309_v24  ;;  %v5255_v4 = vld [vmem:[%s10679_s3 + $0x1638] sm:$0xff]  ;;  %v5257_v24 = vld [vmem:[%s10679_s3 + $0x1648] sm:$0xff] }
 0x295   : > { %2939 = vmatprep.subr.mxu1 %v5301_v25  ;;  %3022 = vmatprep.subr.mxu0 %v5303_v26  ;;  %v8563_v37 = vpop.f32.mrf.mxu0  ;;  %v5249_v25 = vld [vmem:[%s10679_s3 + $0x1608] sm:$0xff]  ;;  %v5248_v26 = vld [vmem:[%s10679_s3 + $0x1600] sm:$0xff] }
 0x296   : > { %2940 = vmatpush2.msra.mxu1 %v5300_v30  ;;  %3023 = vmatpush2.msra.mxu0 %v5302_v1  ;;  %v5250_v30 = vld [vmem:[%s10679_s3 + $0x1610] sm:$0xff] }
 0x297   : > { %2941 = vmatprep.subr.mxu1 %v5294_v32  ;;  %3024 = vmatprep.subr.mxu0 %v5296_v33  ;;  %v2041_v45 = vpop.f32.mrf.mxu0  ;;  %v5242_v1 = vld [vmem:[%s10679_s3 + $0x15d0] sm:$0xff]  ;;  %v5241_v32 = vld [vmem:[%s10679_s3 + $0x15c8] sm:$0xff]  ;;  %v5243_v33 = vld [vmem:[%s10679_s3 + $0x15d8] sm:$0xff] }
 0x298   : > { %2942 = vmatpush2.msra.mxu1 %v5293_v34  ;;  %3025 = vmatpush2.msra.mxu0 %v5295_v35  ;;  %v5234_v34 = vld [vmem:[%s10679_s3 + $0x1590] sm:$0xff]  ;;  %v5236_v35 = vld [vmem:[%s10679_s3 + $0x15a0] sm:$0xff] }
 0x299   : > { %2943 = vmatprep.subr.mxu1 %v5287_v56  ;;  %3026 = vmatprep.subr.mxu0 %v5289_v41  ;;  %v8700_v56 = vpop.f32.mrf.mxu1  ;;  %v5227_v41 = vld [vmem:[%s10679_s3 + $0x1558] sm:$0xff]  ;;  %v5222_v45 = vld [vmem:[%s10679_s3 + $0x1530] sm:$0xff] }
 0x29a   : > { %2944 = vmatpush2.msra.mxu1 %v5286_v43  ;;  %3027 = vmatpush2.msra.mxu0 %v5288_v44  ;;  %v5221_v43 = vld [vmem:[%s10679_s3 + $0x1528] sm:$0xff]  ;;  %v5220_v44 = vld [vmem:[%s10679_s3 + $0x1520] sm:$0xff] }
 0x29b   : > { %2946 = vmatmul.mubr.f32.vlgmr.msra.gmra.mxu1 %v8583_v54  ;;  %3029 = vmatmul.mubr.f32.vlgmr.msra.gmra.mxu0 %v8583_v54  ;;  %v8593_v19 = vpop.f32.mrf.mxu0  ;;  %v8722_v48 = vpop.f32.mrf.mxu1 }
 0x29c   : > { %3047 = vmatprep.subr.mxu1 %v5284_v52  ;;  %3130 = vmatprep.subr.mxu0 %v5738_v16  ;;  %v5213_v52 = vld [vmem:[%s10679_s3 + $0x14e8] sm:$0xff] }
 0x29d   : > { %5385 = vmatprep.mubr.msk.f32.mxu1 %vm924_vm2, %v8600_v63  ;;  %5388 = vmatprep.mubr.msk.f32.mxu0 %vm924_vm2, %v8600_v63  ;;  %v2046_v22 = vpop.f32.mrf.mxu0 }
 0x29e   : > { %3048 = vmatpush1.msra.mxu1 %v5283_v9  ;;  %3131 = vmatpush1.msra.mxu0 %v5285_v57  ;;  %v5207_v9 = vld [vmem:[%s10679_s3 + $0x14b8] sm:$0xff]  ;;  %v5206_v57 = vld [vmem:[%s10679_s3 + $0x14b0] sm:$0xff] }
 0x29f   : > { %3049 = vmatprep.subr.mxu1 %v5277_v60  ;;  %3132 = vmatprep.subr.mxu0 %v5738_v16  ;;  %v5208_v60 = vld [vmem:[%s10679_s3 + $0x14c0] sm:$0xff]  ;;  %v5199_v22 = vld [vmem:[%s10679_s3 + $0x1478] sm:$0xff] }
 0x2a0   : > { %3050 = vmatpush1.msra.mxu1 %v5276_v39  ;;  %3133 = vmatpush1.msra.mxu0 %v5278_v21  ;;  %v5200_v39 = vld [vmem:[%s10679_s3 + $0x1480] sm:$0xff]  ;;  %v8744_v21 = vpop.f32.mrf.mxu1 }
 0x2a1   : > { %2952 = vmatmul.mubr.f32.gmra.mxu1 %v8623_v50  ;;  %3035 = vmatmul.mubr.f32.gmra.mxu0 %v8623_v50  ;;  %v8633_v18 = vpop.f32.mrf.mxu0 }
 0x2a2   : > { %3051 = vmatprep.subr.mxu1 %v5270_v59  ;;  %3134 = vmatprep.subr.mxu0 %v5738_v16  ;;  %v5201_v59 = vld [vmem:[%s10679_s3 + $0x1488] sm:$0xff] }
 0x2a3   : > { %5386 = vmatprep.mubr.msk.f32.mxu1 %vm924_vm2, %v8577_v51  ;;  %5389 = vmatprep.mubr.msk.f32.mxu0 %vm924_vm2, %v8577_v51  ;;  %v2051_v14 = vpop.f32.mrf.mxu0 }
 0x2a4   : > { %3052 = vmatpush1.msra.mxu1 %v5269_v6  ;;  %3135 = vmatpush1.msra.mxu0 %v5271_v62  ;;  %v5193_v6 = vld [vmem:[%s10679_s3 + $0x1448] sm:$0xff]  ;;  %v5192_v62 = vld [vmem:[%s10679_s3 + $0x1440] sm:$0xff] }
 0x2a5   : > { %3053 = vmatprep.subr.mxu1 %v5263_v8  ;;  %3136 = vmatprep.subr.mxu0 %v5738_v16  ;;  %v5194_v8 = vld [vmem:[%s10679_s3 + $0x1450] sm:$0xff]  ;;  %v5185_v14 = vld [vmem:[%s10679_s3 + $0x1408] sm:$0xff] }
 0x2a6   : > { %3054 = vmatpush1.msra.mxu1 %v5262_v13  ;;  %3137 = vmatpush1.msra.mxu0 %v5264_v7  ;;  %v5186_v13 = vld [vmem:[%s10679_s3 + $0x1410] sm:$0xff]  ;;  %v8766_v7 = vpop.f32.mrf.mxu1 }
 0x2a7   : > { %2958 = vmatmul.mubr.f32.gmra.mxu1 %v8605_v15  ;;  %3041 = vmatmul.mubr.f32.gmra.mxu0 %v8605_v15 }
 0x2a8   : > { %3055 = vmatprep.subr.mxu1 %v5256_v20  ;;  %3138 = vmatprep.subr.mxu0 %v5738_v16  ;;  %v5187_v20 = vld [vmem:[%s10679_s3 + $0x1418] sm:$0xff] }
 0x2a9   : > { %3056 = vmatpush1.msra.mxu1 %v5255_v4  ;;  %5390 = vmatprep.mubr.msk.f32.mxu1 %vm924_vm2, %v8257_v28  ;;  %v5179_v4 = vld [vmem:[%s10679_s3 + $0x13d8] sm:$0xff] }
 0x2aa   : > { %3139 = vmatpush1.msra.mxu0 %v5257_v24  ;;  %5393 = vmatprep.mubr.msk.f32.mxu0 %vm924_vm2, %v8257_v28  ;;  %v5235_v28 = vld [vmem:[%s10679_s3 + $0x1598] sm:$0xff]  ;;  %v5178_v24 = vld [vmem:[%s10679_s3 + $0x13d0] sm:$0xff] }
 0x2ab   : > { %3057 = vmatprep.subr.mxu1 %v5249_v25  ;;  %3140 = vmatprep.subr.mxu0 %v5738_v16  ;;  %v5180_v25 = vld [vmem:[%s10679_s3 + $0x13e0] sm:$0xff] }
 0x2ac   : > { %3058 = vmatpush1.msra.mxu1 %v5248_v26  ;;  %3141 = vmatpush1.msra.mxu0 %v5250_v30  ;;  %v5382_v26 = vld [vmem:[%s10679_s3 + $0x1a30] sm:$0xff]  ;;  %v8788_v30 = vpop.f32.mrf.mxu1 }
 0x2ad   : > { %3059 = vmatprep.subr.mxu1 %v5242_v1  ;;  %3142 = vmatprep.subr.mxu0 %v5738_v16  ;;  %v5381_v1 = vld [vmem:[%s10679_s3 + $0x1a28] sm:$0xff] }
 0x2ae   : > { %3060 = vmatpush1.msra.mxu1 %v5241_v32  ;;  %3143 = vmatpush1.msra.mxu0 %v5243_v33  ;;  %v5383_v32 = vld [vmem:[%s10679_s3 + $0x1a38] sm:$0xff] }
 0x2af   : > { %3061 = vmatprep.subr.mxu1 %v5235_v28  ;;  %3144 = vmatprep.subr.mxu0 %v5738_v16  ;;  %v5375_v33 = vld [vmem:[%s10679_s3 + $0x19f8] sm:$0xff]  ;;  %v8800_v28 = vpop.f32.mrf.mxu1 }
 0x2b0   : > { %3062 = vmatpush1.msra.mxu1 %v5234_v34  ;;  %3145 = vmatpush1.msra.mxu0 %v5236_v35  ;;  %v5374_v34 = vld [vmem:[%s10679_s3 + $0x19f0] sm:$0xff]  ;;  %v5376_v35 = vld [vmem:[%s10679_s3 + $0x1a00] sm:$0xff] }
 0x2b1   : > { %3063 = vmatprep.subr.mxu1 %v5228_v36  ;;  %3146 = vmatprep.subr.mxu0 %v5738_v16  ;;  %v5368_v36 = vld [vmem:[%s10679_s3 + $0x19c0] sm:$0xff] }
 0x2b2   : > { %3064 = vmatpush1.msra.mxu1 %v5227_v41  ;;  %3147 = vmatpush1.msra.mxu0 %v5229_v42  ;;  %v5367_v41 = vld [vmem:[%s10679_s3 + $0x19b8] sm:$0xff]  ;;  %v5369_v42 = vld [vmem:[%s10679_s3 + $0x19c8] sm:$0xff] }
 0x2b3   : > { %3065 = vmatprep.subr.mxu1 %v5221_v43  ;;  %3148 = vmatprep.subr.mxu0 %v5738_v16  ;;  %v5361_v43 = vld [vmem:[%s10679_s3 + $0x1988] sm:$0xff] }
 0x2b4   : > { %3066 = vmatpush1.msra.mxu1 %v5220_v44  ;;  %3149 = vmatpush1.msra.mxu0 %v5222_v45  ;;  %v8822_v44 = vpop.f32.mrf.mxu1  ;;  %v5360_v45 = vld [vmem:[%s10679_s3 + $0x1980] sm:$0xff] }
 0x2b5   : > { %3067 = vmatprep.subr.mxu1 %v5214_v46  ;;  %3150 = vmatprep.subr.mxu0 %v5738_v16  ;;  %v5362_v46 = vld [vmem:[%s10679_s3 + $0x1990] sm:$0xff] }
 0x2b6   : > { %3068 = vmatpush1.msra.mxu1 %v5213_v52  ;;  %3151 = vmatpush1.msra.mxu0 %v5215_v53  ;;  %v5354_v52 = vld [vmem:[%s10679_s3 + $0x1950] sm:$0xff]  ;;  %v5353_v53 = vld [vmem:[%s10679_s3 + $0x1948] sm:$0xff] }
 0x2b7   : > { %3069 = vmatprep.subr.mxu1 %v5207_v9  ;;  %3152 = vmatprep.subr.mxu0 %v5738_v16  ;;  %v5355_v9 = vld [vmem:[%s10679_s3 + $0x1958] sm:$0xff] }
 0x2b8   : > { %3070 = vmatpush1.msra.mxu1 %v5206_v57  ;;  %3153 = vmatpush1.msra.mxu0 %v5208_v60  ;;  %v5347_v57 = vld [vmem:[%s10679_s3 + $0x1918] sm:$0xff]  ;;  %v8844_v60 = vpop.f32.mrf.mxu1 }
 0x2b9   : > { %3071 = vmatprep.subr.mxu1 %v5200_v39  ;;  %3154 = vmatprep.subr.mxu0 %v5738_v16  ;;  %v5346_v39 = vld [vmem:[%s10679_s3 + $0x1910] sm:$0xff] }
 0x2ba   : > { %3072 = vmatpush1.msra.mxu1 %v5199_v22  ;;  %3155 = vmatpush1.msra.mxu0 %v5201_v59  ;;  %v5348_v22 = vld [vmem:[%s10679_s3 + $0x1920] sm:$0xff] }
 0x2bb   : > { %3073 = vmatprep.subr.mxu1 %v5193_v6  ;;  %3156 = vmatprep.subr.mxu0 %v5738_v16  ;;  %v5340_v59 = vld [vmem:[%s10679_s3 + $0x18e0] sm:$0xff]  ;;  %v5339_v6 = vld [vmem:[%s10679_s3 + $0x18d8] sm:$0xff] }
 0x2bc   : > { %3074 = vmatpush1.msra.mxu1 %v5192_v62  ;;  %3157 = vmatpush1.msra.mxu0 %v5194_v8  ;;  %v5341_v62 = vld [vmem:[%s10679_s3 + $0x18e8] sm:$0xff] }
 0x2bd   : > { %3075 = vmatprep.subr.mxu1 %v5186_v13  ;;  %3158 = vmatprep.subr.mxu0 %v5738_v16  ;;  %v5333_v8 = vld [vmem:[%s10679_s3 + $0x18a8] sm:$0xff]  ;;  %v8866_v13 = vpop.f32.mrf.mxu1 }
 0x2be   : > { %3076 = vmatpush1.msra.mxu1 %v5185_v14  ;;  %3159 = vmatpush1.msra.mxu0 %v5187_v20  ;;  %v5332_v14 = vld [vmem:[%s10679_s3 + $0x18a0] sm:$0xff]  ;;  %v5334_v20 = vld [vmem:[%s10679_s3 + $0x18b0] sm:$0xff] }
 0x2bf   : > { %3077 = vmatprep.subr.mxu1 %v5179_v4  ;;  %3160 = vmatprep.subr.mxu0 %v5738_v16  ;;  %v5326_v4 = vld [vmem:[%s10679_s3 + $0x1870] sm:$0xff] }
 0x2c0   : > { %3078 = vmatpush1.msra.mxu1 %v5178_v24  ;;  %3161 = vmatpush1.msra.mxu0 %v5180_v25  ;;  %v5325_v24 = vld [vmem:[%s10679_s3 + $0x1868] sm:$0xff]  ;;  %v5327_v25 = vld [vmem:[%s10679_s3 + $0x1878] sm:$0xff] }
 0x2c1   : > { %3083 = vmatprep.subr.mxu1 %v5382_v26  ;;  %3166 = vmatprep.subr.mxu0 %v5738_v16  ;;  %v5319_v26 = vld [vmem:[%s10679_s3 + $0x1838] sm:$0xff] }
 0x2c2   : > { %3084 = vmatpush2.msra.mxu1 %v5381_v1  ;;  %3167 = vmatpush2.msra.mxu0 %v5383_v32  ;;  %v8888_v1 = vpop.f32.mrf.mxu1  ;;  %v5318_v32 = vld [vmem:[%s10679_s3 + $0x1830] sm:$0xff] }
 0x2c3   : > { %3085 = vmatprep.subr.mxu1 %v5375_v33  ;;  %3168 = vmatprep.subr.mxu0 %v5738_v16  ;;  %v5320_v33 = vld [vmem:[%s10679_s3 + $0x1840] sm:$0xff] }
 0x2c4   : > { %3086 = vmatpush2.msra.mxu1 %v5374_v34  ;;  %3169 = vmatpush2.msra.mxu0 %v5376_v35  ;;  %v5312_v34 = vld [vmem:[%s10679_s3 + $0x1800] sm:$0xff]  ;;  %v5311_v35 = vld [vmem:[%s10679_s3 + $0x17f8] sm:$0xff] }
 0x2c5   : > { %3087 = vmatprep.subr.mxu1 %v5368_v36  ;;  %3170 = vmatprep.subr.mxu0 %v5738_v16  ;;  %v5313_v36 = vld [vmem:[%s10679_s3 + $0x1808] sm:$0xff] }
 0x2c6   : > { %3088 = vmatpush2.msra.mxu1 %v5367_v41  ;;  %3171 = vmatpush2.msra.mxu0 %v5369_v42  ;;  %v5305_v41 = vld [vmem:[%s10679_s3 + $0x17c8] sm:$0xff]  ;;  %v8910_v42 = vpop.f32.mrf.mxu1 }
 0x2c7   : > { %3089 = vmatprep.subr.mxu1 %v5361_v43  ;;  %3172 = vmatprep.subr.mxu0 %v5738_v16  ;;  %v5304_v43 = vld [vmem:[%s10679_s3 + $0x17c0] sm:$0xff] }
 0x2c8   : > { %3090 = vmatpush2.msra.mxu1 %v5360_v45  ;;  %3173 = vmatpush2.msra.mxu0 %v5362_v46  ;;  %v5306_v45 = vld [vmem:[%s10679_s3 + $0x17d0] sm:$0xff]  ;;  %v1874_v46 = vadd.f32 %v8413_v31, %v7673_v49  ;;  %v1876_v31 = vadd.f32 %v8439_v40, %v7699_v58 }
 0x2c9   : > { %3091 = vmatprep.subr.mxu1 %v5354_v52  ;;  %3174 = vmatprep.subr.mxu0 %v5738_v16  ;;  %v5298_v52 = vld [vmem:[%s10679_s3 + $0x1790] sm:$0xff] }
 0x2ca   : > { %3092 = vmatpush2.msra.mxu1 %v5353_v53  ;;  %3175 = vmatpush2.msra.mxu0 %v5355_v9  ;;  %v8924_v53 = vpop.f32.mrf.mxu1  ;;  %v5297_v9 = vld [vmem:[%s10679_s3 + $0x1788] sm:$0xff] }
 0x2cb   : > { %3093 = vmatprep.subr.mxu1 %v5347_v57  ;;  %3176 = vmatprep.subr.mxu0 %v5738_v16  ;;  %v5299_v57 = vld [vmem:[%s10679_s3 + $0x1798] sm:$0xff] }
 0x2cc   : > { %3094 = vmatpush2.msra.mxu1 %v5346_v39  ;;  %3177 = vmatpush2.msra.mxu0 %v5348_v22  ;;  %v5291_v39 = vld [vmem:[%s10679_s3 + $0x1758] sm:$0xff] }
 0x2cd   : > { %3095 = vmatprep.subr.mxu1 %v5340_v59  ;;  %3178 = vmatprep.subr.mxu0 %v5738_v16  ;;  %v5290_v59 = vld [vmem:[%s10679_s3 + $0x1750] sm:$0xff] }
 0x2ce   : > { %3096 = vmatpush2.msra.mxu1 %v5339_v6  ;;  %3179 = vmatpush2.msra.mxu0 %v5341_v62  ;;  %v5292_v6 = vld [vmem:[%s10679_s3 + $0x1760] sm:$0xff]  ;;  %v8949_v62 = vpop.f32.mrf.mxu1 }
 0x2cf   : > { %3097 = vmatprep.subr.mxu1 %v5333_v8  ;;  %3180 = vmatprep.subr.mxu0 %v5738_v16  ;;  %v5502_v8 = vld [vmem:[%s10679_s3 + $0x1d90] sm:$0xff] }
 0x2d0   : > { %3098 = vmatpush2.msra.mxu1 %v5332_v14  ;;  %3181 = vmatpush2.msra.mxu0 %v5334_v20  ;;  %v5504_v14 = vld [vmem:[%s10679_s3 + $0x1da0] sm:$0xff]  ;;  %v1880_v20 = vadd.f32 %v8465_v23, %v7725_v2  ;;  %v5495_v2 = vld [vmem:[%s10679_s3 + $0x1d58] sm:$0xff]  ;;  %v5497_v23 = vld [vmem:[%s10679_s3 + $0x1d68] sm:$0xff] }
 0x2d1   : > { %3099 = vmatprep.subr.mxu1 %v5326_v4  ;;  %3182 = vmatprep.subr.mxu0 %v5738_v16  ;;  %v5501_v4 = vld [vmem:[%s10679_s3 + $0x1d88] sm:$0xff] }
 0x2d2   : > { %3100 = vmatpush2.msra.mxu1 %v5325_v24  ;;  %3183 = vmatpush2.msra.mxu0 %v5327_v25  ;;  %v5503_v24 = vld [vmem:[%s10679_s3 + $0x1d98] sm:$0xff] }
 0x2d3   : > { %3101 = vmatprep.subr.mxu1 %v5319_v26  ;;  %3184 = vmatprep.subr.mxu0 %v5738_v16  ;;  %v1882_v26 = vadd.f32 %v8491_v0, %v7751_v5  ;;  %v5494_v5 = vld [vmem:[%s10679_s3 + $0x1d50] sm:$0xff]  ;;  %v5496_v0 = vld [vmem:[%s10679_s3 + $0x1d60] sm:$0xff] }
 0x2d4   : > { %3102 = vmatpush2.msra.mxu1 %v5318_v32  ;;  %3185 = vmatpush2.msra.mxu0 %v5320_v33  ;;  %v8978_v32 = vpop.f32.mrf.mxu1 }
 0x2d5   : > { %3103 = vmatprep.subr.mxu1 %v5312_v34  ;;  %3186 = vmatprep.subr.mxu0 %v5738_v16 }
 0x2d6   : > { %3104 = vmatpush2.msra.mxu1 %v5311_v35  ;;  %3187 = vmatpush2.msra.mxu0 %v5313_v36  ;;  %v5488_v35 = vld [vmem:[%s10679_s3 + $0x1d20] sm:$0xff]  ;;  %v1886_v36 = vadd.f32 %v8517_v12, %v7777_v29  ;;  %v1888_v29 = vadd.f32 %v8543_v27, %v7803_v38  ;;  %v5481_v12 = vld [vmem:[%s10679_s3 + $0x1ce8] sm:$0xff]  ;;  %v5482_v27 = vld [vmem:[%s10679_s3 + $0x1cf0] sm:$0xff] }
 0x2d7   : > { %3105 = vmatprep.subr.mxu1 %v5305_v41  ;;  %3188 = vmatprep.subr.mxu0 %v5738_v16  ;;  %v2441_v49 = vpop.f32.mrf.mxu0  ;;  %v9000_v41 = vpop.f32.mrf.mxu1  ;;  %v5480_v38 = vld [vmem:[%s10679_s3 + $0x1ce0] sm:$0xff] }
 0x2d8   : > { %3106 = vmatpush2.msra.mxu1 %v5304_v43  ;;  %3189 = vmatpush2.msra.mxu0 %v5306_v45  ;;  %v8938_v22 = vadd.f32 %v2441_v49, %v1874_v46  ;;  %v5487_v43 = vld [vmem:[%s10679_s3 + $0x1d18] sm:$0xff]  ;;  %v5489_v45 = vld [vmem:[%s10679_s3 + $0x1d28] sm:$0xff] }
 0x2d9   : > { %3107 = vmatprep.subr.mxu1 %v5298_v52  ;;  %3190 = vmatprep.subr.mxu0 %v5738_v16  ;;  %v2443_v58 = vpop.f32.mrf.mxu0  ;;  %v9030_v49 = vld [vmem:[#allocation2 + $0x18] sm:$0xff] }
 0x2da   : > { %3108 = vmatpush2.msra.mxu1 %v5297_v9  ;;  %3191 = vmatpush2.msra.mxu0 %v5299_v57  ;;  %v8947_v40 = vadd.f32 %v2443_v58, %v1876_v31  ;;  %v3232_v9 = vld [vmem:[#allocation2 + $0x8] sm:$0xf0]  ;;  %v3454_v31 = vrot.slane %v9030_v49, 4  ;;  %v5499_v49 = vld [vmem:[%s10679_s3 + $0x1d78] sm:$0xff] }
 0x2db   : > { %3109 = vmatprep.subr.mxu1 %v5291_v39  ;;  %3192 = vmatprep.subr.mxu0 %v5738_v16  ;;  %v5473_v58 = vld [vmem:[%s10679_s3 + $0x1ca8] sm:$0xff] }
 0x2dc   : > { %3110 = vmatpush2.msra.mxu1 %v5290_v59  ;;  %3193 = vmatpush2.msra.mxu0 %v5292_v6  ;;  %v9035_v59 = vpop.f32.mrf.mxu1  ;;  %v5476_v6 = vld [vmem:[%s10679_s3 + $0x1cc0] sm:$0xff] }
 0x2dd   : > { %3112 = vmatmul.mubr.f32.vlgmr.msra.gmra.mxu1 %v8583_v54  ;;  %3195 = vmatmul.mubr.f32.vlgmr.msra.gmra.mxu0 %v8583_v54  ;;  %v2447_v25 = vpop.f32.mrf.mxu0 }
 0x2de   : > { %3469 = vmatprep.subr.mxu1 %v5502_v8  ;;  %3552 = vmatprep.subr.mxu0 %v5504_v14  ;;  %v8976_v54 = vadd.f32 %v2447_v25, %v1880_v20  ;;  %v3453_v8 = vrot.slane %v3232_v9, 4  ;;  %v5475_v14 = vld [vmem:[%s10679_s3 + $0x1cb8] sm:$0xff]  ;;  %v5466_v25 = vld [vmem:[%s10679_s3 + $0x1c70] sm:$0xff] }
 0x2df   : > { %5391 = vmatprep.mubr.msk.f32.mxu1 %vm924_vm2, %v8600_v63  ;;  %5394 = vmatprep.mubr.msk.f32.mxu0 %vm924_vm2, %v8600_v63  ;;  %v2449_v33 = vpop.f32.mrf.mxu0  ;;  %v5490_v63 = vld [vmem:[%s10679_s3 + $0x1d30] sm:$0xff] }
 0x2e0   : > { %3470 = vmatpush1.msra.mxu1 %v5501_v4  ;;  %3553 = vmatpush1.msra.mxu0 %v5503_v24  ;;  %v8990_v34 = vadd.f32 %v2449_v33, %v1882_v26  ;;  %v9054_v20 = vsel %vm363_vm0, %v3453_v8, %v3454_v31  ;;  %v5467_v4 = vld [vmem:[%s10679_s3 + $0x1c78] sm:$0xff]  ;;  %v5469_v24 = vld [vmem:[%s10679_s3 + $0x1c88] sm:$0xff]  ;;  %v5468_v26 = vld [vmem:[%s10679_s3 + $0x1c80] sm:$0xff] }
 0x2e1   : > { %3471 = vmatprep.subr.mxu1 %v5495_v2  ;;  %3554 = vmatprep.subr.mxu0 %v5497_v23  ;;  %v5460_v2 = vld [vmem:[%s10679_s3 + $0x1c40] sm:$0xff]  ;;  %v5462_v23 = vld [vmem:[%s10679_s3 + $0x1c50] sm:$0xff]  ;;  %v5461_v33 = vld [vmem:[%s10679_s3 + $0x1c48] sm:$0xff] }
 0x2e2   : > { %3472 = vmatpush1.msra.mxu1 %v5494_v5  ;;  %3555 = vmatpush1.msra.mxu0 %v5496_v0  ;;  %v5459_v0 = vld [vmem:[%s10679_s3 + $0x1c38] sm:$0xff]  ;;  %v5438_v9 = vld [vmem:[%s10679_s3 + $0x1b90] sm:$0xff] }
 0x2e3   : > { %3118 = vmatmul.mubr.f32.gmra.mxu1 %v8623_v50  ;;  %3200 = vmatmul.mubr.f32.gmra.mxu0 %v8623_v50  ;;  %v2453_v46 = vpop.f32.mrf.mxu0  ;;  %v5483_v50 = vld [vmem:[%s10679_s3 + $0x1cf8] sm:$0xff] }
 0x2e4   : > { %3473 = vmatprep.subr.mxu1 %v5488_v35  ;;  %3556 = vmatprep.subr.mxu0 %v5490_v63  ;;  %v9018_v52 = vadd.f32 %v2453_v46, %v1886_v36  ;;  %v5453_v35 = vld [vmem:[%s10679_s3 + $0x1c08] sm:$0xff]  ;;  %v5455_v63 = vld [vmem:[%s10679_s3 + $0x1c18] sm:$0xff]  ;;  %v5452_v36 = vld [vmem:[%s10679_s3 + $0x1c00] sm:$0xff] }
 0x2e5   : > { %5392 = vmatprep.mubr.msk.f32.mxu1 %vm924_vm2, %v8577_v51  ;;  %5395 = vmatprep.mubr.msk.f32.mxu0 %vm924_vm2, %v8577_v51  ;;  %v2455_v57 = vpop.f32.mrf.mxu0  ;;  %v5474_v51 = vld [vmem:[%s10679_s3 + $0x1cb0] sm:$0xff]  ;;  %v5448_v46 = vld [vmem:[%s10679_s3 + $0x1be0] sm:$0xff]  ;;  %v5431_v8 = vld [vmem:[%s10679_s3 + $0x1b58] sm:$0xff] }
 0x2e6   : > { %3474 = vmatpush1.msra.mxu1 %v5487_v43  ;;  %3557 = vmatpush1.msra.mxu0 %v5489_v45  ;;  %v9033_v39 = vadd.f32 %v2455_v57, %v1888_v29  ;;  %v5454_v43 = vld [vmem:[%s10679_s3 + $0x1c10] sm:$0xff]  ;;  %v5440_v57 = vld [vmem:[%s10679_s3 + $0x1ba0] sm:$0xff] }
 0x2e7   : > { %3475 = vmatprep.subr.mxu1 %v5481_v12  ;;  %3558 = vmatprep.subr.mxu0 %v5483_v50  ;;  %v5446_v45 = vld [vmem:[%s10679_s3 + $0x1bd0] sm:$0xff]  ;;  %v5445_v12 = vld [vmem:[%s10679_s3 + $0x1bc8] sm:$0xff]  ;;  %v5447_v50 = vld [vmem:[%s10679_s3 + $0x1bd8] sm:$0xff] }
 0x2e8   : > { %3476 = vmatpush1.msra.mxu1 %v5480_v38  ;;  %3559 = vmatpush1.msra.mxu0 %v5482_v27  ;;  %v5439_v38 = vld [vmem:[%s10679_s3 + $0x1b98] sm:$0xff]  ;;  %v5441_v27 = vld [vmem:[%s10679_s3 + $0x1ba8] sm:$0xff] }
 0x2e9   : > { %3124 = vmatmul.mubr.f32.gmra.mxu1 %v8605_v15  ;;  %3205 = vmatmul.mubr.f32.gmra.mxu0 %v8605_v15  ;;  %v9062_v15 = vpop.f32.mrf.mxu1 }
 0x2ea   : > { %3477 = vmatprep.subr.mxu1 %v5474_v51  ;;  %3560 = vmatprep.subr.mxu0 %v5476_v6  ;;  %v5432_v51 = vld [vmem:[%s10679_s3 + $0x1b60] sm:$0xff]  ;;  %v5434_v6 = vld [vmem:[%s10679_s3 + $0x1b70] sm:$0xff] }
 0x2eb   : > { %3478 = vmatpush1.msra.mxu1 %v5473_v58  ;;  %5606 = vmatprep.mubr.msk.f32.mxu1 %vm924_vm2, %v9054_v20  ;;  %v9080_v5 = vpop.f32.mrf.mxu1 }
 0x2ec   : > { %3561 = vmatpush1.msra.mxu0 %v5475_v14  ;;  %5609 = vmatprep.mubr.msk.f32.mxu0 %vm924_vm2, %v9054_v20  ;;  %v5433_v14 = vld [vmem:[%s10679_s3 + $0x1b68] sm:$0xff] }
 0x2ed   : > { %3479 = vmatprep.subr.mxu1 %v5467_v4  ;;  %3562 = vmatprep.subr.mxu0 %v5469_v24  ;;  %v9106_v29 = vpop.f32.mrf.mxu1  ;;  %v5425_v4 = vld [vmem:[%s10679_s3 + $0x1b28] sm:$0xff]  ;;  %v5427_v24 = vld [vmem:[%s10679_s3 + $0x1b38] sm:$0xff] }
 0x2ee   : > { %3480 = vmatpush1.msra.mxu1 %v5466_v25  ;;  %3563 = vmatpush1.msra.mxu0 %v5468_v26  ;;  %v5424_v25 = vld [vmem:[%s10679_s3 + $0x1b20] sm:$0xff]  ;;  %v5426_v26 = vld [vmem:[%s10679_s3 + $0x1b30] sm:$0xff] }
 0x2ef   : > { %3481 = vmatprep.subr.mxu1 %v5460_v2  ;;  %3564 = vmatprep.subr.mxu0 %v5462_v23  ;;  %v9132_v58 = vpop.f32.mrf.mxu1  ;;  %v5418_v2 = vld [vmem:[%s10679_s3 + $0x1af0] sm:$0xff]  ;;  %v5420_v23 = vld [vmem:[%s10679_s3 + $0x1b00] sm:$0xff] }
 0x2f0   : > { %3482 = vmatpush1.msra.mxu1 %v5459_v0  ;;  %3565 = vmatpush1.msra.mxu0 %v5461_v33  ;;  %v5417_v33 = vld [vmem:[%s10679_s3 + $0x1ae8] sm:$0xff] }
 0x2f1   : > { %3483 = vmatprep.subr.mxu1 %v5453_v35  ;;  %3566 = vmatprep.subr.mxu0 %v5455_v63  ;;  %v9158_v0 = vpop.f32.mrf.mxu1  ;;  %v5419_v35 = vld [vmem:[%s10679_s3 + $0x1af8] sm:$0xff] }
 0x2f2   : > { %3484 = vmatpush1.msra.mxu1 %v5452_v36  ;;  %3567 = vmatpush1.msra.mxu0 %v5454_v43  ;;  %v5411_v63 = vld [vmem:[%s10679_s3 + $0x1ab8] sm:$0xff]  ;;  %v5413_v36 = vld [vmem:[%s10679_s3 + $0x1ac8] sm:$0xff]  ;;  %v5410_v43 = vld [vmem:[%s10679_s3 + $0x1ab0] sm:$0xff] }
 0x2f3   : > { %3485 = vmatprep.subr.mxu1 %v5446_v45  ;;  %3568 = vmatprep.subr.mxu0 %v5448_v46  ;;  %v5412_v45 = vld [vmem:[%s10679_s3 + $0x1ac0] sm:$0xff] }
 0x2f4   : > { %3486 = vmatpush1.msra.mxu1 %v5445_v12  ;;  %3569 = vmatpush1.msra.mxu0 %v5447_v50  ;;  %v5404_v46 = vld [vmem:[%s10679_s3 + $0x1a80] sm:$0xff]  ;;  %v5406_v12 = vld [vmem:[%s10679_s3 + $0x1a90] sm:$0xff]  ;;  %v9184_v50 = vpop.f32.mrf.mxu1 }
 0x2f5   : > { %3487 = vmatprep.subr.mxu1 %v5439_v38  ;;  %3570 = vmatprep.subr.mxu0 %v5441_v27  ;;  %v5403_v38 = vld [vmem:[%s10679_s3 + $0x1a78] sm:$0xff]  ;;  %v5405_v27 = vld [vmem:[%s10679_s3 + $0x1a88] sm:$0xff] }
 0x2f6   : > { %3488 = vmatpush1.msra.mxu1 %v5438_v9  ;;  %3571 = vmatpush1.msra.mxu0 %v5440_v57  ;;  %v5397_v9 = vld [vmem:[%s10679_s3 + $0x1a48] sm:$0xff]  ;;  %v5399_v57 = vld [vmem:[%s10679_s3 + $0x1a58] sm:$0xff] }
 0x2f7   : > { %3489 = vmatprep.subr.mxu1 %v5432_v51  ;;  %3572 = vmatprep.subr.mxu0 %v5434_v6  ;;  %v5396_v51 = vld [vmem:[%s10679_s3 + $0x1a40] sm:$0xff]  ;;  %v5398_v6 = vld [vmem:[%s10679_s3 + $0x1a50] sm:$0xff] }
 0x2f8   : > { %3490 = vmatpush1.msra.mxu1 %v5431_v8  ;;  %3573 = vmatpush1.msra.mxu0 %v5433_v14  ;;  %v5600_v8 = vld [vmem:[%s10679_s3 + $0x20a0] sm:$0xff]  ;;  %v5602_v14 = vld [vmem:[%s10679_s3 + $0x20b0] sm:$0xff] }
 0x2f9   : > { %3491 = vmatprep.subr.mxu1 %v5425_v4  ;;  %3574 = vmatprep.subr.mxu0 %v5427_v24  ;;  %v9210_v4 = vpop.f32.mrf.mxu1  ;;  %v5599_v24 = vld [vmem:[%s10679_s3 + $0x2098] sm:$0xff] }
 0x2fa   : > { %3492 = vmatpush1.msra.mxu1 %v5424_v25  ;;  %3575 = vmatpush1.msra.mxu0 %v5426_v26  ;;  %v5601_v25 = vld [vmem:[%s10679_s3 + $0x20a8] sm:$0xff] }
 0x2fb   : > { %3493 = vmatprep.subr.mxu1 %v5418_v2  ;;  %3576 = vmatprep.subr.mxu0 %v5420_v23  ;;  %v5593_v26 = vld [vmem:[%s10679_s3 + $0x2068] sm:$0xff]  ;;  %v5595_v2 = vld [vmem:[%s10679_s3 + $0x2078] sm:$0xff]  ;;  %v9224_v23 = vpop.f32.mrf.mxu1 }
 0x2fc   : > { %3494 = vmatpush1.msra.mxu1 %v5417_v33  ;;  %3577 = vmatpush1.msra.mxu0 %v5419_v35  ;;  %v5592_v33 = vld [vmem:[%s10679_s3 + $0x2060] sm:$0xff]  ;;  %v5594_v35 = vld [vmem:[%s10679_s3 + $0x2070] sm:$0xff] }
 0x2fd   : > { %3495 = vmatprep.subr.mxu1 %v5411_v63  ;;  %3578 = vmatprep.subr.mxu0 %v5413_v36  ;;  %v5586_v63 = vld [vmem:[%s10679_s3 + $0x2030] sm:$0xff]  ;;  %v5588_v36 = vld [vmem:[%s10679_s3 + $0x2040] sm:$0xff] }
 0x2fe   : > { %3496 = vmatpush1.msra.mxu1 %v5410_v43  ;;  %3579 = vmatpush1.msra.mxu0 %v5412_v45  ;;  %v5585_v43 = vld [vmem:[%s10679_s3 + $0x2028] sm:$0xff]  ;;  %v5587_v45 = vld [vmem:[%s10679_s3 + $0x2038] sm:$0xff] }
 0x2ff   : > { %3497 = vmatprep.subr.mxu1 %v5404_v46  ;;  %3580 = vmatprep.subr.mxu0 %v5406_v12  ;;  %v5579_v46 = vld [vmem:[%s10679_s3 + $0x1ff8] sm:$0xff]  ;;  %v5581_v12 = vld [vmem:[%s10679_s3 + $0x2008] sm:$0xff] }
 0x300   : > { %3498 = vmatpush1.msra.mxu1 %v5403_v38  ;;  %3581 = vmatpush1.msra.mxu0 %v5405_v27  ;;  %v9250_v38 = vpop.f32.mrf.mxu1  ;;  %v5578_v27 = vld [vmem:[%s10679_s3 + $0x1ff0] sm:$0xff] }
 0x301   : > { %3499 = vmatprep.subr.mxu1 %v5397_v9  ;;  %3582 = vmatprep.subr.mxu0 %v5399_v57  ;;  %v5580_v9 = vld [vmem:[%s10679_s3 + $0x2000] sm:$0xff] }
 0x302   : > { %3500 = vmatpush1.msra.mxu1 %v5396_v51  ;;  %3583 = vmatpush1.msra.mxu0 %v5398_v6  ;;  %v5572_v57 = vld [vmem:[%s10679_s3 + $0x1fc0] sm:$0xff]  ;;  %v5574_v51 = vld [vmem:[%s10679_s3 + $0x1fd0] sm:$0xff]  ;;  %v5571_v6 = vld [vmem:[%s10679_s3 + $0x1fb8] sm:$0xff] }
 0x303   : > { %3505 = vmatprep.subr.mxu1 %v5600_v8  ;;  %3588 = vmatprep.subr.mxu0 %v5602_v14  ;;  %v5573_v8 = vld [vmem:[%s10679_s3 + $0x1fc8] sm:$0xff] }
 0x304   : > { %3506 = vmatpush2.msra.mxu1 %v5599_v24  ;;  %3589 = vmatpush2.msra.mxu0 %v5601_v25  ;;  %v5565_v14 = vld [vmem:[%s10679_s3 + $0x1f88] sm:$0xff]  ;;  %v5567_v24 = vld [vmem:[%s10679_s3 + $0x1f98] sm:$0xff]  ;;  %v9276_v25 = vpop.f32.mrf.mxu1 }
 0x305   : > { %3507 = vmatprep.subr.mxu1 %v5593_v26  ;;  %3590 = vmatprep.subr.mxu0 %v5595_v2  ;;  %v5564_v26 = vld [vmem:[%s10679_s3 + $0x1f80] sm:$0xff]  ;;  %v5566_v2 = vld [vmem:[%s10679_s3 + $0x1f90] sm:$0xff] }
 0x306   : > { %3508 = vmatpush2.msra.mxu1 %v5592_v33  ;;  %3591 = vmatpush2.msra.mxu0 %v5594_v35  ;;  %v5558_v33 = vld [vmem:[%s10679_s3 + $0x1f50] sm:$0xff]  ;;  %v5560_v35 = vld [vmem:[%s10679_s3 + $0x1f60] sm:$0xff] }
 0x307   : > { %3509 = vmatprep.subr.mxu1 %v5586_v63  ;;  %3592 = vmatprep.subr.mxu0 %v5588_v36  ;;  %v5557_v63 = vld [vmem:[%s10679_s3 + $0x1f48] sm:$0xff]  ;;  %v5559_v36 = vld [vmem:[%s10679_s3 + $0x1f58] sm:$0xff] }
 0x308   : > { %3510 = vmatpush2.msra.mxu1 %v5585_v43  ;;  %3593 = vmatpush2.msra.mxu0 %v5587_v45  ;;  %v5551_v43 = vld [vmem:[%s10679_s3 + $0x1f18] sm:$0xff]  ;;  %v5553_v45 = vld [vmem:[%s10679_s3 + $0x1f28] sm:$0xff] }
 0x309   : > { %3511 = vmatprep.subr.mxu1 %v5579_v46  ;;  %3594 = vmatprep.subr.mxu0 %v5581_v12  ;;  %v9302_v46 = vpop.f32.mrf.mxu1  ;;  %v5550_v12 = vld [vmem:[%s10679_s3 + $0x1f10] sm:$0xff] }
 0x30a   : > { %3512 = vmatpush2.msra.mxu1 %v5578_v27  ;;  %3595 = vmatpush2.msra.mxu0 %v5580_v9  ;;  %v5552_v27 = vld [vmem:[%s10679_s3 + $0x1f20] sm:$0xff] }
 0x30b   : > { %3513 = vmatprep.subr.mxu1 %v5572_v57  ;;  %3596 = vmatprep.subr.mxu0 %v5574_v51  ;;  %v5544_v9 = vld [vmem:[%s10679_s3 + $0x1ee0] sm:$0xff]  ;;  %v5546_v57 = vld [vmem:[%s10679_s3 + $0x1ef0] sm:$0xff]  ;;  %v5543_v51 = vld [vmem:[%s10679_s3 + $0x1ed8] sm:$0xff] }
 0x30c   : > { %3514 = vmatpush2.msra.mxu1 %v5571_v6  ;;  %3597 = vmatpush2.msra.mxu0 %v5573_v8  ;;  %v5545_v6 = vld [vmem:[%s10679_s3 + $0x1ee8] sm:$0xff] }
 0x30d   : > { %3515 = vmatprep.subr.mxu1 %v5565_v14  ;;  %3598 = vmatprep.subr.mxu0 %v5567_v24  ;;  %v5537_v8 = vld [vmem:[%s10679_s3 + $0x1ea8] sm:$0xff]  ;;  %v5539_v14 = vld [vmem:[%s10679_s3 + $0x1eb8] sm:$0xff]  ;;  %v9328_v24 = vpop.f32.mrf.mxu1 }
 0x30e   : > { %3516 = vmatpush2.msra.mxu1 %v5564_v26  ;;  %3599 = vmatpush2.msra.mxu0 %v5566_v2  ;;  %v5536_v26 = vld [vmem:[%s10679_s3 + $0x1ea0] sm:$0xff]  ;;  %v5538_v2 = vld [vmem:[%s10679_s3 + $0x1eb0] sm:$0xff] }
 0x30f   : > { %3517 = vmatprep.subr.mxu1 %v5558_v33  ;;  %3600 = vmatprep.subr.mxu0 %v5560_v35  ;;  %v5530_v33 = vld [vmem:[%s10679_s3 + $0x1e70] sm:$0xff]  ;;  %v5532_v35 = vld [vmem:[%s10679_s3 + $0x1e80] sm:$0xff] }
 0x310   : > { %3518 = vmatpush2.msra.mxu1 %v5557_v63  ;;  %3601 = vmatpush2.msra.mxu0 %v5559_v36  ;;  %v5529_v63 = vld [vmem:[%s10679_s3 + $0x1e68] sm:$0xff]  ;;  %v5531_v36 = vld [vmem:[%s10679_s3 + $0x1e78] sm:$0xff] }
 0x311   : > { %3519 = vmatprep.subr.mxu1 %v5551_v43  ;;  %3602 = vmatprep.subr.mxu0 %v5553_v45  ;;  %v5523_v43 = vld [vmem:[%s10679_s3 + $0x1e38] sm:$0xff]  ;;  %v5525_v45 = vld [vmem:[%s10679_s3 + $0x1e48] sm:$0xff] }
 0x312   : > { %3520 = vmatpush2.msra.mxu1 %v5550_v12  ;;  %3603 = vmatpush2.msra.mxu0 %v5552_v27  ;;  %v9354_v12 = vpop.f32.mrf.mxu1  ;;  %v5522_v27 = vld [vmem:[%s10679_s3 + $0x1e30] sm:$0xff] }
 0x313   : > { %3521 = vmatprep.subr.mxu1 %v5544_v9  ;;  %3604 = vmatprep.subr.mxu0 %v5546_v57  ;;  %v5524_v9 = vld [vmem:[%s10679_s3 + $0x1e40] sm:$0xff] }
 0x314   : > { %3522 = vmatpush2.msra.mxu1 %v5543_v51  ;;  %3605 = vmatpush2.msra.mxu0 %v5545_v6  ;;  %v3231_v57 = vld [vmem:[#allocation2] sm:$0xf0]  ;;  %v1957_v51 = vadd.f32 %v9080_v5, %v8800_v28  ;;  %v2040_v6 = vadd.f32 %v8563_v37, %v7823_v47  ;;  %v5515_v28 = vld [vmem:[%s10679_s3 + $0x1df8] sm:$0xff]  ;;  %v5517_v47 = vld [vmem:[%s10679_s3 + $0x1e08] sm:$0xff] }
 0x315   : > { %3523 = vmatprep.subr.mxu1 %v5537_v8  ;;  %3606 = vmatprep.subr.mxu0 %v5539_v14  ;;  %v5516_v8 = vld [vmem:[%s10679_s3 + $0x1e00] sm:$0xff]  ;;  %v5518_v14 = vld [vmem:[%s10679_s3 + $0x1e10] sm:$0xff] }
 0x316   : > { %3524 = vmatpush2.msra.mxu1 %v5536_v26  ;;  %3607 = vmatpush2.msra.mxu0 %v5538_v2  ;;  %v3234_v26 = vld [vmem:[#allocation2 + $0x28] sm:$0xff]  ;;  %v1959_v2 = vadd.f32 %v9106_v29, %v8822_v44  ;;  %v5508_v44 = vld [vmem:[%s10679_s3 + $0x1dc0] sm:$0xff]  ;;  %v5510_v29 = vld [vmem:[%s10679_s3 + $0x1dd0] sm:$0xff] }
 0x317   : > { %3525 = vmatprep.subr.mxu1 %v5530_v33  ;;  %3608 = vmatprep.subr.mxu0 %v5532_v35  ;;  %v5509_v33 = vld [vmem:[%s10679_s3 + $0x1dc8] sm:$0xff]  ;;  %v5511_v35 = vld [vmem:[%s10679_s3 + $0x1dd8] sm:$0xff] }
 0x318   : > { %3526 = vmatpush2.msra.mxu1 %v5529_v63  ;;  %3609 = vmatpush2.msra.mxu0 %v5531_v36  ;;  %v3450_v63 = vrot.slane %v3231_v57, 4  ;;  %v5675_v57 = vld [vmem:[#allocation2 + $0x10] sm:$0xff] }
 0x319   : > { %3527 = vmatprep.subr.mxu1 %v5523_v43  ;;  %3610 = vmatprep.subr.mxu0 %v5525_v45  ;;  %v2524_v37 = vpop.f32.mrf.mxu1  ;;  %v2607_v5 = vpop.f32.mrf.mxu0  ;;  %v9396_v45 = vrot.slane %v3234_v26, 4  ;;  %v2045_v26 = vadd.f32 %v8593_v19, %v7854_v61  ;;  %v5507_v61 = vld [vmem:[%s10679_s3 + $0x1db8] sm:$0xff] }
 0x31a   : > { %3528 = vmatpush2.msra.mxu1 %v5522_v27  ;;  %3611 = vmatpush2.msra.mxu0 %v5524_v9  ;;  %v9386_v36 = vadd.f32 %v2524_v37, %v1957_v51  ;;  %v9388_v43 = vadd.f32 %v2607_v5, %v2040_v6  ;;  %v3451_v51 = vrot.slane %v5675_v57, 4  ;;  %v1963_v37 = vadd.f32 %v9132_v58, %v8844_v60  ;;  %v5505_v60 = vld [vmem:[%s10679_s3 + $0x1da8] sm:$0xff] }
 0x31b   : > { %3529 = vmatprep.subr.mxu1 %v5516_v8  ;;  %3612 = vmatprep.subr.mxu0 %v5518_v14  ;;  %v2526_v27 = vpop.f32.mrf.mxu1  ;;  %v2609_v9 = vpop.f32.mrf.mxu0  ;;  %v5506_v8 = vld [vmem:[%s10679_s3 + $0x1db0] sm:$0xff]  ;;  %v3233_v14 = vld [vmem:[#allocation2 + $0x20] sm:$0xff]  ;;  %v1965_v5 = vadd.f32 %v9158_v0, %v8866_v13 }
 0x31c   : > { %3530 = vmatpush2.msra.mxu1 %v5515_v28  ;;  %3613 = vmatpush2.msra.mxu0 %v5517_v47  ;;  %v9398_v6 = vadd.f32 %v2526_v27, %v1959_v2  ;;  %v9408_v28 = vsel %vm363_vm0, %v3450_v63, %v3451_v51  ;;  %v9416_v47 = vsel %vm363_vm0, %v3454_v31, %v9396_v45  ;;  %v9430_v31 = vrot.slane %v3233_v14, 4  ;;  %v5498_v13 = vld [vmem:[%s10679_s3 + $0x1d70] sm:$0xff]  ;;  %v5500_v0 = vld [vmem:[%s10679_s3 + $0x1d80] sm:$0xff] }
 0x31d   : > { %3531 = vmatprep.subr.mxu1 %v5509_v33  ;;  %3614 = vmatprep.subr.mxu0 %v5511_v35  ;;  %v1969_v27 = vadd.f32 %v9184_v50, %v8888_v1  ;;  %v2050_v9 = vadd.f32 %v8633_v18, %v7894_v10  ;;  %v5493_v1 = vld [vmem:[%s10679_s3 + $0x1d48] sm:$0xff]  ;;  %v1971_v18 = vadd.f32 %v9210_v4, %v8910_v42  ;;  %v5484_v42 = vld [vmem:[%s10679_s3 + $0x1d00] sm:$0xff]  ;;  %v5486_v4 = vld [vmem:[%s10679_s3 + $0x1d10] sm:$0xff] }
 0x31e   : > { %3532 = vmatpush2.msra.mxu1 %v5508_v44  ;;  %3615 = vmatpush2.msra.mxu0 %v5510_v29  ;;  %v5492_v29 = vld [vmem:[%s10679_s3 + $0x1d40] sm:$0xff]  ;;  %v9458_v57 = vsel %vm363_vm0, %v3451_v51, %v9430_v31  ;;  %v5485_v51 = vld [vmem:[%s10679_s3 + $0x1d08] sm:$0xff] }
 0x31f   : > { %3534 = vmatmul.mubr.f32.vlgmr.msra.gmra.mxu1 %v9408_v28  ;;  %3617 = vmatmul.mubr.f32.vlgmr.msra.gmra.mxu0 %v9408_v28  ;;  %v2530_v19 = vpop.f32.mrf.mxu1  ;;  %v2612_v58 = vpop.f32.mrf.mxu0 }
 0x320   : > { %3635 = vmatprep.subr.mxu1 %v5506_v8  ;;  %3718 = vmatprep.subr.mxu0 %v5738_v16  ;;  %v9432_v2 = vadd.f32 %v2530_v19, %v1963_v37  ;;  %v9434_v33 = vadd.f32 %v2612_v58, %v2045_v26  ;;  %v5491_v8 = vld [vmem:[%s10679_s3 + $0x1d38] sm:$0xff]  ;;  %v5478_v19 = vld [vmem:[%s10679_s3 + $0x1cd0] sm:$0xff]  ;;  %v5477_v58 = vld [vmem:[%s10679_s3 + $0x1cc8] sm:$0xff] }
 0x321   : > { %5607 = vmatprep.mubr.msk.f32.mxu1 %vm924_vm2, %v9416_v47  ;;  %5610 = vmatprep.mubr.msk.f32.mxu0 %vm924_vm2, %v9416_v47  ;;  %v2532_v35 = vpop.f32.mrf.mxu1  ;;  %v2614_v63 = vpop.f32.mrf.mxu0 }
 0x322   : > { %3636 = vmatpush1.msra.mxu1 %v5505_v60  ;;  %3719 = vmatpush1.msra.mxu0 %v5507_v61  ;;  %v9446_v44 = vadd.f32 %v2532_v35, %v1965_v5  ;;  %v5479_v5 = vld [vmem:[%s10679_s3 + $0x1cd8] sm:$0xff]  ;;  %v5464_v35 = vld [vmem:[%s10679_s3 + $0x1c60] sm:$0xff] }
 0x323   : > { %3637 = vmatprep.subr.mxu1 %v5499_v49  ;;  %3720 = vmatprep.subr.mxu0 %v5738_v16  ;;  %v5471_v49 = vld [vmem:[%s10679_s3 + $0x1c98] sm:$0xff] }
 0x324   : > { %3638 = vmatpush1.msra.mxu1 %v5498_v13  ;;  %3721 = vmatpush1.msra.mxu0 %v5500_v0  ;;  %v5470_v13 = vld [vmem:[%s10679_s3 + $0x1c90] sm:$0xff]  ;;  %v5472_v0 = vld [vmem:[%s10679_s3 + $0x1ca0] sm:$0xff]  ;;  %v5463_v63 = vld [vmem:[%s10679_s3 + $0x1c58] sm:$0xff] }
 0x325   : > { %3540 = vmatmul.mubr.f32.gmra.mxu1 %v9458_v57  ;;  %3623 = vmatmul.mubr.f32.gmra.mxu0 %v9458_v57  ;;  %v2536_v50 = vpop.f32.mrf.mxu1  ;;  %v2617_v10 = vpop.f32.mrf.mxu0 }
 0x326   : > { %3639 = vmatprep.subr.mxu1 %v5492_v29  ;;  %3722 = vmatprep.subr.mxu0 %v5738_v16  ;;  %v9474_v14 = vadd.f32 %v2536_v50, %v1969_v27  ;;  %v9476_v37 = vadd.f32 %v2617_v10, %v2050_v9  ;;  %v5465_v29 = vld [vmem:[%s10679_s3 + $0x1c68] sm:$0xff]  ;;  %v5456_v27 = vld [vmem:[%s10679_s3 + $0x1c20] sm:$0xff]  ;;  %v5458_v9 = vld [vmem:[%s10679_s3 + $0x1c30] sm:$0xff] }
 0x327   : > { %5608 = vmatprep.mubr.msk.f32.mxu1 %vm924_vm2, %v9396_v45  ;;  %5611 = vmatprep.mubr.msk.f32.mxu0 %vm924_vm2, %v9396_v45  ;;  %v2538_v26 = vpop.f32.mrf.mxu1  ;;  %v2619_v60 = vpop.f32.mrf.mxu0  ;;  %v5451_v50 = vld [vmem:[%s10679_s3 + $0x1bf8] sm:$0xff] }
 0x328   : > { %3640 = vmatpush1.msra.mxu1 %v5491_v8  ;;  %3723 = vmatpush1.msra.mxu0 %v5493_v1  ;;  %v9488_v61 = vadd.f32 %v2538_v26, %v1971_v18  ;;  %v5450_v8 = vld [vmem:[%s10679_s3 + $0x1bf0] sm:$0xff]  ;;  %v5449_v1 = vld [vmem:[%s10679_s3 + $0x1be8] sm:$0xff]  ;;  %v5443_v10 = vld [vmem:[%s10679_s3 + $0x1bb8] sm:$0xff] }
 0x329   : > { %3641 = vmatprep.subr.mxu1 %v5485_v51  ;;  %3724 = vmatprep.subr.mxu0 %v5738_v16  ;;  %v5442_v18 = vld [vmem:[%s10679_s3 + $0x1bb0] sm:$0xff]  ;;  %v5444_v51 = vld [vmem:[%s10679_s3 + $0x1bc0] sm:$0xff]  ;;  %v5437_v26 = vld [vmem:[%s10679_s3 + $0x1b88] sm:$0xff] }
 0x32a   : > { %3642 = vmatpush1.msra.mxu1 %v5484_v42  ;;  %3725 = vmatpush1.msra.mxu0 %v5486_v4  ;;  %v5436_v42 = vld [vmem:[%s10679_s3 + $0x1b80] sm:$0xff]  ;;  %v5435_v4 = vld [vmem:[%s10679_s3 + $0x1b78] sm:$0xff]  ;;  %v5429_v60 = vld [vmem:[%s10679_s3 + $0x1b48] sm:$0xff] }
 0x32b   : > { %3546 = vmatmul.mubr.f32.gmra.mxu1 %v9430_v31  ;;  %3629 = vmatmul.mubr.f32.gmra.mxu0 %v9430_v31 }
 0x32c   : > { %3643 = vmatprep.subr.mxu1 %v5478_v19  ;;  %3726 = vmatprep.subr.mxu0 %v5738_v16  ;;  %v5428_v19 = vld [vmem:[%s10679_s3 + $0x1b40] sm:$0xff] }
 0x32d   : > { %3644 = vmatpush1.msra.mxu1 %v5477_v58  ;;  %5612 = vmatprep.mubr.msk.f32.mxu1 %vm924_vm2, %v9054_v20  ;;  %v5430_v58 = vld [vmem:[%s10679_s3 + $0x1b50] sm:$0xff] }
 0x32e   : > { %3727 = vmatpush1.msra.mxu0 %v5479_v5  ;;  %5615 = vmatprep.mubr.msk.f32.mxu0 %vm924_vm2, %v9054_v20  ;;  %v5457_v20 = vld [vmem:[%s10679_s3 + $0x1c28] sm:$0xff]  ;;  %v5422_v5 = vld [vmem:[%s10679_s3 + $0x1b10] sm:$0xff] }
 0x32f   : > { %3645 = vmatprep.subr.mxu1 %v5471_v49  ;;  %3728 = vmatprep.subr.mxu0 %v5738_v16  ;;  %v5421_v49 = vld [vmem:[%s10679_s3 + $0x1b08] sm:$0xff] }
 0x330   : > { %3646 = vmatpush1.msra.mxu1 %v5470_v13  ;;  %3729 = vmatpush1.msra.mxu0 %v5472_v0  ;;  %v5423_v13 = vld [vmem:[%s10679_s3 + $0x1b18] sm:$0xff] }
 0x331   : > { %3647 = vmatprep.subr.mxu1 %v5464_v35  ;;  %3730 = vmatprep.subr.mxu0 %v5738_v16  ;;  %v5415_v0 = vld [vmem:[%s10679_s3 + $0x1ad8] sm:$0xff]  ;;  %v5414_v35 = vld [vmem:[%s10679_s3 + $0x1ad0] sm:$0xff] }
 0x332   : > { %3648 = vmatpush1.msra.mxu1 %v5463_v63  ;;  %3731 = vmatpush1.msra.mxu0 %v5465_v29  ;;  %v5416_v63 = vld [vmem:[%s10679_s3 + $0x1ae0] sm:$0xff] }
 0x333   : > { %3649 = vmatprep.subr.mxu1 %v5457_v20  ;;  %3732 = vmatprep.subr.mxu0 %v5738_v16  ;;  %v5408_v29 = vld [vmem:[%s10679_s3 + $0x1aa0] sm:$0xff]  ;;  %v5407_v20 = vld [vmem:[%s10679_s3 + $0x1a98] sm:$0xff] }
 0x334   : > { %3650 = vmatpush1.msra.mxu1 %v5456_v27  ;;  %3733 = vmatpush1.msra.mxu0 %v5458_v9  ;;  %v5409_v27 = vld [vmem:[%s10679_s3 + $0x1aa8] sm:$0xff] }
 0x335   : > { %3651 = vmatprep.subr.mxu1 %v5450_v8  ;;  %3734 = vmatprep.subr.mxu0 %v5738_v16  ;;  %v5401_v9 = vld [vmem:[%s10679_s3 + $0x1a68] sm:$0xff]  ;;  %v5400_v8 = vld [vmem:[%s10679_s3 + $0x1a60] sm:$0xff] }
 0x336   : > { %3652 = vmatpush1.msra.mxu1 %v5449_v1  ;;  %3735 = vmatpush1.msra.mxu0 %v5451_v50  ;;  %v5402_v1 = vld [vmem:[%s10679_s3 + $0x1a70] sm:$0xff]  ;;  %v5604_v50 = vld [vmem:[%s10679_s3 + $0x20c0] sm:$0xff] }
 0x337   : > { %3653 = vmatprep.subr.mxu1 %v5443_v10  ;;  %3736 = vmatprep.subr.mxu0 %v5738_v16  ;;  %v5603_v10 = vld [vmem:[%s10679_s3 + $0x20b8] sm:$0xff] }
 0x338   : > { %3654 = vmatpush1.msra.mxu1 %v5442_v18  ;;  %3737 = vmatpush1.msra.mxu0 %v5444_v51  ;;  %v5605_v18 = vld [vmem:[%s10679_s3 + $0x20c8] sm:$0xff] }
 0x339   : > { %3655 = vmatprep.subr.mxu1 %v5436_v42  ;;  %3738 = vmatprep.subr.mxu0 %v5738_v16  ;;  %v5597_v51 = vld [vmem:[%s10679_s3 + $0x2088] sm:$0xff]  ;;  %v5596_v42 = vld [vmem:[%s10679_s3 + $0x2080] sm:$0xff] }
 0x33a   : > { %3656 = vmatpush1.msra.mxu1 %v5435_v4  ;;  %3739 = vmatpush1.msra.mxu0 %v5437_v26  ;;  %v5598_v4 = vld [vmem:[%s10679_s3 + $0x2090] sm:$0xff] }
 0x33b   : > { %3657 = vmatprep.subr.mxu1 %v5429_v60  ;;  %3740 = vmatprep.subr.mxu0 %v5738_v16  ;;  %v5590_v26 = vld [vmem:[%s10679_s3 + $0x2050] sm:$0xff]  ;;  %v5589_v60 = vld [vmem:[%s10679_s3 + $0x2048] sm:$0xff] }
 0x33c   : > { %3658 = vmatpush1.msra.mxu1 %v5428_v19  ;;  %3741 = vmatpush1.msra.mxu0 %v5430_v58  ;;  %v5591_v19 = vld [vmem:[%s10679_s3 + $0x2058] sm:$0xff] }
 0x33d   : > { %3659 = vmatprep.subr.mxu1 %v5422_v5  ;;  %3742 = vmatprep.subr.mxu0 %v5738_v16  ;;  %v5583_v58 = vld [vmem:[%s10679_s3 + $0x2018] sm:$0xff]  ;;  %v5582_v5 = vld [vmem:[%s10679_s3 + $0x2010] sm:$0xff] }
 0x33e   : > { %3660 = vmatpush1.msra.mxu1 %v5421_v49  ;;  %3743 = vmatpush1.msra.mxu0 %v5423_v13  ;;  %v5584_v49 = vld [vmem:[%s10679_s3 + $0x2020] sm:$0xff] }
 0x33f   : > { %3661 = vmatprep.subr.mxu1 %v5415_v0  ;;  %3744 = vmatprep.subr.mxu0 %v5738_v16  ;;  %v5576_v13 = vld [vmem:[%s10679_s3 + $0x1fe0] sm:$0xff]  ;;  %v5575_v0 = vld [vmem:[%s10679_s3 + $0x1fd8] sm:$0xff] }
 0x340   : > { %3662 = vmatpush1.msra.mxu1 %v5414_v35  ;;  %3745 = vmatpush1.msra.mxu0 %v5416_v63  ;;  %v5577_v35 = vld [vmem:[%s10679_s3 + $0x1fe8] sm:$0xff] }
 0x341   : > { %3663 = vmatprep.subr.mxu1 %v5408_v29  ;;  %3746 = vmatprep.subr.mxu0 %v5738_v16  ;;  %v5569_v63 = vld [vmem:[%s10679_s3 + $0x1fa8] sm:$0xff]  ;;  %v5568_v29 = vld [vmem:[%s10679_s3 + $0x1fa0] sm:$0xff] }
 0x342   : > { %3664 = vmatpush1.msra.mxu1 %v5407_v20  ;;  %3747 = vmatpush1.msra.mxu0 %v5409_v27  ;;  %v5570_v20 = vld [vmem:[%s10679_s3 + $0x1fb0] sm:$0xff] }
 0x343   : > { %3665 = vmatprep.subr.mxu1 %v5401_v9  ;;  %3748 = vmatprep.subr.mxu0 %v5738_v16  ;;  %v5562_v27 = vld [vmem:[%s10679_s3 + $0x1f70] sm:$0xff]  ;;  %v5561_v9 = vld [vmem:[%s10679_s3 + $0x1f68] sm:$0xff] }
 0x344   : > { %3666 = vmatpush1.msra.mxu1 %v5400_v8  ;;  %3749 = vmatpush1.msra.mxu0 %v5402_v1  ;;  %v5563_v8 = vld [vmem:[%s10679_s3 + $0x1f78] sm:$0xff] }
 0x345   : > { %3671 = vmatprep.subr.mxu1 %v5604_v50  ;;  %3754 = vmatprep.subr.mxu0 %v5738_v16  ;;  %v5555_v1 = vld [vmem:[%s10679_s3 + $0x1f38] sm:$0xff]  ;;  %v5554_v50 = vld [vmem:[%s10679_s3 + $0x1f30] sm:$0xff] }
 0x346   : > { %3672 = vmatpush2.msra.mxu1 %v5603_v10  ;;  %3755 = vmatpush2.msra.mxu0 %v5605_v18  ;;  %v5556_v10 = vld [vmem:[%s10679_s3 + $0x1f40] sm:$0xff] }
 0x347   : > { %3673 = vmatprep.subr.mxu1 %v5597_v51  ;;  %3756 = vmatprep.subr.mxu0 %v5738_v16  ;;  %v5548_v18 = vld [vmem:[%s10679_s3 + $0x1f00] sm:$0xff]  ;;  %v5547_v51 = vld [vmem:[%s10679_s3 + $0x1ef8] sm:$0xff] }
 0x348   : > { %3674 = vmatpush2.msra.mxu1 %v5596_v42  ;;  %3757 = vmatpush2.msra.mxu0 %v5598_v4  ;;  %v5549_v42 = vld [vmem:[%s10679_s3 + $0x1f08] sm:$0xff] }
 0x349   : > { %3675 = vmatprep.subr.mxu1 %v5590_v26  ;;  %3758 = vmatprep.subr.mxu0 %v5738_v16  ;;  %v5541_v4 = vld [vmem:[%s10679_s3 + $0x1ec8] sm:$0xff]  ;;  %v5540_v26 = vld [vmem:[%s10679_s3 + $0x1ec0] sm:$0xff] }
 0x34a   : > { %3676 = vmatpush2.msra.mxu1 %v5589_v60  ;;  %3759 = vmatpush2.msra.mxu0 %v5591_v19  ;;  %v5542_v60 = vld [vmem:[%s10679_s3 + $0x1ed0] sm:$0xff] }
 0x34b   : > { %3677 = vmatprep.subr.mxu1 %v5583_v58  ;;  %3760 = vmatprep.subr.mxu0 %v5738_v16  ;;  %v5534_v19 = vld [vmem:[%s10679_s3 + $0x1e90] sm:$0xff]  ;;  %v5533_v58 = vld [vmem:[%s10679_s3 + $0x1e88] sm:$0xff] }
 0x34c   : > { %3678 = vmatpush2.msra.mxu1 %v5582_v5  ;;  %3761 = vmatpush2.msra.mxu0 %v5584_v49  ;;  %v5535_v5 = vld [vmem:[%s10679_s3 + $0x1e98] sm:$0xff] }
 0x34d   : > { %3679 = vmatprep.subr.mxu1 %v5576_v13  ;;  %3762 = vmatprep.subr.mxu0 %v5738_v16  ;;  %v5527_v49 = vld [vmem:[%s10679_s3 + $0x1e58] sm:$0xff]  ;;  %v5526_v13 = vld [vmem:[%s10679_s3 + $0x1e50] sm:$0xff] }
 0x34e   : > { %3680 = vmatpush2.msra.mxu1 %v5575_v0  ;;  %3763 = vmatpush2.msra.mxu0 %v5577_v35  ;;  %v5528_v0 = vld [vmem:[%s10679_s3 + $0x1e60] sm:$0xff] }
 0x34f   : > { %3681 = vmatprep.subr.mxu1 %v5569_v63  ;;  %3764 = vmatprep.subr.mxu0 %v5738_v16  ;;  %v5520_v35 = vld [vmem:[%s10679_s3 + $0x1e20] sm:$0xff]  ;;  %v5519_v63 = vld [vmem:[%s10679_s3 + $0x1e18] sm:$0xff] }
 0x350   : > { %3682 = vmatpush2.msra.mxu1 %v5568_v29  ;;  %3765 = vmatpush2.msra.mxu0 %v5570_v20  ;;  %v5521_v29 = vld [vmem:[%s10679_s3 + $0x1e28] sm:$0xff] }
 0x351   : > { %3683 = vmatprep.subr.mxu1 %v5562_v27  ;;  %3766 = vmatprep.subr.mxu0 %v5738_v16  ;;  %v5513_v27 = vld [vmem:[%s10679_s3 + $0x1de8] sm:$0xff] }
 0x352   : > { %3684 = vmatpush2.msra.mxu1 %v5561_v9  ;;  %3767 = vmatpush2.msra.mxu0 %v5563_v8  ;;  %v5512_v8 = vld [vmem:[%s10679_s3 + $0x1de0] sm:$0xff] }
 0x353   : > { %3685 = vmatprep.subr.mxu1 %v5555_v1  ;;  %3768 = vmatprep.subr.mxu0 %v5738_v16  ;;  %v5514_v1 = vld [vmem:[%s10679_s3 + $0x1df0] sm:$0xff] }
 0x354   : > { %3686 = vmatpush2.msra.mxu1 %v5554_v50  ;;  %3769 = vmatpush2.msra.mxu0 %v5556_v10 }
 0x355   : > { %3687 = vmatprep.subr.mxu1 %v5548_v18  ;;  %3770 = vmatprep.subr.mxu0 %v5738_v16  ;;  %v3993_v18 = vld [vmem:[%s10681_s5 + $0x2f8] sm:$0xff] }
 0x356   : > { %3688 = vmatpush2.msra.mxu1 %v5547_v51  ;;  %3771 = vmatpush2.msra.mxu0 %v5549_v42  ;;  %v3992_v42 = vld [vmem:[%s10681_s5 + $0x2f0] sm:$0xff] }
 0x357   : > { %3689 = vmatprep.subr.mxu1 %v5541_v4  ;;  %3772 = vmatprep.subr.mxu0 %v5738_v16 }
 0x358   : > { %3690 = vmatpush2.msra.mxu1 %v5540_v26  ;;  %3773 = vmatpush2.msra.mxu0 %v5542_v60  ;;  %v3927_v60 = vld [vmem:[%s10681_s5 + $0xe8] sm:$0xff] }
 0x359   : > { %3691 = vmatprep.subr.mxu1 %v5534_v19  ;;  %3774 = vmatprep.subr.mxu0 %v5738_v16  ;;  %v3991_v19 = vld [vmem:[%s10681_s5 + $0x2e8] sm:$0xff] }
 0x35a   : > { %3692 = vmatpush2.msra.mxu1 %v5533_v58  ;;  %3775 = vmatpush2.msra.mxu0 %v5535_v5  ;;  %v3989_v58 = vld [vmem:[%s10681_s5 + $0x2d8] sm:$0xff] }
 0x35b   : > { %3693 = vmatprep.subr.mxu1 %v5527_v49  ;;  %3776 = vmatprep.subr.mxu0 %v5738_v16  ;;  %v3030_v20 = vpop.f32.mrf.mxu0  ;;  %v3988_v49 = vld [vmem:[%s10681_s5 + $0x2d0] sm:$0xff] }
 0x35c   : > { %3694 = vmatpush2.msra.mxu1 %v5526_v13  ;;  %3777 = vmatpush2.msra.mxu0 %v5528_v0  ;;  %v9750_v9 = vadd.f32 %v3030_v20, %v8938_v22  ;;  %v3929_v22 = vld [vmem:[%s10681_s5 + $0xf8] sm:$0xff]  ;;  %v3987_v0 = vld [vmem:[%s10681_s5 + $0x2c8] sm:$0xff]  ;;  %v3920_v20 = vld [vmem:[%s10681_s5 + $0xb0] sm:$0xff] }
 0x35d   : > { %3695 = vmatprep.subr.mxu1 %v5520_v35  ;;  %3778 = vmatprep.subr.mxu0 %v5738_v16  ;;  %v3032_v50 = vpop.f32.mrf.mxu0 }
 0x35e   : > { %3696 = vmatpush2.msra.mxu1 %v5519_v63  ;;  %3779 = vmatpush2.msra.mxu0 %v5521_v29  ;;  %v9760_v10 = vadd.f32 %v3032_v50, %v8947_v40  ;;  %v3928_v40 = vld [vmem:[%s10681_s5 + $0xf0] sm:$0xff]  ;;  %v3922_v63 = vld [vmem:[%s10681_s5 + $0xc0] sm:$0xff]  ;;  %v3921_v29 = vld [vmem:[%s10681_s5 + $0xb8] sm:$0xff] }
 0x35f   : > { %3697 = vmatprep.subr.mxu1 %v5513_v27  ;;  %3780 = vmatprep.subr.mxu0 %v5738_v16  ;;  %v3984_v27 = vld [vmem:[%s10681_s5 + $0x2b0] sm:$0xff]  ;;  %v3918_v50 = vld [vmem:[%s10681_s5 + $0xa0] sm:$0xff] }
 0x360   : > { %3698 = vmatpush2.msra.mxu1 %v5512_v8  ;;  %3781 = vmatpush2.msra.mxu0 %v5514_v1  ;;  %v3919_v8 = vld [vmem:[%s10681_s5 + $0xa8] sm:$0xff] }
 0x361   : > { %3700 = vmatmul.mubr.f32.vlgmr.msra.gmra.mxu1 %v9408_v28  ;;  %3783 = vmatmul.mubr.f32.vlgmr.msra.gmra.mxu0 %v9408_v28  ;;  %v3036_v51 = vpop.f32.mrf.mxu0  ;;  %v3983_v1 = vld [vmem:[%s10681_s5 + $0x2a8] sm:$0xff] }
 0x362   : > { %5613 = vmatprep.mubr.msk.f32.mxu1 %vm924_vm2, %v9416_v47  ;;  %5616 = vmatprep.mubr.msk.f32.mxu0 %vm924_vm2, %v9416_v47  ;;  %v9782_v4 = vadd.f32 %v3036_v51, %v8976_v54  ;;  %v3926_v54 = vld [vmem:[%s10681_s5 + $0xe0] sm:$0xff]  ;;  %v3981_v51 = vld [vmem:[%s10681_s5 + $0x298] sm:$0xff] }
 0x363   : > { %v3038_v26 = vpop.f32.mrf.mxu0  ;;  %4108 = vmatprep.subr.mxu1 %v3929_v22  ;;  %4191 = vmatprep.subr.mxu0 %v3993_v18  ;;  %v3982_v22 = vld [vmem:[%s10681_s5 + $0x2a0] sm:$0xff]  ;;  %v3917_v18 = vld [vmem:[%s10681_s5 + $0x98] sm:$0xff] }
 0x364   : > { %v9785_v28 = vadd.f32 %v3038_v26, %v8990_v34  ;;  %4109 = vmatpush1.msra.mxu1 %v3928_v40  ;;  %4192 = vmatpush1.msra.mxu0 %v3992_v42  ;;  %v3990_v34 = vld [vmem:[%s10681_s5 + $0x2e0] sm:$0xff]  ;;  %v3916_v40 = vld [vmem:[%s10681_s5 + $0x90] sm:$0xff]  ;;  %v3915_v26 = vld [vmem:[%s10681_s5 + $0x88] sm:$0xff] }
 0x365   : > { %3706 = vmatmul.mubr.f32.gmra.mxu1 %v9458_v57  ;;  %3788 = vmatmul.mubr.f32.gmra.mxu0 %v9458_v57  ;;  %v3925_v57 = vld [vmem:[%s10681_s5 + $0xd8] sm:$0xff]  ;;  %v3980_v42 = vld [vmem:[%s10681_s5 + $0x290] sm:$0xff] }
 0x366   : > { %5614 = vmatprep.mubr.msk.f32.mxu1 %vm924_vm2, %v9396_v45  ;;  %5617 = vmatprep.mubr.msk.f32.mxu0 %vm924_vm2, %v9396_v45  ;;  %v3924_v45 = vld [vmem:[%s10681_s5 + $0xd0] sm:$0xff] }
 0x367   : > { %v3042_v47 = vpop.f32.mrf.mxu0  ;;  %4110 = vmatprep.subr.mxu1 %v3927_v60  ;;  %4193 = vmatprep.subr.mxu0 %v3991_v19  ;;  %v3979_v60 = vld [vmem:[%s10681_s5 + $0x288] sm:$0xff]  ;;  %v3914_v19 = vld [vmem:[%s10681_s5 + $0x80] sm:$0xff] }
 0x368   : > { %v9812_v5 = vadd.f32 %v3042_v47, %v9018_v52  ;;  %4111 = vmatpush1.msra.mxu1 %v3926_v54  ;;  %4194 = vmatpush1.msra.mxu0 %v3990_v34  ;;  %v3923_v52 = vld [vmem:[%s10681_s5 + $0xc8] sm:$0xff]  ;;  %v3978_v54 = vld [vmem:[%s10681_s5 + $0x280] sm:$0xff]  ;;  %v3913_v34 = vld [vmem:[%s10681_s5 + $0x78] sm:$0xff] }
 0x369   : > { %3712 = vmatmul.mubr.f32.gmra.mxu1 %v9430_v31  ;;  %3793 = vmatmul.mubr.f32.gmra.mxu0 %v9430_v31  ;;  %v3044_v13 = vpop.f32.mrf.mxu0  ;;  %v3986_v31 = vld [vmem:[%s10681_s5 + $0x2c0] sm:$0xff]  ;;  %v3977_v47 = vld [vmem:[%s10681_s5 + $0x278] sm:$0xff] }
 0x36a   : > { %v9829_v35 = vadd.f32 %v3044_v13, %v9033_v39  ;;  %4112 = vmatprep.subr.mxu1 %v3925_v57  ;;  %4195 = vmatprep.subr.mxu0 %v3989_v58  ;;  %v3985_v39 = vld [vmem:[%s10681_s5 + $0x2b8] sm:$0xff]  ;;  %v3912_v57 = vld [vmem:[%s10681_s5 + $0x70] sm:$0xff]  ;;  %v3910_v13 = vld [vmem:[%s10681_s5 + $0x60] sm:$0xff] }
 0x36b   : > { %4113 = vmatpush1.msra.mxu1 %v3924_v45  ;;  %4196 = vmatpush1.msra.mxu0 %v3988_v49  ;;  %v3976_v58 = vld [vmem:[%s10681_s5 + $0x270] sm:$0xff]  ;;  %v3911_v45 = vld [vmem:[%s10681_s5 + $0x68] sm:$0xff] }
 0x36c   : > { %4114 = vmatprep.subr.mxu1 %v3923_v52  ;;  %4197 = vmatprep.subr.mxu0 %v3987_v0  ;;  %v3975_v49 = vld [vmem:[%s10681_s5 + $0x268] sm:$0xff]  ;;  %v3974_v52 = vld [vmem:[%s10681_s5 + $0x260] sm:$0xff]  ;;  %v3909_v0 = vld [vmem:[%s10681_s5 + $0x58] sm:$0xff] }
 0x36d   : > { %4115 = vmatpush1.msra.mxu1 %v3922_v63  ;;  %4198 = vmatpush1.msra.mxu0 %v3986_v31  ;;  %v3973_v63 = vld [vmem:[%s10681_s5 + $0x258] sm:$0xff]  ;;  %v3908_v31 = vld [vmem:[%s10681_s5 + $0x50] sm:$0xff] }
 0x36e   : > { %4116 = vmatprep.subr.mxu1 %v3921_v29  ;;  %4199 = vmatprep.subr.mxu0 %v3985_v39  ;;  %v3972_v29 = vld [vmem:[%s10681_s5 + $0x250] sm:$0xff]  ;;  %v3907_v39 = vld [vmem:[%s10681_s5 + $0x48] sm:$0xff] }
 0x36f   : > { %4117 = vmatpush1.msra.mxu1 %v3920_v20  ;;  %4200 = vmatpush1.msra.mxu0 %v3984_v27  ;;  %v3971_v20 = vld [vmem:[%s10681_s5 + $0x248] sm:$0xff]  ;;  %v3906_v27 = vld [vmem:[%s10681_s5 + $0x40] sm:$0xff] }
 0x370   : > { %4118 = vmatprep.subr.mxu1 %v3919_v8  ;;  %4201 = vmatprep.subr.mxu0 %v3983_v1  ;;  %v3970_v8 = vld [vmem:[%s10681_s5 + $0x240] sm:$0xff]  ;;  %v3905_v1 = vld [vmem:[%s10681_s5 + $0x38] sm:$0xff] }
 0x371   : > { %4119 = vmatpush1.msra.mxu1 %v3918_v50  ;;  %4202 = vmatpush1.msra.mxu0 %v3982_v22  ;;  %v3969_v50 = vld [vmem:[%s10681_s5 + $0x238] sm:$0xff]  ;;  %v3904_v22 = vld [vmem:[%s10681_s5 + $0x30] sm:$0xff] }
 0x372   : > { %4120 = vmatprep.subr.mxu1 %v3917_v18  ;;  %4203 = vmatprep.subr.mxu0 %v3981_v51  ;;  %v3968_v18 = vld [vmem:[%s10681_s5 + $0x230] sm:$0xff]  ;;  %v3903_v51 = vld [vmem:[%s10681_s5 + $0x28] sm:$0xff] }
 0x373   : > { %4121 = vmatpush1.msra.mxu1 %v3916_v40  ;;  %4204 = vmatpush1.msra.mxu0 %v3980_v42  ;;  %v3967_v40 = vld [vmem:[%s10681_s5 + $0x228] sm:$0xff]  ;;  %v3902_v42 = vld [vmem:[%s10681_s5 + $0x20] sm:$0xff] }
 0x374   : > { %4122 = vmatprep.subr.mxu1 %v3915_v26  ;;  %4205 = vmatprep.subr.mxu0 %v3979_v60  ;;  %v3966_v26 = vld [vmem:[%s10681_s5 + $0x220] sm:$0xff]  ;;  %v3901_v60 = vld [vmem:[%s10681_s5 + $0x18] sm:$0xff] }
 0x375   : > { %4123 = vmatpush1.msra.mxu1 %v3914_v19  ;;  %4206 = vmatpush1.msra.mxu0 %v3978_v54  ;;  %v3965_v19 = vld [vmem:[%s10681_s5 + $0x218] sm:$0xff]  ;;  %v3900_v54 = vld [vmem:[%s10681_s5 + $0x10] sm:$0xff] }
 0x376   : > { %4124 = vmatprep.subr.mxu1 %v3913_v34  ;;  %4207 = vmatprep.subr.mxu0 %v3977_v47  ;;  %v3964_v34 = vld [vmem:[%s10681_s5 + $0x210] sm:$0xff]  ;;  %v3899_v47 = vld [vmem:[%s10681_s5 + $0x8] sm:$0xff] }
 0x377   : > { %4125 = vmatpush1.msra.mxu1 %v3912_v57  ;;  %4208 = vmatpush1.msra.mxu0 %v3976_v58  ;;  %v3963_v57 = vld [vmem:[%s10681_s5 + $0x208] sm:$0xff]  ;;  %v3898_v58 = vld [vmem:[%s10681_s5] sm:$0xff] }
 0x378   : > { %4126 = vmatprep.subr.mxu1 %v3911_v45  ;;  %4209 = vmatprep.subr.mxu0 %v3975_v49  ;;  %v3962_v45 = vld [vmem:[%s10681_s5 + $0x200] sm:$0xff]  ;;  %v3961_v49 = vld [vmem:[%s10681_s5 + $0x1f8] sm:$0xff] }
 0x379   : > { %4127 = vmatpush1.msra.mxu1 %v3910_v13  ;;  %4210 = vmatpush1.msra.mxu0 %v3974_v52  ;;  %v4025_v13 = vld [vmem:[%s10681_s5 + $0x3f8] sm:$0xff]  ;;  %v3960_v52 = vld [vmem:[%s10681_s5 + $0x1f0] sm:$0xff] }
 0x37a   : > { %4128 = vmatprep.subr.mxu1 %v3909_v0  ;;  %4211 = vmatprep.subr.mxu0 %v3973_v63  ;;  %v4024_v0 = vld [vmem:[%s10681_s5 + $0x3f0] sm:$0xff]  ;;  %v3959_v63 = vld [vmem:[%s10681_s5 + $0x1e8] sm:$0xff] }
 0x37b   : > { %4129 = vmatpush1.msra.mxu1 %v3908_v31  ;;  %4212 = vmatpush1.msra.mxu0 %v3972_v29  ;;  %v4023_v31 = vld [vmem:[%s10681_s5 + $0x3e8] sm:$0xff]  ;;  %v3958_v29 = vld [vmem:[%s10681_s5 + $0x1e0] sm:$0xff] }
 0x37c   : > { %4130 = vmatprep.subr.mxu1 %v3907_v39  ;;  %4213 = vmatprep.subr.mxu0 %v3971_v20  ;;  %v4022_v39 = vld [vmem:[%s10681_s5 + $0x3e0] sm:$0xff]  ;;  %v10005_v20 = vpop.f32.mrf.mxu1 }
 0x37d   : > { %4131 = vmatpush1.msra.mxu1 %v3906_v27  ;;  %4214 = vmatpush1.msra.mxu0 %v3970_v8  ;;  %v3957_v27 = vld [vmem:[%s10681_s5 + $0x1d8] sm:$0xff] }
 0x37e   : > { %4132 = vmatprep.subr.mxu1 %v3905_v1  ;;  %4215 = vmatprep.subr.mxu0 %v3969_v50  ;;  %v4021_v8 = vld [vmem:[%s10681_s5 + $0x3d8] sm:$0xff]  ;;  %v3956_v1 = vld [vmem:[%s10681_s5 + $0x1d0] sm:$0xff] }
 0x37f   : > { %4133 = vmatpush1.msra.mxu1 %v3904_v22  ;;  %4216 = vmatpush1.msra.mxu0 %v3968_v18  ;;  %v4020_v50 = vld [vmem:[%s10681_s5 + $0x3d0] sm:$0xff]  ;;  %v3955_v22 = vld [vmem:[%s10681_s5 + $0x1c8] sm:$0xff] }
 0x380   : > { %4134 = vmatprep.subr.mxu1 %v3903_v51  ;;  %4217 = vmatprep.subr.mxu0 %v3967_v40  ;;  %v4019_v18 = vld [vmem:[%s10681_s5 + $0x3c8] sm:$0xff]  ;;  %v3954_v51 = vld [vmem:[%s10681_s5 + $0x1c0] sm:$0xff] }
 0x381   : > { %4135 = vmatpush1.msra.mxu1 %v3902_v42  ;;  %4218 = vmatpush1.msra.mxu0 %v3966_v26  ;;  %v4018_v40 = vld [vmem:[%s10681_s5 + $0x3c0] sm:$0xff]  ;;  %v10031_v42 = vpop.f32.mrf.mxu1  ;;  %v3953_v26 = vld [vmem:[%s10681_s5 + $0x1b8] sm:$0xff] }
 0x382   : > { %4136 = vmatprep.subr.mxu1 %v3901_v60  ;;  %4219 = vmatprep.subr.mxu0 %v3965_v19  ;;  %v4017_v60 = vld [vmem:[%s10681_s5 + $0x3b8] sm:$0xff]  ;;  %v3952_v19 = vld [vmem:[%s10681_s5 + $0x1b0] sm:$0xff] }
 0x383   : > { %4137 = vmatpush1.msra.mxu1 %v3900_v54  ;;  %4220 = vmatpush1.msra.mxu0 %v3964_v34  ;;  %v4016_v54 = vld [vmem:[%s10681_s5 + $0x3b0] sm:$0xff]  ;;  %v3951_v34 = vld [vmem:[%s10681_s5 + $0x1a8] sm:$0xff] }
 0x384   : > { %4138 = vmatprep.subr.mxu1 %v3899_v47  ;;  %4221 = vmatprep.subr.mxu0 %v3963_v57  ;;  %v4015_v47 = vld [vmem:[%s10681_s5 + $0x3a8] sm:$0xff]  ;;  %v3950_v57 = vld [vmem:[%s10681_s5 + $0x1a0] sm:$0xff] }
 0x385   : > { %4139 = vmatpush1.msra.mxu1 %v3898_v58  ;;  %4222 = vmatpush1.msra.mxu0 %v3962_v45  ;;  %v4014_v58 = vld [vmem:[%s10681_s5 + $0x3a0] sm:$0xff]  ;;  %v10057_v45 = vpop.f32.mrf.mxu1 }
 0x386   : > { %4140 = vmatprep.subr.mxu1 %v3961_v49  ;;  %4223 = vmatprep.subr.mxu0 %v4025_v13  ;;  %v3949_v49 = vld [vmem:[%s10681_s5 + $0x198] sm:$0xff] }
 0x387   : > { %4141 = vmatpush2.msra.mxu1 %v3960_v52  ;;  %4224 = vmatpush2.msra.mxu0 %v4024_v0  ;;  %v4013_v13 = vld [vmem:[%s10681_s5 + $0x398] sm:$0xff]  ;;  %v3948_v52 = vld [vmem:[%s10681_s5 + $0x190] sm:$0xff] }
 0x388   : > { %4142 = vmatprep.subr.mxu1 %v3959_v63  ;;  %4225 = vmatprep.subr.mxu0 %v4023_v31  ;;  %v4012_v0 = vld [vmem:[%s10681_s5 + $0x390] sm:$0xff]  ;;  %v3947_v63 = vld [vmem:[%s10681_s5 + $0x188] sm:$0xff] }
 0x389   : > { %4143 = vmatpush2.msra.mxu1 %v3958_v29  ;;  %4226 = vmatpush2.msra.mxu0 %v4022_v39  ;;  %v4011_v31 = vld [vmem:[%s10681_s5 + $0x388] sm:$0xff]  ;;  %v3946_v29 = vld [vmem:[%s10681_s5 + $0x180] sm:$0xff] }
 0x38a   : > { %4144 = vmatprep.subr.mxu1 %v3957_v27  ;;  %4227 = vmatprep.subr.mxu0 %v4021_v8  ;;  %v4010_v39 = vld [vmem:[%s10681_s5 + $0x380] sm:$0xff]  ;;  %v10083_v27 = vpop.f32.mrf.mxu1  ;;  %v3945_v8 = vld [vmem:[%s10681_s5 + $0x178] sm:$0xff] }
 0x38b   : > { %4145 = vmatpush2.msra.mxu1 %v3956_v1  ;;  %4228 = vmatpush2.msra.mxu0 %v4020_v50  ;;  %v4009_v1 = vld [vmem:[%s10681_s5 + $0x378] sm:$0xff]  ;;  %v3944_v50 = vld [vmem:[%s10681_s5 + $0x170] sm:$0xff] }
 0x38c   : > { %4146 = vmatprep.subr.mxu1 %v3955_v22  ;;  %4229 = vmatprep.subr.mxu0 %v4019_v18  ;;  %v4008_v22 = vld [vmem:[%s10681_s5 + $0x370] sm:$0xff]  ;;  %v3943_v18 = vld [vmem:[%s10681_s5 + $0x168] sm:$0xff] }
 0x38d   : > { %4147 = vmatpush2.msra.mxu1 %v3954_v51  ;;  %4230 = vmatpush2.msra.mxu0 %v4018_v40  ;;  %v4007_v51 = vld [vmem:[%s10681_s5 + $0x368] sm:$0xff]  ;;  %v3942_v40 = vld [vmem:[%s10681_s5 + $0x160] sm:$0xff] }
 0x38e   : > { %4148 = vmatprep.subr.mxu1 %v3953_v26  ;;  %4231 = vmatprep.subr.mxu0 %v4017_v60  ;;  %v4006_v26 = vld [vmem:[%s10681_s5 + $0x360] sm:$0xff]  ;;  %v10109_v60 = vpop.f32.mrf.mxu1 }
 0x38f   : > { %4149 = vmatpush2.msra.mxu1 %v3952_v19  ;;  %4232 = vmatpush2.msra.mxu0 %v4016_v54  ;;  %v3941_v19 = vld [vmem:[%s10681_s5 + $0x158] sm:$0xff] }
 0x390   : > { %4150 = vmatprep.subr.mxu1 %v3951_v34  ;;  %4233 = vmatprep.subr.mxu0 %v4015_v47  ;;  %v4005_v54 = vld [vmem:[%s10681_s5 + $0x358] sm:$0xff]  ;;  %v3940_v34 = vld [vmem:[%s10681_s5 + $0x150] sm:$0xff] }
 0x391   : > { %4151 = vmatpush2.msra.mxu1 %v3950_v57  ;;  %4234 = vmatpush2.msra.mxu0 %v4014_v58  ;;  %v4004_v47 = vld [vmem:[%s10681_s5 + $0x350] sm:$0xff]  ;;  %v3939_v57 = vld [vmem:[%s10681_s5 + $0x148] sm:$0xff] }
 0x392   : > { %4152 = vmatprep.subr.mxu1 %v3949_v49  ;;  %4235 = vmatprep.subr.mxu0 %v4013_v13  ;;  %v4003_v58 = vld [vmem:[%s10681_s5 + $0x348] sm:$0xff]  ;;  %v3938_v49 = vld [vmem:[%s10681_s5 + $0x140] sm:$0xff] }
 0x393   : > { %4153 = vmatpush2.msra.mxu1 %v3948_v52  ;;  %4236 = vmatpush2.msra.mxu0 %v4012_v0  ;;  %v4002_v13 = vld [vmem:[%s10681_s5 + $0x340] sm:$0xff]  ;;  %v10135_v52 = vpop.f32.mrf.mxu1  ;;  %v3937_v0 = vld [vmem:[%s10681_s5 + $0x138] sm:$0xff] }
 0x394   : > { %4154 = vmatprep.subr.mxu1 %v3947_v63  ;;  %4237 = vmatprep.subr.mxu0 %v4011_v31  ;;  %v4001_v63 = vld [vmem:[%s10681_s5 + $0x338] sm:$0xff]  ;;  %v3936_v31 = vld [vmem:[%s10681_s5 + $0x130] sm:$0xff] }
 0x395   : > { %4155 = vmatpush2.msra.mxu1 %v3946_v29  ;;  %4238 = vmatpush2.msra.mxu0 %v4010_v39  ;;  %v4000_v29 = vld [vmem:[%s10681_s5 + $0x330] sm:$0xff] }
 0x396   : > { %4156 = vmatprep.subr.mxu1 %v3945_v8  ;;  %4239 = vmatprep.subr.mxu0 %v4009_v1  ;;  %v3935_v1 = vld [vmem:[%s10681_s5 + $0x128] sm:$0xff] }
 0x397   : > { %4157 = vmatpush2.msra.mxu1 %v3944_v50  ;;  %4240 = vmatpush2.msra.mxu0 %v4008_v22  ;;  %v3999_v50 = vld [vmem:[%s10681_s5 + $0x328] sm:$0xff] }
 0x398   : > { %4158 = vmatprep.subr.mxu1 %v3943_v18  ;;  %4241 = vmatprep.subr.mxu0 %v4007_v51  ;;  %v3934_v51 = vld [vmem:[%s10681_s5 + $0x120] sm:$0xff] }
 0x399   : > { %4159 = vmatpush2.msra.mxu1 %v3942_v40  ;;  %4242 = vmatpush2.msra.mxu0 %v4006_v26  ;;  %v3998_v40 = vld [vmem:[%s10681_s5 + $0x320] sm:$0xff] }
 0x39a   : > { %4160 = vmatprep.subr.mxu1 %v3941_v19  ;;  %4243 = vmatprep.subr.mxu0 %v4005_v54 }
 0x39b   : > { %4161 = vmatpush2.msra.mxu1 %v3940_v34  ;;  %4244 = vmatpush2.msra.mxu0 %v4004_v47  ;;  %v3932_v34 = vld [vmem:[%s10681_s5 + $0x110] sm:$0xff] }
 0x39c   : > { %4162 = vmatprep.subr.mxu1 %v3939_v57  ;;  %4245 = vmatprep.subr.mxu0 %v4003_v58  ;;  %v3996_v47 = vld [vmem:[%s10681_s5 + $0x310] sm:$0xff]  ;;  %v3931_v57 = vld [vmem:[%s10681_s5 + $0x108] sm:$0xff]  ;;  %v3930_v58 = vld [vmem:[%s10681_s5 + $0x100] sm:$0xff] }
 0x39d   : > { %v3113_v39 = vpop.f32.mrf.mxu1  ;;  %v3196_v8 = vpop.f32.mrf.mxu0  ;;  %4163 = vmatpush2.msra.mxu1 %v3938_v49  ;;  %4246 = vmatpush2.msra.mxu0 %v4002_v13  ;;  %v3994_v49 = vld [vmem:[%s10681_s5 + $0x300] sm:$0xff] }
 0x39e   : > { %v10156_v22 = vadd.f32 %v3113_v39, %v9386_v36  ;;  %v10159_v18 = vadd.f32 %v3196_v8, %v9388_v43  ;;  %4164 = vmatprep.subr.mxu1 %v3937_v0  ;;  %4247 = vmatprep.subr.mxu0 %v4001_v63  ;;  %v3933_v36 = vld [vmem:[%s10681_s5 + $0x118] sm:$0xff] }
 0x39f   : > { %v3115_v26 = vpop.f32.mrf.mxu1  ;;  %v3198_v19 = vpop.f32.mrf.mxu0  ;;  %4165 = vmatpush2.msra.mxu1 %v3936_v31  ;;  %4248 = vmatpush2.msra.mxu0 %v4000_v29  ;;  %v3997_v43 = vld [vmem:[%s10681_s5 + $0x318] sm:$0xff] }
 0x3a0   : > { %v10174_v54 = vadd.f32 %v3115_v26, %v9398_v6  ;;  %4166 = vmatprep.subr.mxu1 %v3935_v1  ;;  %4249 = vmatprep.subr.mxu0 %v3999_v50  ;;  %v3995_v6 = vld [vmem:[%s10681_s5 + $0x308] sm:$0xff]  ;;  %v4057_v63 = vld [vmem:[%s10681_s5 + $0x4f8] sm:$0xff] }
 0x3a1   : > { %4167 = vmatpush2.msra.mxu1 %v3934_v51  ;;  %4250 = vmatpush2.msra.mxu0 %v3998_v40  ;;  %v4097_v31 = vld [vmem:[%s10681_s5 + $0x638] sm:$0xff] }
 0x3a2   : > { %4168 = vmatprep.subr.mxu1 %v3933_v36  ;;  %4251 = vmatprep.subr.mxu0 %v3997_v43  ;;  %v1791_v43 = vadd.f32 %v8924_v53, %v8678_v55  ;;  %v1797_v55 = vadd.f32 %v8978_v32, %v8722_v48  ;;  %v1799_v32 = vadd.f32 %v9000_v41, %v8744_v21 }
 0x3a3   : > { %v3119_v13 = vpop.f32.mrf.mxu1  ;;  %v3201_v0 = vpop.f32.mrf.mxu0  ;;  %4169 = vmatpush2.msra.mxu1 %v3932_v34  ;;  %4252 = vmatpush2.msra.mxu0 %v3996_v47  ;;  %v3835_v47 = vsub.s32 3, %v6384_v3  ;;  %v1803_v21 = vadd.f32 %v9035_v59, %v8766_v7  ;;  %v4056_v7 = vld [vmem:[%s10681_s5 + $0x4f0] sm:$0xff] }
 0x3a4   : > { %v10201_v29 = vadd.f32 %v3119_v13, %v9432_v2  ;;  %v10204_v39 = vadd.f32 %v3201_v0, %v9434_v33  ;;  %4170 = vmatprep.subr.mxu1 %v3931_v57  ;;  %4253 = vmatprep.subr.mxu0 %v3995_v6  ;;  %v2621_v34 = vadd.f32 %v9224_v23, %v1791_v43 }
 0x3a5   : > { %v3121_v8 = vpop.f32.mrf.mxu1  ;;  %v3203_v1 = vpop.f32.mrf.mxu0  ;;  %4171 = vmatpush2.msra.mxu1 %v3930_v58  ;;  %4254 = vmatpush2.msra.mxu0 %v3994_v49  ;;  %v2628_v49 = vadd.f32 %v9276_v25, %v1797_v55  ;;  %v2629_v0 = vadd.f32 %v9302_v46, %v1799_v32 }
 0x3a6   : > { %v10207_v50 = vadd.f32 %v3121_v8, %v9446_v44  ;;  %4274 = vmatprep.subr.mxu1 %v4057_v63  ;;  %4381 = vmatprep.subr.mxu0 %v4097_v31  ;;  %v1793_v44 = vadd.f32 %v8949_v62, %v8700_v56  ;;  %v3210_v57 = vadd.f32 %v10005_v20, %v2621_v34 }
 0x3a7   : > { %v3217_v63 = vadd.f32 %v10057_v45, %v2628_v49  ;;  %v3218_v41 = vadd.f32 %v10083_v27, %v2629_v0  ;;  %v1805_v45 = vadd.f32 %v9062_v15, %v8788_v30  ;;  %v4096_v30 = vld [vmem:[%s10681_s5 + $0x630] sm:$0xff] }
 0x3a8   : > { %v4052_v0 = vld [vmem:[%s10681_s5 + $0x4d0] sm:$0xff] }
 0x3a9   : > { %v3125_v51 = vpop.f32.mrf.mxu1  ;;  %v3206_v40 = vpop.f32.mrf.mxu0  ;;  %v2636_v15 = vadd.f32 %v9354_v12, %v1805_v45  ;;  %v4046_v45 = vld [vmem:[%s10681_s5 + $0x4a0] sm:$0xff] }
 0x3aa   : > { %v10210_v26 = vadd.f32 %v3125_v51, %v9474_v14  ;;  %v10213_v2 = vadd.f32 %v3206_v40, %v9476_v37  ;;  %v10226_v14 = vld [vmem:[%s10680_s4] sm:$0x7f]  ;;  %v3831_v37 = vsub.s32 2, %v6384_v3 }
 0x3ab   : > { %v3127_v33 = vpop.f32.mrf.mxu1  ;;  %v3208_v19 = vpop.f32.mrf.mxu0  ;;  %v10238_v62 = vrot.slane %v10226_v14, %v903_v11  ;;  %v10243_v6 = vrot.slane %v10226_v14, %v907_v17  ;;  %v10250_v48 = vrot.slane %v10226_v14, %v3835_v47 }
 0x3ac   : > { %v10216_v36 = vadd.f32 %v3127_v33, %v9488_v61  ;;  %v2622_v61 = vadd.f32 %v9250_v38, %v1793_v44  ;;  %v10247_v58 = vrot.slane %v10226_v14, %v3831_v37  ;;  %v2635_v19 = vadd.f32 %v9328_v24, %v1803_v21  ;;  %v4050_v21 = vld [vmem:[%s10681_s5 + $0x4c0] sm:$0xff] }
 0x3ae   : > { %v3211_v56 = vadd.f32 %v10031_v42, %v2622_v61  ;;  %v3224_v24 = vadd.f32 %v10109_v60, %v2635_v19  ;;  %v4095_v61 = vld [vmem:[%s10681_s5 + $0x628] sm:$0xff]  ;;  %v4053_v60 = vld [vmem:[%s10681_s5 + $0x4d8] sm:$0xff] }
 0x3af   : > { %v4045_v19 = vld [vmem:[%s10681_s5 + $0x498] sm:$0xff] }
 0x3df   : > { %v3535_v53 = vpop.f32.mrf.mxu1  ;;  %v3618_v23 = vpop.f32.mrf.mxu0 }
 0x3e0   : > { %v3798_v38 = vadd.f32 %v3535_v53, %v3210_v57  ;;  %v3800_v20 = vadd.f32 %v3618_v23, %v9750_v9  ;;  %v3225_v53 = vadd.f32 %v10135_v52, %v2636_v15  ;;  %v4035_v15 = vld [vmem:[%s10681_s5 + $0x448] sm:$0xff] }
 0x3e1   : > { %v3537_v11 = vpop.f32.mrf.mxu1  ;;  %v3620_v42 = vpop.f32.mrf.mxu0 }
 0x3e2   : > { %v3799_v13 = vadd.f32 %v3537_v11, %v3211_v56  ;;  %v3801_v17 = vadd.f32 %v3620_v42, %v9760_v10  ;;  %v3856_v9 = vadd.f32 %v10238_v62, %v3798_v38  ;;  %v3858_v31 = vadd.f32 %v10247_v58, %v3800_v20  ;;  %v4094_v56 = vld [vmem:[%s10681_s5 + $0x620] sm:$0xff] }
 0x3e4   : > { %v3857_v8 = vadd.f32 %v10243_v6, %v3799_v13  ;;  %v3859_v1 = vadd.f32 %v10250_v48, %v3801_v17  ;;  %v3877_v43 = vmax.f32 %v3856_v9, 0.0  ;;  %v3879_v59 = vmax.f32 %v3858_v31, 0.0  ;;  %v4093_v31 = vld [vmem:[%s10681_s5 + $0x618] sm:$0xff] }
 0x3e5   : > { %v3541_v25 = vpop.f32.mrf.mxu1  ;;  %v3624_v51 = vpop.f32.mrf.mxu0 }
 0x3e6   : > { %v3878_v10 = vmax.f32 %v3857_v8, 0.0  ;;  %v3880_v40 = vmax.f32 %v3859_v1, 0.0  ;;  %v3805_v46 = vadd.f32 %v3541_v25, %v3217_v63  ;;  %v3807_v33 = vadd.f32 %v3624_v51, %v9782_v4  ;;  %v4055_v4 = vld [vmem:[%s10681_s5 + $0x4e8] sm:$0xff] }
 0x3e7   : > { %v3543_v44 = vpop.f32.mrf.mxu1  ;;  %v3626_v34 = vpop.f32.mrf.mxu0 }
 0x3e8   : > { %v3806_v27 = vadd.f32 %v3543_v44, %v3218_v41  ;;  %v3808_v37 = vadd.f32 %v3626_v34, %v9785_v28  ;;  %4172 = vmatprep.mubr.f32.mxu1 %v3878_v10  ;;  %v3863_v47 = vadd.f32 %v10238_v62, %v3805_v46  ;;  %4255 = vmatprep.mubr.f32.mxu0 %v3880_v40  ;;  %v4054_v28 = vld [vmem:[%s10681_s5 + $0x4e0] sm:$0xff]  ;;  %v4043_v44 = vld [vmem:[%s10681_s5 + $0x488] sm:$0xff] }
 0x3e9   : > { %4173 = vmatmul.mubr.f32.vlgmr.msra.gmra.mxu1 %v3877_v43  ;;  %v3865_v57 = vadd.f32 %v10247_v58, %v3807_v33  ;;  %4256 = vmatmul.mubr.f32.vlgmr.msra.gmra.mxu0 %v3879_v59  ;;  %v4090_v46 = vld [vmem:[%s10681_s5 + $0x600] sm:$0xff]  ;;  %v4047_v33 = vld [vmem:[%s10681_s5 + $0x4a8] sm:$0xff]  ;;  %v4044_v43 = vld [vmem:[%s10681_s5 + $0x490] sm:$0xff] }
 0x3ea   : > { %v3864_v55 = vadd.f32 %v10243_v6, %v3806_v27  ;;  %v3866_v12 = vadd.f32 %v10250_v48, %v3808_v37  ;;  %4275 = vmatpush1.msra.mxu1 %v4056_v7  ;;  %4382 = vmatpush1.msra.mxu0 %v4096_v30  ;;  %v3884_v49 = vmax.f32 %v3863_v47, 0.0  ;;  %v4042_v34 = vld [vmem:[%s10681_s5 + $0x480] sm:$0xff]  ;;  %v4041_v7 = vld [vmem:[%s10681_s5 + $0x478] sm:$0xff]  ;;  %v4040_v59 = vld [vmem:[%s10681_s5 + $0x470] sm:$0xff] }
 0x3eb   : > { %v3547_v23 = vpop.f32.mrf.mxu1  ;;  %v3630_v38 = vpop.f32.mrf.mxu0  ;;  %4276 = vmatprep.subr.mxu1 %v4055_v4  ;;  %4383 = vmatprep.subr.mxu0 %v4095_v61  ;;  %v3886_v52 = vmax.f32 %v3865_v57, 0.0  ;;  %v4039_v27 = vld [vmem:[%s10681_s5 + $0x468] sm:$0xff]  ;;  %v4038_v37 = vld [vmem:[%s10681_s5 + $0x460] sm:$0xff]  ;;  %v4037_v4 = vld [vmem:[%s10681_s5 + $0x458] sm:$0xff] }
 0x3ec   : > { %v3885_v20 = vmax.f32 %v3864_v55, 0.0  ;;  %v3887_v32 = vmax.f32 %v3866_v12, 0.0  ;;  %v3812_v11 = vadd.f32 %v3547_v23, %v3224_v24  ;;  %v3814_v42 = vadd.f32 %v3630_v38, %v9812_v5  ;;  %4277 = vmatpush1.msra.mxu1 %v4054_v28  ;;  %4384 = vmatpush1.msra.mxu0 %v4094_v56  ;;  %v4051_v5 = vld [vmem:[%s10681_s5 + $0x4c8] sm:$0xff]  ;;  %v4036_v30 = vld [vmem:[%s10681_s5 + $0x450] sm:$0xff]  ;;  %v4034_v24 = vld [vmem:[%s10681_s5 + $0x440] sm:$0xff] }
 0x3ed   : > { %v3549_v13 = vpop.f32.mrf.mxu1  ;;  %v3632_v17 = vpop.f32.mrf.mxu0  ;;  %4278 = vmatprep.subr.mxu1 %v4053_v60  ;;  %4385 = vmatprep.subr.mxu0 %v4093_v31  ;;  %v4033_v47 = vld [vmem:[%s10681_s5 + $0x438] sm:$0xff]  ;;  %v4032_v28 = vld [vmem:[%s10681_s5 + $0x430] sm:$0xff]  ;;  %v4031_v61 = vld [vmem:[%s10681_s5 + $0x428] sm:$0xff] }
 0x3ee   : > { %v3813_v9 = vadd.f32 %v3549_v13, %v3225_v53  ;;  %v3815_v63 = vadd.f32 %v3632_v17, %v9829_v35  ;;  %4178 = vmatprep.mubr.f32.mxu1 %v3885_v20  ;;  %v3870_v8 = vadd.f32 %v10238_v62, %v3812_v11  ;;  %v3872_v1 = vadd.f32 %v10247_v58, %v3814_v42  ;;  %v4092_v35 = vld [vmem:[%s10681_s5 + $0x610] sm:$0xff]  ;;  %v4049_v62 = vld [vmem:[%s10681_s5 + $0x4b8] sm:$0xff]  ;;  %v4091_v58 = vld [vmem:[%s10681_s5 + $0x608] sm:$0xff] }
 0x3ef   : > { %4261 = vmatprep.mubr.f32.mxu0 %v3887_v32  ;;  %4179 = vmatmul.mubr.f32.gmra.mxu1 %v3884_v49  ;;  %v4030_v57 = vld [vmem:[%s10681_s5 + $0x420] sm:$0xff]  ;;  %v4029_v55 = vld [vmem:[%s10681_s5 + $0x418] sm:$0xff]  ;;  %v4028_v12 = vld [vmem:[%s10681_s5 + $0x410] sm:$0xff] }
 0x3f0   : > { %v3871_v41 = vadd.f32 %v10243_v6, %v3813_v9  ;;  %v3873_v25 = vadd.f32 %v10250_v48, %v3815_v63  ;;  %4262 = vmatmul.mubr.f32.gmra.mxu0 %v3886_v52  ;;  %4279 = vmatpush1.msra.mxu1 %v4052_v0  ;;  %v3891_v40 = vmax.f32 %v3870_v8, 0.0  ;;  %v3893_v6 = vmax.f32 %v3872_v1, 0.0  ;;  %v4048_v48 = vld [vmem:[%s10681_s5 + $0x4b0] sm:$0xff]  ;;  %v4027_v60 = vld [vmem:[%s10681_s5 + $0x408] sm:$0xff]  ;;  %v4026_v56 = vld [vmem:[%s10681_s5 + $0x400] sm:$0xff] }
 0x3f1   : > { %4280 = vmatprep.subr.mxu1 %v4051_v5  ;;  %4386 = vmatpush1.msra.mxu0 %v4092_v35  ;;  %v4089_v53 = vld [vmem:[%s10681_s5 + $0x5f8] sm:$0xff]  ;;  %v4088_v23 = vld [vmem:[%s10681_s5 + $0x5f0] sm:$0xff]  ;;  %v4087_v38 = vld [vmem:[%s10681_s5 + $0x5e8] sm:$0xff]  ;;  %v3847_v35 = vsub.s32 6, %v6384_v3 }
 0x3f2   : > { %v3892_v51 = vmax.f32 %v3871_v41, 0.0  ;;  %v3894_v10 = vmax.f32 %v3873_v25, 0.0  ;;  %4281 = vmatpush1.msra.mxu1 %v4050_v21  ;;  %4387 = vmatprep.subr.mxu0 %v4091_v58  ;;  %v4086_v20 = vld [vmem:[%s10681_s5 + $0x5e0] sm:$0xff]  ;;  %v4085_v32 = vld [vmem:[%s10681_s5 + $0x5d8] sm:$0xff]  ;;  %v4084_v11 = vld [vmem:[%s10681_s5 + $0x5d0] sm:$0xff]  ;;  %v3839_v58 = vsub.s32 4, %v6384_v3 }
 0x3f3   : > { %4282 = vmatprep.subr.mxu1 %v4049_v62  ;;  %4388 = vmatpush1.msra.mxu0 %v4090_v46  ;;  %v4083_v42 = vld [vmem:[%s10681_s5 + $0x5c8] sm:$0xff]  ;;  %v4082_v49 = vld [vmem:[%s10681_s5 + $0x5c0] sm:$0xff]  ;;  %v4081_v13 = vld [vmem:[%s10681_s5 + $0x5b8] sm:$0xff]  ;;  %v3843_v62 = vsub.s32 5, %v6384_v3 }
 0x3f4   : > { %4184 = vmatprep.mubr.f32.mxu1 %v3892_v51  ;;  %4267 = vmatprep.mubr.f32.mxu0 %v3894_v10  ;;  %v4080_v17 = vld [vmem:[%s10681_s5 + $0x5b0] sm:$0xff]  ;;  %v4079_v0 = vld [vmem:[%s10681_s5 + $0x5a8] sm:$0xff]  ;;  %v4078_v52 = vld [vmem:[%s10681_s5 + $0x5a0] sm:$0xff]  ;;  %v3848_v10 = vrot.slane %v10226_v14, %v3847_v35 }
 0x3f5   : > { %4185 = vmatmul.mubr.f32.gmra.mxu1 %v3891_v40  ;;  %4268 = vmatmul.mubr.f32.gmra.mxu0 %v3893_v6  ;;  %v4077_v9 = vld [vmem:[%s10681_s5 + $0x598] sm:$0xff]  ;;  %v4076_v63 = vld [vmem:[%s10681_s5 + $0x590] sm:$0xff]  ;;  %v4075_v5 = vld [vmem:[%s10681_s5 + $0x588] sm:$0xff] }
 0x3f6   : > { %4283 = vmatpush1.msra.mxu1 %v4048_v48  ;;  %4421 = vmatprep.mubr.f32.mxu0 %v5738_v16  ;;  %v4074_v31 = vld [vmem:[%s10681_s5 + $0x580] sm:$0xff]  ;;  %v4073_v8 = vld [vmem:[%s10681_s5 + $0x578] sm:$0xff]  ;;  %v4072_v1 = vld [vmem:[%s10681_s5 + $0x570] sm:$0xff] }
 0x3f7   : > { %4284 = vmatprep.subr.mxu1 %v4047_v33  ;;  %4503 = vmatprep.subr.mxu0 %v5738_v16  ;;  %v4071_v21 = vld [vmem:[%s10681_s5 + $0x568] sm:$0xff]  ;;  %v4070_v41 = vld [vmem:[%s10681_s5 + $0x560] sm:$0xff]  ;;  %v4069_v25 = vld [vmem:[%s10681_s5 + $0x558] sm:$0xff]  ;;  %v3844_v33 = vrot.slane %v10226_v14, %v3843_v62 }
 0x3f8   : > { %4285 = vmatpush1.msra.mxu1 %v4046_v45  ;;  %v4068_v51 = vld [vmem:[%s10681_s5 + $0x550] sm:$0xff]  ;;  %v4067_v40 = vld [vmem:[%s10681_s5 + $0x548] sm:$0xff]  ;;  %v4066_v46 = vld [vmem:[%s10681_s5 + $0x540] sm:$0xff] }
 0x3f9   : > { %4286 = vmatprep.subr.mxu1 %v4045_v19  ;;  %v4065_v45 = vld [vmem:[%s10681_s5 + $0x538] sm:$0xff]  ;;  %v4484_v35 = vld [vmem:[%s10683_s7 + $0x50] sm:$0xff] }
 0x3fa   : > { %4287 = vmatpush1.msra.mxu1 %v4044_v43  ;;  %v3840_v43 = vrot.slane %v10226_v14, %v3839_v58  ;;  %v4481_v62 = vld [vmem:[%s10683_s7 + $0x38] sm:$0xff]  ;;  %v4480_v58 = vld [vmem:[%s10683_s7 + $0x30] sm:$0xff] }
 0x3fb   : > { %4288 = vmatprep.subr.mxu1 %v4043_v44 }
 0x3fc   : > { %4289 = vmatpush1.msra.mxu1 %v4042_v34 }
 0x3fd   : > { %4290 = vmatprep.subr.mxu1 %v4041_v7  ;;  %v4064_v7 = vld [vmem:[%s10681_s5 + $0x530] sm:$0xff] }
 0x3fe   : > { %4291 = vmatpush1.msra.mxu1 %v4040_v59 }
 0x3ff   : > { %4292 = vmatprep.subr.mxu1 %v4039_v27  ;;  %v4063_v27 = vld [vmem:[%s10681_s5 + $0x528] sm:$0xff] }
 0x400   : > { %4293 = vmatpush1.msra.mxu1 %v4038_v37 }
 0x401   : > { %4294 = vmatprep.subr.mxu1 %v4037_v4 }
 0x402   : > { %4295 = vmatpush1.msra.mxu1 %v4036_v30 }
 0x403   : > { %4296 = vmatprep.subr.mxu1 %v4035_v15 }
 0x404   : > { %4297 = vmatpush1.msra.mxu1 %v4034_v24 }
 0x405   : > { %4298 = vmatprep.subr.mxu1 %v4033_v47 }
 0x406   : > { %4299 = vmatpush1.msra.mxu1 %v4032_v28 }
 0x407   : > { %4300 = vmatprep.subr.mxu1 %v4031_v61 }
 0x408   : > { %4301 = vmatpush1.msra.mxu1 %v4030_v57  ;;  %v4060_v57 = vld [vmem:[%s10681_s5 + $0x510] sm:$0xff] }
 0x409   : > { %4302 = vmatprep.subr.mxu1 %v4029_v55 }
 0x40a   : > { %4303 = vmatpush1.msra.mxu1 %v4028_v12 }
 0x40b   : > { %4304 = vmatprep.subr.mxu1 %v4027_v60  ;;  %v4059_v60 = vld [vmem:[%s10681_s5 + $0x508] sm:$0xff] }
 0x40c   : > { %4305 = vmatpush1.msra.mxu1 %v4026_v56 }
 0x40d   : > { %4306 = vmatprep.subr.mxu1 %v4089_v53  ;;  %v4058_v53 = vld [vmem:[%s10681_s5 + $0x500] sm:$0xff] }
 0x40e   : > { %4307 = vmatpush2.msra.mxu1 %v4088_v23 }
 0x40f   : > { %4308 = vmatprep.subr.mxu1 %v4087_v38 }
 0x410   : > { %4309 = vmatpush2.msra.mxu1 %v4086_v20 }
 0x411   : > { %4310 = vmatprep.subr.mxu1 %v4085_v32 }
 0x412   : > { %4311 = vmatpush2.msra.mxu1 %v4084_v11 }
 0x413   : > { %4312 = vmatprep.subr.mxu1 %v4083_v42 }
 0x414   : > { %4313 = vmatpush2.msra.mxu1 %v4082_v49 }
 0x415   : > { %4314 = vmatprep.subr.mxu1 %v4081_v13 }
 0x416   : > { %4315 = vmatpush2.msra.mxu1 %v4080_v17 }
 0x417   : > { %4316 = vmatprep.subr.mxu1 %v4079_v0 }
 0x418   : > { %4317 = vmatpush2.msra.mxu1 %v4078_v52 }
 0x419   : > { %4318 = vmatprep.subr.mxu1 %v4077_v9 }
 0x41a   : > { %4319 = vmatpush2.msra.mxu1 %v4076_v63 }
 0x41b   : > { %4320 = vmatprep.subr.mxu1 %v4075_v5 }
 0x41c   : > { %4321 = vmatpush2.msra.mxu1 %v4074_v31  ;;  %v4488_v31 = vld [vmem:[%s10683_s7 + $0x70] sm:$0xff] }
 0x41d   : > { %4322 = vmatprep.subr.mxu1 %v4073_v8  ;;  %v4487_v8 = vld [vmem:[%s10683_s7 + $0x68] sm:$0xff] }
 0x41e   : > { %4323 = vmatpush2.msra.mxu1 %v4072_v1  ;;  %v4486_v1 = vld [vmem:[%s10683_s7 + $0x60] sm:$0xff] }
 0x41f   : > { %4324 = vmatprep.subr.mxu1 %v4071_v21  ;;  %v4485_v21 = vld [vmem:[%s10683_s7 + $0x58] sm:$0xff] }
 0x420   : > { %4325 = vmatpush2.msra.mxu1 %v4070_v41  ;;  %v4483_v41 = vld [vmem:[%s10683_s7 + $0x48] sm:$0xff] }
 0x421   : > { %v3701_v6 = vpop.f32.mrf.mxu1  ;;  %v3784_v48 = vpop.f32.mrf.mxu0  ;;  %4326 = vmatprep.subr.mxu1 %v4069_v25  ;;  %v4482_v25 = vld [vmem:[%s10683_s7 + $0x40] sm:$0xff] }
 0x422   : > { %v3804_v3 = vadd.f32 %v3784_v48, %v10159_v18  ;;  %4327 = vmatpush2.msra.mxu1 %v4068_v51  ;;  %v3802_v19 = vadd.f32 %v3701_v6, %v10156_v22  ;;  %v4062_v22 = vld [vmem:[%s10681_s5 + $0x520] sm:$0xff]  ;;  %v4479_v51 = vld [vmem:[%s10683_s7 + $0x28] sm:$0xff]  ;;  %v4476_v6 = vld [vmem:[%s10683_s7 + $0x10] sm:$0xff] }
 0x423   : > { %v3703_v44 = vpop.f32.mrf.mxu1  ;;  %v3786_v34 = vpop.f32.mrf.mxu0  ;;  %4328 = vmatprep.subr.mxu1 %v4067_v40  ;;  %v4477_v40 = vld [vmem:[%s10683_s7 + $0x18] sm:$0xff]  ;;  %v4475_v48 = vld [vmem:[%s10683_s7 + $0x8] sm:$0xff] }
 0x424   : > { %v3862_v59 = vadd.f32 %v3848_v10, %v3804_v3  ;;  %v3803_v18 = vadd.f32 %v3703_v44, %v10174_v54  ;;  %4329 = vmatpush2.msra.mxu1 %v4066_v46  ;;  %v4061_v54 = vld [vmem:[%s10681_s5 + $0x518] sm:$0xff]  ;;  %v3860_v15 = vadd.f32 %v3840_v43, %v3802_v19  ;;  %v4474_v46 = vld [vmem:[%s10683_s7] sm:$0xff]  ;;  %v4495_v19 = vld [vmem:[%s10683_s7 + $0xa8] sm:$0xff] }
 0x425   : > { %v3707_v37 = vpop.f32.mrf.mxu1  ;;  %v3789_v4 = vpop.f32.mrf.mxu0  ;;  %4330 = vmatprep.subr.mxu1 %v4065_v45  ;;  %v4498_v3 = vld [vmem:[%s10683_s7 + $0xc0] sm:$0xff]  ;;  %v4496_v45 = vld [vmem:[%s10683_s7 + $0xb0] sm:$0xff]  ;;  %v4493_v44 = vld [vmem:[%s10683_s7 + $0x98] sm:$0xff] }
 0x426   : > { %v3883_v14 = vmax.f32 %v3862_v59, 0.0  ;;  %v3861_v30 = vadd.f32 %v3844_v33, %v3803_v18  ;;  %4331 = vmatpush2.msra.mxu1 %v4064_v7  ;;  %v3809_v24 = vadd.f32 %v3707_v37, %v10201_v29  ;;  %v3811_v47 = vadd.f32 %v3789_v4, %v10204_v39  ;;  %v4492_v34 = vld [vmem:[%s10683_s7 + $0x90] sm:$0xff]  ;;  %v4491_v7 = vld [vmem:[%s10683_s7 + $0x88] sm:$0xff]  ;;  %v4490_v59 = vld [vmem:[%s10683_s7 + $0x80] sm:$0xff] }
 0x427   : > { %v3709_v28 = vpop.f32.mrf.mxu1  ;;  %v3791_v61 = vpop.f32.mrf.mxu0  ;;  %4332 = vmatprep.subr.mxu1 %v4063_v27  ;;  %v3881_v38 = vmax.f32 %v3860_v15, 0.0 }
 0x428   : > { %v3882_v55 = vmax.f32 %v3861_v30, 0.0  ;;  %v3810_v12 = vadd.f32 %v3709_v28, %v10207_v50  ;;  %5618 = vmatmul.mubr.msk.f32.vlgmr.msra.gmra.mxu0 %vm4098_vm6, %v3883_v14  ;;  %4333 = vmatpush2.msra.mxu1 %v4062_v22  ;;  %v3869_v29 = vadd.f32 %v3848_v10, %v3811_v47  ;;  %v3867_v20 = vadd.f32 %v3840_v43, %v3809_v24 }
 0x429   : > { %v3713_v56 = vpop.f32.mrf.mxu1  ;;  %v3794_v39 = vpop.f32.mrf.mxu0  ;;  %4334 = vmatprep.subr.mxu1 %v4061_v54  ;;  %4427 = vmatprep.mubr.f32.mxu0 %v5738_v16 }
 0x42a   : > { %v3868_v23 = vadd.f32 %v3844_v33, %v3810_v12  ;;  %v3818_v50 = vadd.f32 %v3794_v39, %v10213_v2  ;;  %4338 = vmatprep.mubr.f32.mxu1 %v3882_v55  ;;  %4335 = vmatpush2.msra.mxu1 %v4060_v57  ;;  %v3890_v32 = vmax.f32 %v3869_v29, 0.0  ;;  %v3816_v11 = vadd.f32 %v3713_v56, %v10210_v26 }
 0x42b   : > { %v3715_v42 = vpop.f32.mrf.mxu1  ;;  %v3796_v49 = vpop.f32.mrf.mxu0  ;;  %4336 = vmatprep.subr.mxu1 %v4059_v60  ;;  %v3888_v9 = vmax.f32 %v3867_v20, 0.0 }
 0x42c   : > { %v3889_v13 = vmax.f32 %v3868_v23, 0.0  ;;  %v3876_v17 = vadd.f32 %v3848_v10, %v3818_v50  ;;  %v3817_v0 = vadd.f32 %v3715_v42, %v10216_v36  ;;  %4337 = vmatpush2.msra.mxu1 %v4058_v53  ;;  %5619 = vmatmul.mubr.msk.f32.gmra.mxu0 %vm4098_vm6, %v3890_v32  ;;  %v3874_v63 = vadd.f32 %v3840_v43, %v3816_v11  ;;  %v4489_v36 = vld [vmem:[%s10683_s7 + $0x78] sm:$0xff]  ;;  %v4478_v10 = vld [vmem:[%s10683_s7 + $0x20] sm:$0xff] }
 0x42d   : > { %4339 = vmatmul.mubr.f32.vlgmr.msra.gmra.mxu1 %v3881_v38  ;;  %4433 = vmatprep.mubr.f32.mxu0 %v5738_v16  ;;  %v4494_v43 = vld [vmem:[%s10683_s7 + $0xa0] sm:$0xff] }
 0x42e   : > { %v3897_v52 = vmax.f32 %v3876_v17, 0.0  ;;  %v3875_v2 = vadd.f32 %v3844_v33, %v3817_v0  ;;  %4344 = vmatprep.mubr.f32.mxu1 %v3889_v13  ;;  %v3895_v26 = vmax.f32 %v3874_v63, 0.0  ;;  %4504 = vmatpush1.msra.mxu0 %v4489_v36  ;;  %v4497_v33 = vld [vmem:[%s10683_s7 + $0xb8] sm:$0xff]  ;;  %v4442_v13 = vld [vmem:[%s10682_s6 + $0x10] sm:$0xff] }
 0x42f   : > { %4505 = vmatprep.subr.mxu0 %v5738_v16 }
 0x430   : > { %v3896_v5 = vmax.f32 %v3875_v2, 0.0  ;;  %5620 = vmatmul.mubr.msk.f32.gmra.mxu0 %vm4098_vm6, %v3897_v52  ;;  %v4441_v52 = vld [vmem:[%s10682_s6 + $0x8] sm:$0xff] }
 0x431   : > { %4345 = vmatmul.mubr.f32.gmra.mxu1 %v3888_v9  ;;  %4506 = vmatpush1.msra.mxu0 %v4488_v31  ;;  %v4443_v9 = vld [vmem:[%s10682_s6 + $0x18] sm:$0xff] }
 0x432   : > { %4350 = vmatprep.mubr.f32.mxu1 %v3896_v5  ;;  %4507 = vmatprep.subr.mxu0 %v5738_v16 }
 0x433   : > { %4508 = vmatpush1.msra.mxu0 %v4487_v8 }
 0x434   : > { %4509 = vmatprep.subr.mxu0 %v5738_v16 }
 0x435   : > { %4351 = vmatmul.mubr.f32.gmra.mxu1 %v3895_v26  ;;  %4510 = vmatpush1.msra.mxu0 %v4486_v1  ;;  %v4440_v26 = vld [vmem:[%s10682_s6] sm:$0xff] }
 0x436   : > { %4511 = vmatprep.subr.mxu0 %v5738_v16  ;;  %v4444_v1 = vld [vmem:[%s10682_s6 + $0x20] sm:$0xf] }
 0x437   : > { %4512 = vmatpush1.msra.mxu0 %v4485_v21 }
 0x438   : > { %4513 = vmatprep.subr.mxu0 %v5738_v16 }
 0x439   : > { %4514 = vmatpush1.msra.mxu0 %v4484_v35 }
 0x43a   : > { %4515 = vmatprep.subr.mxu0 %v5738_v16 }
 0x43b   : > { %4516 = vmatpush1.msra.mxu0 %v4483_v41 }
 0x43c   : > { %4517 = vmatprep.subr.mxu0 %v5738_v16 }
 0x43d   : > { %4518 = vmatpush1.msra.mxu0 %v4482_v25 }
 0x43e   : > { %4519 = vmatprep.subr.mxu0 %v5738_v16 }
 0x43f   : > { %4520 = vmatpush1.msra.mxu0 %v4481_v62 }
 0x440   : > { %4521 = vmatprep.subr.mxu0 %v5738_v16 }
 0x441   : > { %4522 = vmatpush1.msra.mxu0 %v4480_v58 }
 0x442   : > { %4523 = vmatprep.subr.mxu0 %v5738_v16 }
 0x443   : > { %4524 = vmatpush1.msra.mxu0 %v4479_v51 }
 0x444   : > { %4525 = vmatprep.subr.mxu0 %v5738_v16 }
 0x445   : > { %4526 = vmatpush1.msra.mxu0 %v4478_v10  ;;  %v4445_v10 = vld [vmem:[%s10682_s6 + $0x28] sm:$0xf] }
 0x446   : > { %4527 = vmatprep.subr.mxu0 %v5738_v16 }
 0x447   : > { %4528 = vmatpush1.msra.mxu0 %v4477_v40 }
 0x448   : > { %4529 = vmatprep.subr.mxu0 %v5738_v16 }
 0x449   : > { %4530 = vmatpush1.msra.mxu0 %v4476_v6 }
 0x44a   : > { %4531 = vmatprep.subr.mxu0 %v5738_v16 }
 0x44b   : > { %4532 = vmatpush1.msra.mxu0 %v4475_v48 }
 0x44c   : > { %4533 = vmatprep.subr.mxu0 %v5738_v16 }
 0x44d   : > { %4534 = vmatpush1.msra.mxu0 %v4474_v46 }
 0x44e   : > { %4549 = vmatprep.subr.mxu0 %v5738_v16 }
 0x44f   : > { %4550 = vmatpush2.msra.mxu0 %v4498_v3 }
 0x450   : > { %4551 = vmatprep.subr.mxu0 %v5738_v16 }
 0x451   : > { %4552 = vmatpush2.msra.mxu0 %v4497_v33 }
 0x452   : > { %4553 = vmatprep.subr.mxu0 %v5738_v16 }
 0x453   : > { %4554 = vmatpush2.msra.mxu0 %v4496_v45 }
 0x454   : > { %4555 = vmatprep.subr.mxu0 %v5738_v16 }
 0x455   : > { %4556 = vmatpush2.msra.mxu0 %v4495_v19 }
 0x456   : > { %4557 = vmatprep.subr.mxu0 %v5738_v16 }
 0x457   : > { %4558 = vmatpush2.msra.mxu0 %v4494_v43 }
 0x458   : > { %4559 = vmatprep.subr.mxu0 %v5738_v16 }
 0x459   : > { %4560 = vmatpush2.msra.mxu0 %v4493_v44 }
 0x45a   : > { %4561 = vmatprep.subr.mxu0 %v5738_v16 }
 0x45b   : > { %4562 = vmatpush2.msra.mxu0 %v4492_v34 }
 0x45c   : > { %4563 = vmatprep.subr.mxu0 %v5738_v16 }
 0x45d   : > { %4564 = vmatpush2.msra.mxu0 %v4491_v7 }
 0x45e   : > { %4565 = vmatprep.subr.mxu0 %v5738_v16 }
 0x45f   : > { %4566 = vmatpush2.msra.mxu0 %v4490_v59 }
 0x4a9   : > { %v4257_v18 = vpop.f32.mrf.mxu0  ;;  %v4174_v37 = vpop.f32.mrf.mxu1 }
 0x4aa   : > { %v4258_v29 = vadd.f32 %v4257_v18, %v4174_v37 }
 0x4ab   : > { %v4259_v27 = vpop.f32.mrf.mxu0  ;;  %v4176_v22 = vpop.f32.mrf.mxu1 }
 0x4ac   : > { %v4260_v60 = vadd.f32 %v4259_v27, %v4176_v22 }
 0x4af   : > { %v4180_v30 = vpop.f32.mrf.mxu1 }
 0x4b0   : > { %v4263_v4 = vpop.f32.mrf.mxu0 }
 0x4b1   : > { %v4182_v15 = vpop.f32.mrf.mxu1  ;;  %v4264_v56 = vadd.f32 %v4263_v4, %v4180_v30 }
 0x4b2   : > { %v4265_v14 = vpop.f32.mrf.mxu0 }
 0x4b3   : > { %v4266_v38 = vadd.f32 %v4265_v14, %v4182_v15 }
 0x4b5   : > { %v4269_v54 = vpop.f32.mrf.mxu0  ;;  %v4186_v47 = vpop.f32.mrf.mxu1 }
 0x4b6   : > { %v4270_v11 = vadd.f32 %v4269_v54, %v4186_v47  ;;  %v4499_v47 = vld [vmem:[%s10684_s8] sm:$0x1] }
 0x4b7   : > { %v4271_v24 = vpop.f32.mrf.mxu0  ;;  %v4188_v57 = vpop.f32.mrf.mxu1 }
 0x4b8   : > { %v4272_v5 = vadd.f32 %v4271_v24, %v4188_v57 }
 0x4e8   : > { %v4423_v28 = vpop.f32.mrf.mxu0 }
 0x4ea   : > { %v4425_v61 = vpop.f32.mrf.mxu0 }
 0x4ec   : > { %v4429_v55 = vpop.f32.mrf.mxu0 }
 0x4ed   : > { %v4340_v12 = vpop.f32.mrf.mxu1 }
 0x4ee   : > { %v4341_v53 = vadd.f32 %v4340_v12, %v4258_v29  ;;  %v4431_v23 = vpop.f32.mrf.mxu0 }
 0x4ef   : > { %v4342_v16 = vpop.f32.mrf.mxu1 }
 0x4f0   : > { %v4343_v39 = vadd.f32 %v4342_v16, %v4260_v60  ;;  %v4424_v0 = vadd.f32 %v4423_v28, %v4341_v53  ;;  %v4435_v2 = vpop.f32.mrf.mxu0 }
 0x4f1   : > { %v4346_v50 = vpop.f32.mrf.mxu1 }
 0x4f2   : > { %v4347_v20 = vadd.f32 %v4346_v50, %v4264_v56  ;;  %v4426_v42 = vadd.f32 %v4425_v61, %v4343_v39  ;;  %v4446_v58 = vmul.f32 %v4440_v26, %v4424_v0  ;;  %v4437_v51 = vpop.f32.mrf.mxu0 }
 0x4f3   : > { %v4348_v32 = vpop.f32.mrf.mxu1 }
 0x4f4   : > { %v4430_v49 = vadd.f32 %v4429_v55, %v4347_v20  ;;  %v4349_v17 = vadd.f32 %v4348_v32, %v4266_v38  ;;  %v4447_v35 = vmul.f32 %v4441_v52, %v4426_v42 }
 0x4f5   : > { %v4352_v63 = vpop.f32.mrf.mxu1 }
 0x4f6   : > { %v4432_v36 = vadd.f32 %v4431_v23, %v4349_v17  ;;  %v4353_v31 = vadd.f32 %v4352_v63, %v4270_v11  ;;  %v4448_v8 = vmul.f32 %v4442_v13, %v4430_v49  ;;  %v4462_v45 = vsel %vm4461_vm7, %v4447_v35, 0.0 }
 0x4f7   : > { %v4354_v21 = vpop.f32.mrf.mxu1 }
 0x4f8   : > { %v4449_v41 = vmul.f32 %v4443_v9, %v4432_v36  ;;  %v4436_v25 = vadd.f32 %v4435_v2, %v4353_v31  ;;  %v4355_v62 = vadd.f32 %v4354_v21, %v4272_v5  ;;  %v4452_v46 = vadd.f32 %v4448_v8, %v4446_v58 }
 0x4fa   : > { %v4450_v40 = vmul.f32 %v4444_v1, %v4436_v25  ;;  %v4438_v6 = vadd.f32 %v4437_v51, %v4355_v62  ;;  %v4463_v48 = vsel %vm4461_vm7, %v4449_v41, 0.0 }
 0x4fb   : > { %v4464_v43 = vadd.f32 %v4463_v48, %v4462_v45 }
 0x4fc   : > { %v4453_v3 = vsel %vm363_vm0, %v4450_v40, 0.0  ;;  %v4451_v33 = vmul.f32 %v4445_v10, %v4438_v6 }
 0x4fd   : > { %v4454_v19 = vadd.f32 %v4453_v3, %v4452_v46 }
 0x4fe   : > { %v4466_v44 = vsel %vm4465_vm8, %v4451_v33, 0.0 }
 0x4ff   : > { %v4455_v34 = vrot.slane %v4454_v19, 4  ;;  %v4467_v7 = vadd.f32 %v4466_v44, %v4464_v43 }
 0x501   : > { %v4456_v59 = vadd.f32 %v4455_v34, %v4454_v19  ;;  %v4468_v18 = vrot.slane %v4467_v7, 4 }
 0x503   : > { %v4457_v27 = vrot.slane %v4456_v59, 2  ;;  %v4469_v37 = vadd.f32 %v4468_v18, %v4467_v7 }
 0x505   : > { %v4458_v4 = vadd.f32 %v4457_v27, %v4456_v59  ;;  %v4470_v22 = vrot.slane %v4469_v37, 2 }
 0x507   : > { %v4471_v14 = vadd.f32 %v4470_v22, %v4469_v37  ;;  %v4459_v30 = vrot.slane %v4458_v4, 1 }
 0x509   : > { %v4472_v54 = vrot.slane %v4471_v14, 1  ;;  %v4460_v24 = vadd.f32 %v4459_v30, %v4458_v4 }
 0x50b   : > { %v4473_v15 = vadd.f32 %v4472_v54, %v4471_v14 }
 0x50d   : > { %5621 = vmatprep.mubr.msk.f32.mxu0 %vm4461_vm7, %v4473_v15 }
 0x50e   : > { %4568 = vmatmul.mubr.f32.vlgmr.msra.gmra.mxu0 %v4460_v24 }
 0x5ce   : > { %v4569_v28 = vpop.f32.mrf.mxu0 }
 0x5cf   : > { %v4570_v61 = vadd.f32 %v4569_v28, %v4499_v47 }
 0x5d0   : > { %v4571_v57 = vpop.f32.mrf.mxu0 }
 0x5d1   : > { %v4574_v55 = vsel %vm4573_vm9, %v4570_v61, -inf }
 0x5d2   : > { %4575 = vmax.xlane.f32.xlu0 %v4574_v55 }
 0x65b   : > { %v4576_v12 = vpop.xlane.xlu0 %4575 }
 0x65c   : > { %v4577_v60 = vsub.f32 %v4570_v61, %v4576_v12 }
 0x65e   : > { %v4578_v29 = vmul.f32 1.442695, %v4577_v60 }
 0x660   : > { %5666 = vpow2.f32 %v4578_v29 }
 0x66d   : > { %v5667_v16 = vpop.eup %5666 }
 0x66e   : > { %v4580_v56 = vsel %vm4573_vm9, %v5667_v16, 0.0 }
 0x66f   : > { %4581 = vadd.xlane.f32.xlu0 %v4580_v56 }
 0x6f8   : > { %v4582_v39 = vpop.xlane.xlu0 %4581 }
 0x6f9   : > { %5668 = vlog2.f32 %v4582_v39 }
 0x706   : > { %v5669_v53 = vpop.eup %5668 }
 0x707   : > { %v4584_v23 = vmul.f32 0.6931472, %v5669_v53 }
 0x709   : > { %v4585_v50 = vsub.f32 %v4577_v60, %v4584_v23 }
 0x70b   : > { %4586 = vst.msk [vmem:[%s324_s21] sm:$0x1] %vm4573_vm9, %v4585_v50 }
 0x70c   : > { %5689 = shalt.err (!%p5686_p3)
}
 0x70d   : > { %s5690_s28 = scalar_lea.hbm %s4598_s23, 16  ;;  %s5694_s21 = scalar_lea.hbm %s10685_s9, 32 }
 0x70e   : > { %p5691_p4 = scmp.ne.s32.totalorder %s4598_s23, %s5690_s28  ;;  %p5695_p9 = scmp.lt.s32.totalorder %s4598_s23, %s10685_s9 }
 0x70f   : > { %p5696_p10 = scmp.lt.s32.totalorder %s5694_s21, %s5690_s28 }
 0x710   : > { %p5692_p7 = pnand %p5691_p4, %p5828_p5 }
 0x711   : > { %p5697_p11 = por %p5696_p10, %p5695_p9 }
 0x712   : > { %p5693_p8 = pneg %p5692_p7 }
 0x714   : > { %p5698_p12 = pnand %p5697_p11, %p5693_p8 }
 0x716   : > { %5701 = shalt.err (!%p5698_p12)
}
 0x717   : > { %5626 = dma.vmem_to_hbm [thread:$0]  (%p5828_p5), %s4601_s16, 16, %s4598_s23, %s4588_s24  }
 0x718 PF: > { %p5632_p13 = scmp.ge.s32.totalorder %s5736_s12, 2  ;;  %s4612_s25 = sand.u32 1, %s5724_s30  }
 0x719   : > { %s4613_s26 = scalar_lea.sflag [#allocation4], %s4612_s25 }
 0x71a   : > { %p5629_p0 = pnand %p5632_p13, %p5832_p6 }
 0x71c   : > { %p5630_p1 = pneg %p5629_p0 }
 0x71e   : > { %5719 = dma.done.wait (%p5630_p1), %s4613_s26, 16  }
 0x71f   : > { %5721 = vsyncadd (%p5630_p1), %s4613_s26, 4294967280  ;;  %p19_p2 = scmp.ge.s32.totalorder %s5815_s15, 4   ;;  %s10688_s30 = smov %s5728_s10 }
 0x720   : > { %s10689_s10 = smov %s5732_s11  ;;  %s10690_s11 = smov %s5826_s18 }
 0x721   : > { %s10691_s12 = smov %s5815_s15  ;;  %21 = sbr.rel (!%p19_p2) target bundleno = 3 (0x3), region = 99 }
 0x726   :  { %4617 = vsyncpa [#allocation4], 1 }
 0x727   :  { %4619 = vsyncpa [#allocation4 + $0x1], 1 }

</bundles_post_ra>
